<compile_context>
chip_gen: v6e
topology: v6e:2x2x1
jax: 0.10.0
libtpu: 0.0.40
codegen_flags: <defaults>
</compile_context>

<pallas_src>
import functools

import jax
import jax.numpy as jnp
from jax import lax
from jax.experimental import pallas as pl
from jax.experimental.pallas import tpu as pltpu


def _round_up(x, m):
    return (x + m - 1) // m * m


def _vq_kernel(x_ref, e_ref, e2_ref,              # inputs
               q_ref, idx_ref, counts_ref, sse_ref,   # outputs
               counts_scr, sse_scr,                   # VMEM scratch
               *, n_valid, n_total, matmul_dtype):
    i = pl.program_id(0)
    nsteps = pl.num_programs(0)
    tile_n, d_dim = x_ref.shape
    k_pad = e_ref.shape[0]

    @pl.when(i == 0)
    def _():
        counts_scr[...] = jnp.zeros_like(counts_scr)
        sse_scr[...] = jnp.zeros_like(sse_scr)

    x = x_ref[...]                        # (T, D)  f32
    e = e_ref[...]                        # (Kp, D) f32 (pad rows are zero)
    e2 = e2_ref[...]                      # (1, Kp) f32 (pad cols are huge)

    xm = x.astype(matmul_dtype)
    em = e.astype(matmul_dtype)

    # d(n,k) = |e_k|^2 - 2 x_n.e_k ; the per-row |x_n|^2 constant is dropped
    # (it does not change the argmin over k).
    xe = lax.dot_general(xm, em, (((1,), (1,)), ((), ())),
                         preferred_element_type=jnp.float32)      # (T, Kp)
    d = e2 - 2.0 * xe

    # first-min-index argmin (matches torch.argmin tie-breaking)
    dmin = jnp.min(d, axis=1, keepdims=True)                      # (T, 1)
    iota = lax.broadcasted_iota(jnp.int32, d.shape, 1)
    idx_col = jnp.min(jnp.where(d == dmin, iota, k_pad), axis=1,
                      keepdims=True)                              # (T, 1)
    onehot = (iota == idx_col).astype(jnp.float32)                # (T, Kp)

    # quantize: gather codebook rows with a one-hot matmul (MXU)
    q = jnp.dot(onehot.astype(matmul_dtype), em,
                preferred_element_type=jnp.float32)               # (T, D)
    q_ref[...] = q

    # lane-dense index row: idx[t] = sum_k k * onehot[t, k]  (tiny MXU dot,
    # avoids a sublane->lane relayout and masked (T,1) stores)
    code_ids = lax.broadcasted_iota(jnp.int32, (1, k_pad), 1).astype(jnp.float32)
    idx_row = lax.dot_general(code_ids, onehot, (((1,), (1,)), ((), ())),
                              preferred_element_type=jnp.float32)  # (1, T)
    idx_ref[...] = (idx_row + 0.5).astype(jnp.int32)

    # validity mask for padded tail tokens (static fast path when no padding)
    if n_valid == n_total:
        valid_row = jnp.ones((1, tile_n), jnp.float32)
    else:
        pos = i * tile_n + lax.broadcasted_iota(jnp.int32, (1, tile_n), 1)
        valid_row = (pos < n_valid).astype(jnp.float32)            # (1, T)

    # per-code counts and squared-error partials on the MXU; accumulated in
    # VMEM scratch (no per-step XLU column reductions, no output RMW stores)
    counts_scr[...] += lax.dot_general(valid_row, onehot,
                                       (((1,), (0,)), ((), ())),
                                       preferred_element_type=jnp.float32)
    diff = q - x
    sse_scr[...] += lax.dot_general(valid_row, diff * diff,
                                    (((1,), (0,)), ((), ())),
                                    preferred_element_type=jnp.float32)

    @pl.when(i == nsteps - 1)
    def _():
        counts_ref[...] = counts_scr[...]
        sse_ref[...] = jnp.sum(sse_scr[...]).reshape(1, 1)


def vq_forward(inputs, embedding, commitment_cost=0.25, *, tile_n=512,
               matmul_dtype=jnp.float32, interpret=False):
    """Eval-mode forward of VectorQuantizerEMA.

    inputs:    f32 [B, H, W, D]  (channel-last, D == embedding_dim)
    embedding: f32 [K, D]        (codebook)
    returns (loss, quantized, perplexity, encoding_indices, inputs)

    matmul_dtype=jnp.bfloat16 is recommended on v6e/v7x (argmin of near-tied
    codes may then resolve differently from the f32 reference).
    """
    inputs = inputs.astype(jnp.float32)
    embedding = embedding.astype(jnp.float32)
    K, D = embedding.shape
    flat = inputs.reshape(-1, D)
    N = flat.shape[0]

    # --- token axis: large MXU-filling tiles, pad N up and mask the tail ----
    req = int(tile_n)
    if N <= req:
        tile_n = max(8, _round_up(N, 8))        # one tile covers everything
    else:
        tile_n = max(128, _round_up(req, 128))  # lane-dense idx blocks
    n_pad = _round_up(N, tile_n)
    num_tiles = n_pad // tile_n
    if n_pad != N:
        flat = jnp.pad(flat, ((0, n_pad - N), (0, 0)))

    # --- code axis: pad K to a lane-full multiple of 128; padded codes get a
    # huge |e|^2 bias so they can never win the argmin -----------------------
    k_pad = _round_up(max(K, 128), 128)
    e2 = jnp.sum(embedding * embedding, axis=1)
    if k_pad != K:
        emb_p = jnp.pad(embedding, ((0, k_pad - K), (0, 0)))
        e2 = jnp.concatenate([e2, jnp.full((k_pad - K,), 1e30, jnp.float32)])
    else:
        emb_p = embedding
    e2 = e2.reshape(1, k_pad)

    kernel = functools.partial(_vq_kernel, n_valid=N, n_total=n_pad,
                               matmul_dtype=matmul_dtype)

    out_shapes = (
        jax.ShapeDtypeStruct((n_pad, D), jnp.float32),   # quantized (flat)
        jax.ShapeDtypeStruct((1, n_pad), jnp.int32),     # indices (lane-dense)
        jax.ShapeDtypeStruct((1, k_pad), jnp.float32),   # per-code counts
        jax.ShapeDtypeStruct((1, 1), jnp.float32),       # sum squared error
    )

    grid_spec = pltpu.PrefetchScalarGridSpec(
        num_scalar_prefetch=0,
        grid=(num_tiles,),
        in_specs=[
            pl.BlockSpec((tile_n, D), lambda i: (i, 0)),   # input token tile
            pl.BlockSpec((k_pad, D), lambda i: (0, 0)),    # codebook (resident)
            pl.BlockSpec((1, k_pad), lambda i: (0, 0)),    # |e|^2 row
        ],
        out_specs=[
            pl.BlockSpec((tile_n, D), lambda i: (i, 0)),   # quantized tile
            pl.BlockSpec((1, tile_n), lambda i: (0, i)),   # idx row (lane-dense)
            pl.BlockSpec((1, k_pad), lambda i: (0, 0)),    # counts (final step)
            pl.BlockSpec((1, 1), lambda i: (0, 0)),        # sse    (final step)
        ],
        scratch_shapes=[
            pltpu.VMEM((1, k_pad), jnp.float32),           # counts accumulator
            pltpu.VMEM((1, D), jnp.float32),               # sse lane partials
        ],
    )

    q_flat, idx_row, counts, sse = pl.pallas_call(
        kernel,
        out_shape=out_shapes,
        grid_spec=grid_spec,
        compiler_params=pltpu.CompilerParams(
            # Token axis carries the counts/sse scratch accumulators, so it
            # must stay sequential ("arbitrary").
            dimension_semantics=("arbitrary",),
            # Working set is a few MiB (token tile + codebook + (T,Kp)
            # intermediates, double-buffered); fits v7x's 64 MiB VMEM easily.
            vmem_limit_bytes=32 * 1024 * 1024,
        ),
        interpret=interpret,
    )(flat, emb_p, e2)

    quantized = q_flat[:N].reshape(inputs.shape)
    encoding_indices = idx_row[0, :N].reshape(inputs.shape[:-1])

    e_latent_loss = sse[0, 0] / jnp.float32(N * D)
    loss = commitment_cost * e_latent_loss

    # straight-through estimator: forward value equals quantized
    quantized_st = inputs + lax.stop_gradient(quantized - inputs)

    avg_probs = counts[0, :K] / jnp.float32(N)
    perplexity = jnp.exp(-jnp.sum(avg_probs * jnp.log(avg_probs + 1e-10)))

    return loss, quantized_st, perplexity, encoding_indices, inputs


def _reference(inputs, embedding, commitment_cost=0.25):
    """Plain-JAX reference mirroring the PyTorch eval forward."""
    D = embedding.shape[1]
    flat = inputs.reshape(-1, D)
    d = (jnp.sum(flat ** 2, axis=1, keepdims=True)
         + jnp.sum(embedding ** 2, axis=1)
         - 2.0 * flat @ embedding.T)
    idx = jnp.argmin(d, axis=1)
    enc = jax.nn.one_hot(idx, embedding.shape[0], dtype=jnp.float32)
    q = (enc @ embedding).reshape(inputs.shape)
    loss = commitment_cost * jnp.mean((q - inputs) ** 2)
    avg = jnp.mean(enc, axis=0)
    perp = jnp.exp(-jnp.sum(avg * jnp.log(avg + 1e-10)))
    return loss, q, perp, idx.reshape(inputs.shape[:-1])


if __name__ == "__main__":
    key = jax.random.PRNGKey(0)
    k_x, k_e, k_x2, k_e2 = jax.random.split(key, 4)

    # ---- primary config: B,H,W = 2,16,16, D = 32, K = 64 (N = 512 tokens) ---
    B, H, W = 2, 16, 16
    embedding_dim = 32
    num_embeddings = 64
    commitment_cost = 0.25

    x = jax.random.normal(k_x, (B, H, W, embedding_dim), dtype=jnp.float32)
    emb = jax.random.normal(k_e, (num_embeddings, embedding_dim),
                            dtype=jnp.float32)

    outs = vq_forward(x, emb, commitment_cost)
    jax.block_until_ready(outs)
    loss, quantized, perplexity, enc_idx, inp = outs

    r_loss, r_q, r_perp, r_idx = _reference(x, emb, commitment_cost)
    assert jnp.allclose(loss, r_loss, rtol=1e-4, atol=1e-6), (loss, r_loss)
    assert jnp.allclose(quantized, r_q, atol=1e-5)
    assert jnp.allclose(perplexity, r_perp, rtol=1e-4, atol=1e-6)
    assert jnp.array_equal(enc_idx, r_idx.astype(enc_idx.dtype))
    assert jnp.allclose(inp, x)

    # ---- ragged config: exercises N padding/masking across a multi-step grid
    #      and K padding (N = 544 -> two 512-token tiles; K = 100 -> 128) -----
    B2, H2, W2 = 2, 16, 17
    K2 = 100
    x2 = jax.random.normal(k_x2, (B2, H2, W2, embedding_dim), dtype=jnp.float32)
    emb2 = jax.random.normal(k_e2, (K2, embedding_dim), dtype=jnp.float32)

    outs2 = vq_forward(x2, emb2, commitment_cost)
    jax.block_until_ready(outs2)
    l2, q2, p2, i2, _ = outs2

    r_l2, r_q2, r_p2, r_i2 = _reference(x2, emb2, commitment_cost)
    assert jnp.allclose(l2, r_l2, rtol=1e-4, atol=1e-6), (l2, r_l2)
    assert jnp.allclose(q2, r_q2, atol=1e-5)
    assert jnp.allclose(p2, r_p2, rtol=1e-4, atol=1e-6)
    assert jnp.array_equal(i2, r_i2.astype(i2.dtype))

    print("KERNEL_OK")
</pallas_src>

<mosaic_0001>
module attributes {stable_mosaic.version = 11 : i64} {
  func.func @_vq_kernel(%arg0: i32, %arg1: memref<512x32xf32, #tpu.memory_space<vmem>>, %arg2: memref<128x32xf32, #tpu.memory_space<vmem>>, %arg3: memref<1x128xf32, #tpu.memory_space<vmem>>, %arg4: memref<512x32xf32, #tpu.memory_space<vmem>>, %arg5: memref<1x512xi32, #tpu.memory_space<vmem>>, %arg6: memref<1x128xf32, #tpu.memory_space<vmem>>, %arg7: memref<1x1xf32, #tpu.memory_space<vmem>>, %arg8: memref<1x128xf32, #tpu.memory_space<vmem>>, %arg9: memref<1x32xf32, #tpu.memory_space<vmem>>) attributes {dimension_semantics = [#tpu.dimension_semantics<arbitrary>], iteration_bounds = array<i64: 1>, scalar_prefetch = 0 : i64, scratch_operands = 2 : i64, tpu.core_type = #tpu.core_type<tc>, window_params = [{transform_indices = @transform_0, window_bounds = array<i64: 512, 32>}, {pipeline_mode = #tpu.pipeline_mode<synchronous>, transform_indices = @transform_1, window_bounds = array<i64: 128, 32>}, {pipeline_mode = #tpu.pipeline_mode<synchronous>, transform_indices = @transform_2, window_bounds = array<i64: 1, 128>}, {transform_indices = @transform_3, window_bounds = array<i64: 512, 32>}, {transform_indices = @transform_4, window_bounds = array<i64: 1, 512>}, {pipeline_mode = #tpu.pipeline_mode<synchronous>, transform_indices = @transform_5, window_bounds = array<i64: 1, 128>}, {pipeline_mode = #tpu.pipeline_mode<synchronous>, transform_indices = @transform_6, window_bounds = array<i64: 1, 1>}]} {
    %c0_i32 = arith.constant 0 : i32
    %0 = arith.cmpi eq, %arg0, %c0_i32 : i32
    %1 = arith.extui %0 : i1 to i32
    %c0_i32_0 = arith.constant 0 : i32
    %2 = arith.cmpi ne, %1, %c0_i32_0 : i32
    scf.if %2 {
      %cst_29 = arith.constant 0.000000e+00 : f32
      %47 = vector.broadcast %cst_29 : f32 to vector<1x128xf32>
      %c0_30 = arith.constant 0 : index
      %c0_31 = arith.constant 0 : index
      %48 = vector.load %arg8[%c0_30, %c0_31] : memref<1x128xf32, #tpu.memory_space<vmem>>, vector<1x128xf32>
      tpu.vector_store %arg8[%c0_30, %c0_31], %47 {strides = array<i32>} : memref<1x128xf32, #tpu.memory_space<vmem>>, vector<1x128xf32>,
      %cst_32 = arith.constant 0.000000e+00 : f32
      %49 = vector.broadcast %cst_32 : f32 to vector<1x32xf32>
      %c0_33 = arith.constant 0 : index
      %c0_34 = arith.constant 0 : index
      %50 = vector.load %arg9[%c0_33, %c0_34] : memref<1x32xf32, #tpu.memory_space<vmem>>, vector<1x32xf32>
      tpu.vector_store %arg9[%c0_33, %c0_34], %49 {strides = array<i32>} : memref<1x32xf32, #tpu.memory_space<vmem>>, vector<1x32xf32>,
    } else {
    }
    %c0 = arith.constant 0 : index
    %c0_1 = arith.constant 0 : index
    %3 = vector.load %arg1[%c0, %c0_1] : memref<512x32xf32, #tpu.memory_space<vmem>>, vector<512x32xf32>
    %c0_2 = arith.constant 0 : index
    %c0_3 = arith.constant 0 : index
    %4 = vector.load %arg2[%c0_2, %c0_3] : memref<128x32xf32, #tpu.memory_space<vmem>>, vector<128x32xf32>
    %c0_4 = arith.constant 0 : index
    %c0_5 = arith.constant 0 : index
    %5 = vector.load %arg3[%c0_4, %c0_5] : memref<1x128xf32, #tpu.memory_space<vmem>>, vector<1x128xf32>
    %cst = arith.constant dense<0.000000e+00> : vector<512x128xf32>
    %6 = tpu.matmul %3, %4, %cst {dimension_numbers = #tpu.dot_dimension_numbers<[1], [1], [0], [0], [0, 0, 1, 0], [], []>} : vector<512x32xf32>, vector<128x32xf32>, vector<512x128xf32> -> vector<512x128xf32>
    %cst_6 = arith.constant 2.000000e+00 : f32
    %7 = vector.broadcast %cst_6 : f32 to vector<512x128xf32>
    %8 = arith.mulf %7, %6 : vector<512x128xf32>
    %9 = vector.broadcast %5 : vector<1x128xf32> to vector<512x128xf32>
    %10 = arith.subf %9, %8 : vector<512x128xf32>
    %cst_7 = arith.constant dense<0x7F800000> : vector<512xf32>
    %11 = vector.multi_reduction <minimumf>, %10, %cst_7 [1] : vector<512x128xf32> to vector<512xf32>
    %12 = vector.shape_cast %11 : vector<512xf32> to vector<512x1xf32>
    %13 = tpu.iota {dimensions = array<i32: 1>} : vector<512x128xi32>
    %14 = vector.broadcast %12 : vector<512x1xf32> to vector<512x128xf32>
    %15 = arith.cmpf oeq, %10, %14 : vector<512x128xf32>
    %c128_i32 = arith.constant 128 : i32
    %16 = vector.broadcast %c128_i32 : i32 to vector<512x128xi32>
    %17 = arith.select %15, %13, %16 : vector<512x128xi1>, vector<512x128xi32>
    %cst_8 = arith.constant dense<2147483647> : vector<512xi32>
    %18 = vector.multi_reduction <minsi>, %17, %cst_8 [1] : vector<512x128xi32> to vector<512xi32>
    %19 = vector.shape_cast %18 : vector<512xi32> to vector<512x1xi32>
    %20 = vector.broadcast %19 : vector<512x1xi32> to vector<512x128xi32>
    %21 = arith.cmpi eq, %13, %20 : vector<512x128xi32>
    %22 = arith.extui %21 : vector<512x128xi1> to vector<512x128xi32>
    %23 = arith.sitofp %22 : vector<512x128xi32> to vector<512x128xf32>
    %cst_9 = arith.constant dense<0.000000e+00> : vector<512x32xf32>
    %24 = tpu.matmul %23, %4, %cst_9 {dimension_numbers = #tpu.dot_dimension_numbers<[1], [0], [0], [1], [0, 0, 1, 1], [], []>} : vector<512x128xf32>, vector<128x32xf32>, vector<512x32xf32> -> vector<512x32xf32>
    %c0_10 = arith.constant 0 : index
    %c0_11 = arith.constant 0 : index
    %25 = vector.load %arg4[%c0_10, %c0_11] : memref<512x32xf32, #tpu.memory_space<vmem>>, vector<512x32xf32>
    tpu.vector_store %arg4[%c0_10, %c0_11], %24 {strides = array<i32>} : memref<512x32xf32, #tpu.memory_space<vmem>>, vector<512x32xf32>,
    %26 = tpu.iota {dimensions = array<i32: 1>} : vector<1x128xi32>
    %27 = arith.sitofp %26 : vector<1x128xi32> to vector<1x128xf32>
    %cst_12 = arith.constant dense<0.000000e+00> : vector<1x512xf32>
    %28 = tpu.matmul %27, %23, %cst_12 {dimension_numbers = #tpu.dot_dimension_numbers<[1], [1], [0], [0], [0, 0, 1, 0], [], []>} : vector<1x128xf32>, vector<512x128xf32>, vector<1x512xf32> -> vector<1x512xf32>
    %cst_13 = arith.constant 5.000000e-01 : f32
    %29 = vector.broadcast %cst_13 : f32 to vector<1x512xf32>
    %30 = arith.addf %28, %29 : vector<1x512xf32>
    %31 = arith.fptosi %30 : vector<1x512xf32> to vector<1x512xi32>
    %c0_14 = arith.constant 0 : index
    %c0_15 = arith.constant 0 : index
    %32 = vector.load %arg5[%c0_14, %c0_15] : memref<1x512xi32, #tpu.memory_space<vmem>>, vector<1x512xi32>
    tpu.vector_store %arg5[%c0_14, %c0_15], %31 {strides = array<i32>} : memref<1x512xi32, #tpu.memory_space<vmem>>, vector<1x512xi32>,
    %cst_16 = arith.constant 1.000000e+00 : f32
    %33 = vector.broadcast %cst_16 : f32 to vector<1x512xf32>
    %c0_17 = arith.constant 0 : index
    %c0_18 = arith.constant 0 : index
    %34 = vector.load %arg8[%c0_17, %c0_18] : memref<1x128xf32, #tpu.memory_space<vmem>>, vector<1x128xf32>
    %cst_19 = arith.constant dense<0.000000e+00> : vector<1x128xf32>
    %35 = tpu.matmul %33, %23, %cst_19 {dimension_numbers = #tpu.dot_dimension_numbers<[1], [0], [0], [1], [0, 0, 1, 1], [], []>} : vector<1x512xf32>, vector<512x128xf32>, vector<1x128xf32> -> vector<1x128xf32>
    %36 = arith.addf %34, %35 : vector<1x128xf32>
    %c0_20 = arith.constant 0 : index
    %c0_21 = arith.constant 0 : index
    %37 = vector.load %arg8[%c0_20, %c0_21] : memref<1x128xf32, #tpu.memory_space<vmem>>, vector<1x128xf32>
    tpu.vector_store %arg8[%c0_20, %c0_21], %36 {strides = array<i32>} : memref<1x128xf32, #tpu.memory_space<vmem>>, vector<1x128xf32>,
    %38 = arith.subf %24, %3 : vector<512x32xf32>
    %c0_22 = arith.constant 0 : index
    %c0_23 = arith.constant 0 : index
    %39 = vector.load %arg9[%c0_22, %c0_23] : memref<1x32xf32, #tpu.memory_space<vmem>>, vector<1x32xf32>
    %40 = arith.mulf %38, %38 : vector<512x32xf32>
    %cst_24 = arith.constant dense<0.000000e+00> : vector<1x32xf32>
    %41 = tpu.matmul %33, %40, %cst_24 {dimension_numbers = #tpu.dot_dimension_numbers<[1], [0], [0], [1], [0, 0, 1, 1], [], []>} : vector<1x512xf32>, vector<512x32xf32>, vector<1x32xf32> -> vector<1x32xf32>
    %42 = arith.addf %39, %41 : vector<1x32xf32>
    %c0_25 = arith.constant 0 : index
    %c0_26 = arith.constant 0 : index
    %43 = vector.load %arg9[%c0_25, %c0_26] : memref<1x32xf32, #tpu.memory_space<vmem>>, vector<1x32xf32>
    tpu.vector_store %arg9[%c0_25, %c0_26], %42 {strides = array<i32>} : memref<1x32xf32, #tpu.memory_space<vmem>>, vector<1x32xf32>,
    %c0_i32_27 = arith.constant 0 : i32
    %44 = arith.cmpi eq, %arg0, %c0_i32_27 : i32
    %45 = arith.extui %44 : i1 to i32
    %c0_i32_28 = arith.constant 0 : i32
    %46 = arith.cmpi ne, %45, %c0_i32_28 : i32
    scf.if %46 {
      %c0_29 = arith.constant 0 : index
      %c0_30 = arith.constant 0 : index
      %47 = vector.load %arg8[%c0_29, %c0_30] : memref<1x128xf32, #tpu.memory_space<vmem>>, vector<1x128xf32>
      %c0_31 = arith.constant 0 : index
      %c0_32 = arith.constant 0 : index
      %48 = vector.load %arg6[%c0_31, %c0_32] : memref<1x128xf32, #tpu.memory_space<vmem>>, vector<1x128xf32>
      tpu.vector_store %arg6[%c0_31, %c0_32], %47 {strides = array<i32>} : memref<1x128xf32, #tpu.memory_space<vmem>>, vector<1x128xf32>,
      %c0_33 = arith.constant 0 : index
      %c0_34 = arith.constant 0 : index
      %49 = vector.load %arg9[%c0_33, %c0_34] : memref<1x32xf32, #tpu.memory_space<vmem>>, vector<1x32xf32>
      %50 = vector.shape_cast %49 : vector<1x32xf32> to vector<1x1x32xf32>
      %cst_35 = arith.constant dense<0.000000e+00> : vector<1xf32>
      %51 = vector.multi_reduction <add>, %50, %cst_35 [1, 2] : vector<1x1x32xf32> to vector<1xf32>
      %52 = vector.shape_cast %51 : vector<1xf32> to vector<1x1x1xf32>
      %53 = vector.extract %52[0, 0, 0] : f32 from vector<1x1x1xf32>
      %54 = vector.broadcast %53 : f32 to vector<1x1xf32>
      %c0_36 = arith.constant 0 : index
      %c0_37 = arith.constant 0 : index
      %55 = vector.load %arg7[%c0_36, %c0_37] : memref<1x1xf32, #tpu.memory_space<vmem>>, vector<1x1xf32>
      tpu.vector_store %arg7[%c0_36, %c0_37], %54 {strides = array<i32>} : memref<1x1xf32, #tpu.memory_space<vmem>>, vector<1x1xf32>,
    } else {
    }
    return
  }
  func.func @transform_0(%arg0: i32) -> (i32, i32) {
    %c0_i32 = arith.constant 0 : i32
    %c0_i32_0 = arith.constant 0 : i32
    return %arg0, %c0_i32 : i32, i32
  }
  func.func @transform_1(%arg0: i32) -> (i32, i32) {
    %c0_i32 = arith.constant 0 : i32
    %c0_i32_0 = arith.constant 0 : i32
    %c0_i32_1 = arith.constant 0 : i32
    return %c0_i32, %c0_i32_0 : i32, i32
  }
  func.func @transform_2(%arg0: i32) -> (i32, i32) {
    %c0_i32 = arith.constant 0 : i32
    %c0_i32_0 = arith.constant 0 : i32
    %c0_i32_1 = arith.constant 0 : i32
    return %c0_i32, %c0_i32_0 : i32, i32
  }
  func.func @transform_3(%arg0: i32) -> (i32, i32) {
    %c0_i32 = arith.constant 0 : i32
    %c0_i32_0 = arith.constant 0 : i32
    return %arg0, %c0_i32 : i32, i32
  }
  func.func @transform_4(%arg0: i32) -> (i32, i32) {
    %c0_i32 = arith.constant 0 : i32
    %c0_i32_0 = arith.constant 0 : i32
    return %c0_i32, %arg0 : i32, i32
  }
  func.func @transform_5(%arg0: i32) -> (i32, i32) {
    %c0_i32 = arith.constant 0 : i32
    %c0_i32_0 = arith.constant 0 : i32
    %c0_i32_1 = arith.constant 0 : i32
    return %c0_i32, %c0_i32_0 : i32, i32
  }
  func.func @transform_6(%arg0: i32) -> (i32, i32) {
    %c0_i32 = arith.constant 0 : i32
    %c0_i32_0 = arith.constant 0 : i32
    %c0_i32_1 = arith.constant 0 : i32
    return %c0_i32, %c0_i32_0 : i32, i32
  }
}

</mosaic_0001>

<bundles_post_ra>
// kernel: tpu_custom_call.1
= control target key start
LH: loop header
LB: loop body
LE: loop exit
PB: predicated region body
PF: predicated region fallthrough
CT: control target
= control target key end

     0   :  { %12 = vsyncpa [#allocation5], 0  ;;  %vm7845_vm0 = vcmask 261120   ;;  %s7725_s0 = inlined_call_operand.vmem [shape: f32[512,32], index: 0, kind: input, shape index: {}]   ;;  %s7726_s1 = inlined_call_operand.vmem [shape: f32[128,32], index: 1, kind: input, shape index: {}]   ;;  %s7727_s2 = inlined_call_operand.vmem [shape: f32[1,128], index: 2, kind: input, shape index: {}]   ;;  %s7728_s3 = inlined_call_operand.vmem [shape: f32[512,32], index: 3, kind: output, shape index: {0}]   ;;  %s7729_s4 = inlined_call_operand.hbm [shape: s32[1,512], index: 4, kind: output, shape index: {1}]   ;;  %s7730_s5 = inlined_call_operand.hbm [shape: f32[1,128], index: 5, kind: output, shape index: {2}]   ;;  %s7731_s6 = inlined_call_operand.hbm [shape: f32[1,1], index: 6, kind: output, shape index: {3}]  }
   0x1   :  { %v106_v0 = vld [vmem:[%s7726_s1 + $0x78] sm:$0xff]  ;;  %v105_v1 = vld [vmem:[%s7726_s1 + $0x70] sm:$0xff]  ;;  %v104_v2 = vld [vmem:[%s7726_s1 + $0x68] sm:$0xff] }
   0x2   :  { %4023 = vmatprep.subr.msk.mxu0 %vm7845_vm0, %v106_v0  ;;  %4151 = vmatprep.subr.mxu1 %v106_v0  ;;  %v27_v3 = vld [vmem:[%s7725_s0] sm:$0xff]  ;;  %v102_v5 = vld [vmem:[%s7726_s1 + $0x58] sm:$0xff]  ;;  %v101_v6 = vld [vmem:[%s7726_s1 + $0x50] sm:$0xff] }
   0x3   :  { %4024 = vmatpush3.xpose.msk.msra.mxu0 %vm7845_vm0, %v106_v0  ;;  %4152 = vmatpush3.msra.mxu1 %v106_v0  ;;  %v103_v4 = vld [vmem:[%s7726_s1 + $0x60] sm:$0xff]  ;;  %v100_v7 = vld [vmem:[%s7726_s1 + $0x48] sm:$0xff]  ;;  %v98_v9 = vld [vmem:[%s7726_s1 + $0x38] sm:$0xff] }
   0x4   :  { %4025 = vmatprep.subr.msk.mxu0 %vm7845_vm0, %v105_v1  ;;  %4153 = vmatprep.subr.mxu1 %v105_v1  ;;  %v99_v8 = vld [vmem:[%s7726_s1 + $0x40] sm:$0xff]  ;;  %v97_v10 = vld [vmem:[%s7726_s1 + $0x30] sm:$0xff] }
   0x5   :  { %4154 = vmatpush3.msra.mxu1 %v105_v1  ;;  %4055 = vmatprep.mubr.msk.f32.mxu0 %vm7845_vm0, %v27_v3 }
   0x6   :  { %4155 = vmatprep.subr.mxu1 %v104_v2 }
   0x7   :  { %4026 = vmatpush3.xpose.msk.msra.mxu0 %vm7845_vm0, %v105_v1  ;;  %4156 = vmatpush3.msra.mxu1 %v104_v2 }
   0x8   :  { %4027 = vmatprep.subr.msk.mxu0 %vm7845_vm0, %v104_v2  ;;  %4157 = vmatprep.subr.mxu1 %v103_v4 }
   0x9   :  { %4158 = vmatpush3.msra.mxu1 %v103_v4 }
   0xa   :  { %4159 = vmatprep.subr.mxu1 %v102_v5 }
   0xb   :  { %4028 = vmatpush3.xpose.msk.msra.mxu0 %vm7845_vm0, %v104_v2  ;;  %4160 = vmatpush3.msra.mxu1 %v102_v5 }
   0xc   :  { %4029 = vmatprep.subr.msk.mxu0 %vm7845_vm0, %v103_v4  ;;  %4161 = vmatprep.subr.mxu1 %v101_v6 }
   0xd   :  { %4162 = vmatpush3.msra.mxu1 %v101_v6 }
   0xe   :  { %4163 = vmatprep.subr.mxu1 %v100_v7 }
   0xf   :  { %4030 = vmatpush3.xpose.msk.msra.mxu0 %vm7845_vm0, %v103_v4  ;;  %4164 = vmatpush3.msra.mxu1 %v100_v7 }
  0x10   :  { %4031 = vmatprep.subr.msk.mxu0 %vm7845_vm0, %v102_v5  ;;  %4165 = vmatprep.subr.mxu1 %v99_v8 }
  0x11   :  { %4166 = vmatpush3.msra.mxu1 %v99_v8 }
  0x12   :  { %4167 = vmatprep.subr.mxu1 %v98_v9 }
  0x13   :  { %4032 = vmatpush3.xpose.msk.msra.mxu0 %vm7845_vm0, %v102_v5  ;;  %4168 = vmatpush3.msra.mxu1 %v98_v9 }
  0x14   :  { %4033 = vmatprep.subr.msk.mxu0 %vm7845_vm0, %v101_v6  ;;  %4169 = vmatprep.subr.mxu1 %v97_v10 }
  0x15   :  { %13 = vsyncpa [#allocation7], 0  ;;  %v96_v11 = vld [vmem:[%s7726_s1 + $0x28] sm:$0xff]  ;;  %4170 = vmatpush3.msra.mxu1 %v97_v10  ;;  %v95_v12 = vld [vmem:[%s7726_s1 + $0x20] sm:$0xff]  ;;  %s4427_s29 = smov [#allocation4]  }
  0x16   :  { %4171 = vmatprep.subr.mxu1 %v96_v11  ;;  %v94_v13 = vld [vmem:[%s7726_s1 + $0x18] sm:$0xff]  ;;  %v93_v14 = vld [vmem:[%s7726_s1 + $0x10] sm:$0xff]  ;;  %v92_v15 = vld [vmem:[%s7726_s1 + $0x8] sm:$0xff]  ;;  %s3281_s30 = sshll.u32 %s4427_s29, 4  ;;  %s3282_s30 = int_to_ptr.vmem [resolvable:$true] %s3281_s30 }
  0x17   :  { %4034 = vmatpush3.xpose.msk.msra.mxu0 %vm7845_vm0, %v101_v6  ;;  %4172 = vmatpush3.msra.mxu1 %v96_v11  ;;  %v91_v16 = vld [vmem:[%s7726_s1] sm:$0xff]  ;;  %v28_v17 = vld [vmem:[%s7725_s0 + $0x8] sm:$0xff]  ;;  %v29_v18 = vld [vmem:[%s7725_s0 + $0x10] sm:$0xff] }
  0x18   :  { %4035 = vmatprep.subr.msk.mxu0 %vm7845_vm0, %v100_v7  ;;  %4173 = vmatprep.subr.mxu1 %v95_v12  ;;  %v30_v19 = vld [vmem:[%s7725_s0 + $0x18] sm:$0xff]  ;;  %v31_v20 = vld [vmem:[%s7725_s0 + $0x20] sm:$0xff]  ;;  %v32_v21 = vld [vmem:[%s7725_s0 + $0x28] sm:$0xff] }
  0x19   :  { %4174 = vmatpush3.msra.mxu1 %v95_v12  ;;  %v33_v22 = vld [vmem:[%s7725_s0 + $0x30] sm:$0xff]  ;;  %v34_v23 = vld [vmem:[%s7725_s0 + $0x38] sm:$0xff]  ;;  %v35_v24 = vld [vmem:[%s7725_s0 + $0x40] sm:$0xff] }
  0x1a   :  { %4175 = vmatprep.subr.mxu1 %v94_v13  ;;  %v36_v25 = vld [vmem:[%s7725_s0 + $0x48] sm:$0xff]  ;;  %v37_v26 = vld [vmem:[%s7725_s0 + $0x50] sm:$0xff]  ;;  %v38_v27 = vld [vmem:[%s7725_s0 + $0x58] sm:$0xff] }
  0x1b   :  { %4036 = vmatpush3.xpose.msk.msra.mxu0 %vm7845_vm0, %v100_v7  ;;  %4176 = vmatpush3.msra.mxu1 %v94_v13  ;;  %v39_v28 = vld [vmem:[%s7725_s0 + $0x60] sm:$0xff]  ;;  %v40_v29 = vld [vmem:[%s7725_s0 + $0x68] sm:$0xff]  ;;  %v41_v30 = vld [vmem:[%s7725_s0 + $0x70] sm:$0xff] }
  0x1c   :  { %4037 = vmatprep.subr.msk.mxu0 %vm7845_vm0, %v99_v8  ;;  %4177 = vmatprep.subr.mxu1 %v93_v14  ;;  %v42_v31 = vld [vmem:[%s7725_s0 + $0x78] sm:$0xff]  ;;  %v43_v32 = vld [vmem:[%s7725_s0 + $0x80] sm:$0xff]  ;;  %v44_v33 = vld [vmem:[%s7725_s0 + $0x88] sm:$0xff] }
  0x1d   :  { %4178 = vmatpush3.msra.mxu1 %v93_v14  ;;  %v45_v34 = vld [vmem:[%s7725_s0 + $0x90] sm:$0xff]  ;;  %v46_v35 = vld [vmem:[%s7725_s0 + $0x98] sm:$0xff]  ;;  %v47_v36 = vld [vmem:[%s7725_s0 + $0xa0] sm:$0xff] }
  0x1e   :  { %4179 = vmatprep.subr.mxu1 %v92_v15  ;;  %v48_v37 = vld [vmem:[%s7725_s0 + $0xa8] sm:$0xff]  ;;  %v49_v38 = vld [vmem:[%s7725_s0 + $0xb0] sm:$0xff]  ;;  %v50_v39 = vld [vmem:[%s7725_s0 + $0xb8] sm:$0xff] }
  0x1f   :  { %4038 = vmatpush3.xpose.msk.msra.mxu0 %vm7845_vm0, %v99_v8  ;;  %4180 = vmatpush3.msra.mxu1 %v92_v15  ;;  %v51_v40 = vld [vmem:[%s7725_s0 + $0xc0] sm:$0xff]  ;;  %v52_v41 = vld [vmem:[%s7725_s0 + $0xc8] sm:$0xff]  ;;  %v53_v42 = vld [vmem:[%s7725_s0 + $0xd0] sm:$0xff] }
  0x20   :  { %4039 = vmatprep.subr.msk.mxu0 %vm7845_vm0, %v98_v9  ;;  %4181 = vmatprep.subr.mxu1 %v91_v16  ;;  %v54_v43 = vld [vmem:[%s7725_s0 + $0xd8] sm:$0xff]  ;;  %v55_v44 = vld [vmem:[%s7725_s0 + $0xe0] sm:$0xff]  ;;  %v56_v45 = vld [vmem:[%s7725_s0 + $0xe8] sm:$0xff] }
  0x21   :  { %4182 = vmatpush3.msra.mxu1 %v91_v16  ;;  %v57_v46 = vld [vmem:[%s7725_s0 + $0xf0] sm:$0xff]  ;;  %v58_v47 = vld [vmem:[%s7725_s0 + $0xf8] sm:$0xff]  ;;  %v59_v48 = vld [vmem:[%s7725_s0 + $0x100] sm:$0xff] }
  0x22   :  { %v60_v49 = vld [vmem:[%s7725_s0 + $0x108] sm:$0xff]  ;;  %v61_v50 = vld [vmem:[%s7725_s0 + $0x110] sm:$0xff]  ;;  %v62_v51 = vld [vmem:[%s7725_s0 + $0x118] sm:$0xff] }
  0x23   :  { %4040 = vmatpush3.xpose.msk.msra.mxu0 %vm7845_vm0, %v98_v9  ;;  %v63_v52 = vld [vmem:[%s7725_s0 + $0x120] sm:$0xff]  ;;  %v64_v53 = vld [vmem:[%s7725_s0 + $0x128] sm:$0xff]  ;;  %v65_v54 = vld [vmem:[%s7725_s0 + $0x130] sm:$0xff] }
  0x24   :  { %4041 = vmatprep.subr.msk.mxu0 %vm7845_vm0, %v97_v10  ;;  %v66_v55 = vld [vmem:[%s7725_s0 + $0x138] sm:$0xff]  ;;  %v67_v56 = vld [vmem:[%s7725_s0 + $0x140] sm:$0xff]  ;;  %v68_v57 = vld [vmem:[%s7725_s0 + $0x148] sm:$0xff] }
  0x25   :  { %v69_v58 = vld [vmem:[%s7725_s0 + $0x150] sm:$0xff]  ;;  %v70_v59 = vld [vmem:[%s7725_s0 + $0x158] sm:$0xff]  ;;  %v71_v60 = vld [vmem:[%s7725_s0 + $0x160] sm:$0xff] }
  0x26   :  { %v72_v61 = vld [vmem:[%s7725_s0 + $0x168] sm:$0xff]  ;;  %v73_v62 = vld [vmem:[%s7725_s0 + $0x170] sm:$0xff]  ;;  %v74_v63 = vld [vmem:[%s7725_s0 + $0x178] sm:$0xff] }
  0x27   :  { %4042 = vmatpush3.xpose.msk.msra.mxu0 %vm7845_vm0, %v97_v10  ;;  %v75_v0 = vld [vmem:[%s7725_s0 + $0x180] sm:$0xff]  ;;  %v76_v1 = vld [vmem:[%s7725_s0 + $0x188] sm:$0xff]  ;;  %v77_v2 = vld [vmem:[%s7725_s0 + $0x190] sm:$0xff] }
  0x28   :  { %4043 = vmatprep.subr.msk.mxu0 %vm7845_vm0, %v96_v11  ;;  %v78_v3 = vld [vmem:[%s7725_s0 + $0x198] sm:$0xff]  ;;  %v79_v4 = vld [vmem:[%s7725_s0 + $0x1a0] sm:$0xff]  ;;  %v80_v5 = vld [vmem:[%s7725_s0 + $0x1a8] sm:$0xff] }
  0x29   :  { %v81_v6 = vld [vmem:[%s7725_s0 + $0x1b0] sm:$0xff]  ;;  %v82_v7 = vld [vmem:[%s7725_s0 + $0x1b8] sm:$0xff]  ;;  %v83_v8 = vld [vmem:[%s7725_s0 + $0x1c0] sm:$0xff] }
  0x2a   :  { %v84_v9 = vld [vmem:[%s7725_s0 + $0x1c8] sm:$0xff]  ;;  %v85_v10 = vld [vmem:[%s7725_s0 + $0x1d0] sm:$0xff] }
  0x2b   :  { %4044 = vmatpush3.xpose.msk.msra.mxu0 %vm7845_vm0, %v96_v11  ;;  %v86_v11 = vld [vmem:[%s7725_s0 + $0x1d8] sm:$0xff] }
  0x2c   :  { %4045 = vmatprep.subr.msk.mxu0 %vm7845_vm0, %v95_v12 }
  0x2f   :  { %4046 = vmatpush3.xpose.msk.msra.mxu0 %vm7845_vm0, %v95_v12  ;;  %v87_v12 = vld [vmem:[%s7725_s0 + $0x1e0] sm:$0xff] }
  0x30   :  { %4047 = vmatprep.subr.msk.mxu0 %vm7845_vm0, %v94_v13 }
  0x33   :  { %4048 = vmatpush3.xpose.msk.msra.mxu0 %vm7845_vm0, %v94_v13  ;;  %v88_v13 = vld [vmem:[%s7725_s0 + $0x1e8] sm:$0xff] }
  0x34   :  { %4049 = vmatprep.subr.msk.mxu0 %vm7845_vm0, %v93_v14 }
  0x37   :  { %4050 = vmatpush3.xpose.msk.msra.mxu0 %vm7845_vm0, %v93_v14  ;;  %v89_v14 = vld [vmem:[%s7725_s0 + $0x1f0] sm:$0xff] }
  0x38   :  { %4051 = vmatprep.subr.msk.mxu0 %vm7845_vm0, %v92_v15 }
  0x3b   :  { %4052 = vmatpush3.xpose.msk.msra.mxu0 %vm7845_vm0, %v92_v15  ;;  %v90_v15 = vld [vmem:[%s7725_s0 + $0x1f8] sm:$0xff] }
  0x3c   :  { %4053 = vmatprep.subr.msk.mxu0 %vm7845_vm0, %v91_v16 }
  0x3f   :  { %4054 = vmatpush3.xpose.msk.msra.mxu0 %vm7845_vm0, %v91_v16 }
  0x42   :  { %4056 = vmatmul.mubr.msk.f32.vlgmr.msra.gmra.mxu0 %vm7845_vm0, %v28_v17  ;;  %v4803_v17 = vld [vmem:[%s7727_s2] ss:$0 sm:$0xff] }
  0x43   :  { %4058 = vmatprep.mubr.msk.f32.mxu0 %vm7845_vm0, %v29_v18 }
  0x46   :  { %4059 = vmatmul.mubr.msk.f32.gmra.mxu0 %vm7845_vm0, %v30_v19 }
  0x47   :  { %4061 = vmatprep.mubr.msk.f32.mxu0 %vm7845_vm0, %v31_v20 }
  0x4a   :  { %4062 = vmatmul.mubr.msk.f32.gmra.mxu0 %vm7845_vm0, %v32_v21 }
  0x4b   :  { %4064 = vmatprep.mubr.msk.f32.mxu0 %vm7845_vm0, %v33_v22 }
  0x4e   :  { %4065 = vmatmul.mubr.msk.f32.gmra.mxu0 %vm7845_vm0, %v34_v23 }
  0x4f   :  { %4067 = vmatprep.mubr.msk.f32.mxu0 %vm7845_vm0, %v35_v24 }
  0x52   :  { %4068 = vmatmul.mubr.msk.f32.gmra.mxu0 %vm7845_vm0, %v36_v25 }
  0x53   :  { %4070 = vmatprep.mubr.msk.f32.mxu0 %vm7845_vm0, %v37_v26 }
  0x56   :  { %4071 = vmatmul.mubr.msk.f32.gmra.mxu0 %vm7845_vm0, %v38_v27 }
  0x57   :  { %4073 = vmatprep.mubr.msk.f32.mxu0 %vm7845_vm0, %v39_v28 }
  0x5a   :  { %4074 = vmatmul.mubr.msk.f32.gmra.mxu0 %vm7845_vm0, %v40_v29 }
  0x5b   :  { %4076 = vmatprep.mubr.msk.f32.mxu0 %vm7845_vm0, %v41_v30 }
  0x5e   :  { %4077 = vmatmul.mubr.msk.f32.gmra.mxu0 %vm7845_vm0, %v42_v31 }
  0x5f   :  { %4079 = vmatprep.mubr.msk.f32.mxu0 %vm7845_vm0, %v43_v32 }
  0x62   :  { %4080 = vmatmul.mubr.msk.f32.gmra.mxu0 %vm7845_vm0, %v44_v33 }
  0x63   :  { %4082 = vmatprep.mubr.msk.f32.mxu0 %vm7845_vm0, %v45_v34 }
  0x66   :  { %4083 = vmatmul.mubr.msk.f32.gmra.mxu0 %vm7845_vm0, %v46_v35 }
  0x67   :  { %4085 = vmatprep.mubr.msk.f32.mxu0 %vm7845_vm0, %v47_v36 }
  0x6a   :  { %4086 = vmatmul.mubr.msk.f32.gmra.mxu0 %vm7845_vm0, %v48_v37 }
  0x6b   :  { %4088 = vmatprep.mubr.msk.f32.mxu0 %vm7845_vm0, %v49_v38 }
  0x6e   :  { %4089 = vmatmul.mubr.msk.f32.gmra.mxu0 %vm7845_vm0, %v50_v39 }
  0x6f   :  { %4091 = vmatprep.mubr.msk.f32.mxu0 %vm7845_vm0, %v51_v40 }
  0x72   :  { %4092 = vmatmul.mubr.msk.f32.gmra.mxu0 %vm7845_vm0, %v52_v41 }
  0x73   :  { %4094 = vmatprep.mubr.msk.f32.mxu0 %vm7845_vm0, %v53_v42 }
  0x76   :  { %4095 = vmatmul.mubr.msk.f32.gmra.mxu0 %vm7845_vm0, %v54_v43 }
  0x77   :  { %4097 = vmatprep.mubr.msk.f32.mxu0 %vm7845_vm0, %v55_v44 }
  0x7a   :  { %4098 = vmatmul.mubr.msk.f32.gmra.mxu0 %vm7845_vm0, %v56_v45 }
  0x7b   :  { %4100 = vmatprep.mubr.msk.f32.mxu0 %vm7845_vm0, %v57_v46 }
  0x7e   :  { %4101 = vmatmul.mubr.msk.f32.gmra.mxu0 %vm7845_vm0, %v58_v47 }
  0x7f   :  { %4103 = vmatprep.mubr.msk.f32.mxu0 %vm7845_vm0, %v59_v48 }
  0x82   :  { %4104 = vmatmul.mubr.msk.f32.gmra.mxu0 %vm7845_vm0, %v60_v49 }
  0x83   :  { %4106 = vmatprep.mubr.msk.f32.mxu0 %vm7845_vm0, %v61_v50 }
  0x86   :  { %4107 = vmatmul.mubr.msk.f32.gmra.mxu0 %vm7845_vm0, %v62_v51 }
  0x87   :  { %4109 = vmatprep.mubr.msk.f32.mxu0 %vm7845_vm0, %v63_v52 }
  0x8a   :  { %4110 = vmatmul.mubr.msk.f32.gmra.mxu0 %vm7845_vm0, %v64_v53 }
  0x8b   :  { %4112 = vmatprep.mubr.msk.f32.mxu0 %vm7845_vm0, %v65_v54 }
  0x8e   :  { %4113 = vmatmul.mubr.msk.f32.gmra.mxu0 %vm7845_vm0, %v66_v55 }
  0x8f   :  { %4115 = vmatprep.mubr.msk.f32.mxu0 %vm7845_vm0, %v67_v56 }
  0x92   :  { %4116 = vmatmul.mubr.msk.f32.gmra.mxu0 %vm7845_vm0, %v68_v57 }
  0x93   :  { %4118 = vmatprep.mubr.msk.f32.mxu0 %vm7845_vm0, %v69_v58 }
  0x96   :  { %4119 = vmatmul.mubr.msk.f32.gmra.mxu0 %vm7845_vm0, %v70_v59 }
  0x97   :  { %4121 = vmatprep.mubr.msk.f32.mxu0 %vm7845_vm0, %v71_v60 }
  0x9a   :  { %4122 = vmatmul.mubr.msk.f32.gmra.mxu0 %vm7845_vm0, %v72_v61 }
  0x9b   :  { %4124 = vmatprep.mubr.msk.f32.mxu0 %vm7845_vm0, %v73_v62 }
  0x9e   :  { %4125 = vmatmul.mubr.msk.f32.gmra.mxu0 %vm7845_vm0, %v74_v63 }
  0x9f   :  { %4127 = vmatprep.mubr.msk.f32.mxu0 %vm7845_vm0, %v75_v0 }
  0xa2   :  { %4128 = vmatmul.mubr.msk.f32.gmra.mxu0 %vm7845_vm0, %v76_v1 }
  0xa3   :  { %4130 = vmatprep.mubr.msk.f32.mxu0 %vm7845_vm0, %v77_v2 }
  0xa6   :  { %4131 = vmatmul.mubr.msk.f32.gmra.mxu0 %vm7845_vm0, %v78_v3 }
  0xa7   :  { %4133 = vmatprep.mubr.msk.f32.mxu0 %vm7845_vm0, %v79_v4 }
  0xaa   :  { %4134 = vmatmul.mubr.msk.f32.gmra.mxu0 %vm7845_vm0, %v80_v5 }
  0xab   :  { %4136 = vmatprep.mubr.msk.f32.mxu0 %vm7845_vm0, %v81_v6 }
  0xae   :  { %4137 = vmatmul.mubr.msk.f32.gmra.mxu0 %vm7845_vm0, %v82_v7 }
  0xaf   :  { %4139 = vmatprep.mubr.msk.f32.mxu0 %vm7845_vm0, %v83_v8 }
  0xb2   :  { %4140 = vmatmul.mubr.msk.f32.gmra.mxu0 %vm7845_vm0, %v84_v9 }
  0xb3   :  { %4142 = vmatprep.mubr.msk.f32.mxu0 %vm7845_vm0, %v85_v10 }
  0xb6   :  { %4143 = vmatmul.mubr.msk.f32.gmra.mxu0 %vm7845_vm0, %v86_v11 }
  0xb7   :  { %4145 = vmatprep.mubr.msk.f32.mxu0 %vm7845_vm0, %v87_v12 }
  0xba   :  { %4146 = vmatmul.mubr.msk.f32.gmra.mxu0 %vm7845_vm0, %v88_v13 }
  0xbb   :  { %4148 = vmatprep.mubr.msk.f32.mxu0 %vm7845_vm0, %v89_v14 }
  0xbe   :  { %4149 = vmatmul.mubr.msk.f32.gmra.mxu0 %vm7845_vm0, %v90_v15 }
 0x102   :  { %v4057_v16 = vpop.f32.mrf.mxu0 }
 0x103   :  { %v735_v18 = vmul.f32 2.0, %v4057_v16 }
 0x104   :  { %v415_v19 = vpop.f32.mrf.mxu0 }
 0x105   :  { %v734_v20 = vmul.f32 2.0, %v415_v19  ;;  %v4806_v21 = vsub.f32 %v4803_v17, %v735_v18 }
 0x106   :  { %v4060_v22 = vpop.f32.mrf.mxu0 }
 0x107   :  { %v737_v23 = vmul.f32 2.0, %v4060_v22  ;;  %870 = vmin.xlane.f32.xlu0 %v4806_v21  ;;  %v4810_v26 = vsub.f32 %v4803_v17, %v734_v20 }
 0x108   :  { %v425_v24 = vpop.f32.mrf.mxu0 }
 0x109   :  { %v736_v25 = vmul.f32 2.0, %v425_v24  ;;  %v4813_v27 = vsub.f32 %v4803_v17, %v737_v23 }
 0x10a   :  { %v4063_v28 = vpop.f32.mrf.mxu0 }
 0x10b   :  { %v739_v29 = vmul.f32 2.0, %v4063_v28  ;;  %868 = vmin.xlane.f32.xlu0 %v4810_v26  ;;  %874 = vmin.xlane.f32.xlu1 %v4813_v27  ;;  %v4818_v30 = vsub.f32 %v4803_v17, %v736_v25 }
 0x10c   :  { %v435_v31 = vpop.f32.mrf.mxu0 }
 0x10d   :  { %v738_v32 = vmul.f32 2.0, %v435_v31  ;;  %v4825_v36 = vsub.f32 %v4803_v17, %v739_v29 }
 0x10e   :  { %v4066_v33 = vpop.f32.mrf.mxu0 }
 0x10f   :  { %v741_v34 = vmul.f32 2.0, %v4066_v33  ;;  %872 = vmin.xlane.f32.xlu1 %v4818_v30  ;;  %v4822_v35 = vsub.f32 %v4803_v17, %v738_v32 }
 0x110   :  { %v445_v37 = vpop.f32.mrf.mxu0 }
 0x111   :  { %v740_v38 = vmul.f32 2.0, %v445_v37  ;;  %876 = vmin.xlane.f32.xlu0 %v4822_v35  ;;  %v4833_v42 = vsub.f32 %v4803_v17, %v741_v34 }
 0x112   :  { %v4069_v39 = vpop.f32.mrf.mxu0 }
 0x113   :  { %v743_v40 = vmul.f32 2.0, %v4069_v39  ;;  %878 = vmin.xlane.f32.xlu1 %v4825_v36  ;;  %v4830_v41 = vsub.f32 %v4803_v17, %v740_v38 }
 0x114   :  { %v455_v43 = vpop.f32.mrf.mxu0 }
 0x115   :  { %v742_v44 = vmul.f32 2.0, %v455_v43  ;;  %880 = vmin.xlane.f32.xlu0 %v4830_v41  ;;  %v4841_v48 = vsub.f32 %v4803_v17, %v743_v40 }
 0x116   :  { %v4072_v45 = vpop.f32.mrf.mxu0 }
 0x117   :  { %v745_v46 = vmul.f32 2.0, %v4072_v45  ;;  %882 = vmin.xlane.f32.xlu1 %v4833_v42  ;;  %v4838_v47 = vsub.f32 %v4803_v17, %v742_v44 }
 0x118   :  { %v465_v49 = vpop.f32.mrf.mxu0 }
 0x119   :  { %v744_v50 = vmul.f32 2.0, %v465_v49  ;;  %884 = vmin.xlane.f32.xlu0 %v4838_v47  ;;  %v4849_v54 = vsub.f32 %v4803_v17, %v745_v46 }
 0x11a   :  { %v4075_v51 = vpop.f32.mrf.mxu0 }
 0x11b   :  { %v747_v52 = vmul.f32 2.0, %v4075_v51  ;;  %886 = vmin.xlane.f32.xlu1 %v4841_v48  ;;  %v4846_v53 = vsub.f32 %v4803_v17, %v744_v50 }
 0x11c   :  { %v475_v55 = vpop.f32.mrf.mxu0 }
 0x11d   :  { %v746_v56 = vmul.f32 2.0, %v475_v55  ;;  %888 = vmin.xlane.f32.xlu0 %v4846_v53  ;;  %v4857_v60 = vsub.f32 %v4803_v17, %v747_v52 }
 0x11e   :  { %v4078_v57 = vpop.f32.mrf.mxu0 }
 0x11f   :  { %v749_v58 = vmul.f32 2.0, %v4078_v57  ;;  %890 = vmin.xlane.f32.xlu1 %v4849_v54  ;;  %v4854_v59 = vsub.f32 %v4803_v17, %v746_v56 }
 0x120   :  { %v485_v61 = vpop.f32.mrf.mxu0 }
 0x121   :  { %v748_v62 = vmul.f32 2.0, %v485_v61  ;;  %892 = vmin.xlane.f32.xlu0 %v4854_v59  ;;  %v4865_v2 = vsub.f32 %v4803_v17, %v749_v58 }
 0x122   :  { %v4081_v63 = vpop.f32.mrf.mxu0 }
 0x123   :  { %v751_v0 = vmul.f32 2.0, %v4081_v63  ;;  %894 = vmin.xlane.f32.xlu1 %v4857_v60  ;;  %v4862_v1 = vsub.f32 %v4803_v17, %v748_v62 }
 0x124   :  { %v495_v3 = vpop.f32.mrf.mxu0 }
 0x125   :  { %v750_v4 = vmul.f32 2.0, %v495_v3  ;;  %896 = vmin.xlane.f32.xlu0 %v4862_v1  ;;  %v4873_v8 = vsub.f32 %v4803_v17, %v751_v0 }
 0x126   :  { %v4084_v5 = vpop.f32.mrf.mxu0 }
 0x127   :  { %v753_v6 = vmul.f32 2.0, %v4084_v5  ;;  %898 = vmin.xlane.f32.xlu1 %v4865_v2  ;;  %v4870_v7 = vsub.f32 %v4803_v17, %v750_v4 }
 0x128   :  { %v505_v9 = vpop.f32.mrf.mxu0 }
 0x129   :  { %v752_v10 = vmul.f32 2.0, %v505_v9  ;;  %900 = vmin.xlane.f32.xlu0 %v4870_v7  ;;  %v4881_v14 = vsub.f32 %v4803_v17, %v753_v6 }
 0x12a   :  { %v4087_v11 = vpop.f32.mrf.mxu0 }
 0x12b   :  { %v755_v12 = vmul.f32 2.0, %v4087_v11  ;;  %902 = vmin.xlane.f32.xlu1 %v4873_v8  ;;  %v4878_v13 = vsub.f32 %v4803_v17, %v752_v10 }
 0x12c   :  { %v515_v15 = vpop.f32.mrf.mxu0 }
 0x12d   :  { %v754_v16 = vmul.f32 2.0, %v515_v15  ;;  %904 = vmin.xlane.f32.xlu0 %v4878_v13  ;;  %v4889_v22 = vsub.f32 %v4803_v17, %v755_v12 }
 0x12e   :  { %v4090_v18 = vpop.f32.mrf.mxu0 }
 0x12f   :  { %v757_v19 = vmul.f32 2.0, %v4090_v18  ;;  %906 = vmin.xlane.f32.xlu1 %v4881_v14  ;;  %v4886_v20 = vsub.f32 %v4803_v17, %v754_v16 }
 0x130   :  { %v525_v23 = vpop.f32.mrf.mxu0 }
 0x131   :  { %v756_v24 = vmul.f32 2.0, %v525_v23  ;;  %908 = vmin.xlane.f32.xlu0 %v4886_v20  ;;  %v4897_v31 = vsub.f32 %v4803_v17, %v757_v19 }
 0x132   :  { %v4093_v25 = vpop.f32.mrf.mxu0 }
 0x133   :  { %v759_v28 = vmul.f32 2.0, %v4093_v25  ;;  %910 = vmin.xlane.f32.xlu1 %v4889_v22  ;;  %v4894_v29 = vsub.f32 %v4803_v17, %v756_v24 }
 0x134   :  { %v535_v32 = vpop.f32.mrf.mxu0 }
 0x135   :  { %v758_v33 = vmul.f32 2.0, %v535_v32  ;;  %912 = vmin.xlane.f32.xlu0 %v4894_v29  ;;  %v4905_v39 = vsub.f32 %v4803_v17, %v759_v28 }
 0x136   :  { %v4096_v34 = vpop.f32.mrf.mxu0 }
 0x137   :  { %v761_v37 = vmul.f32 2.0, %v4096_v34  ;;  %914 = vmin.xlane.f32.xlu1 %v4897_v31  ;;  %v4902_v38 = vsub.f32 %v4803_v17, %v758_v33 }
 0x138   :  { %v545_v40 = vpop.f32.mrf.mxu0 }
 0x139   :  { %v760_v43 = vmul.f32 2.0, %v545_v40  ;;  %916 = vmin.xlane.f32.xlu0 %v4902_v38  ;;  %v4913_v49 = vsub.f32 %v4803_v17, %v761_v37 }
 0x13a   :  { %v4099_v44 = vpop.f32.mrf.mxu0 }
 0x13b   :  { %v763_v45 = vmul.f32 2.0, %v4099_v44  ;;  %918 = vmin.xlane.f32.xlu1 %v4905_v39  ;;  %v4910_v46 = vsub.f32 %v4803_v17, %v760_v43 }
 0x13c   :  { %v555_v50 = vpop.f32.mrf.mxu0 }
 0x13d   :  { %v762_v51 = vmul.f32 2.0, %v555_v50  ;;  %920 = vmin.xlane.f32.xlu0 %v4910_v46  ;;  %v4921_v57 = vsub.f32 %v4803_v17, %v763_v45 }
 0x13e   :  { %v4102_v52 = vpop.f32.mrf.mxu0 }
 0x13f   :  { %v765_v55 = vmul.f32 2.0, %v4102_v52  ;;  %922 = vmin.xlane.f32.xlu1 %v4913_v49  ;;  %v4918_v56 = vsub.f32 %v4803_v17, %v762_v51 }
 0x140   :  { %v565_v58 = vpop.f32.mrf.mxu0 }
 0x141   :  { %v764_v61 = vmul.f32 2.0, %v565_v58  ;;  %924 = vmin.xlane.f32.xlu0 %v4918_v56  ;;  %v4929_v3 = vsub.f32 %v4803_v17, %v765_v55 }
 0x142   :  { %v4105_v62 = vpop.f32.mrf.mxu0 }
 0x143   :  { %v767_v63 = vmul.f32 2.0, %v4105_v62  ;;  %926 = vmin.xlane.f32.xlu1 %v4921_v57  ;;  %v4926_v0 = vsub.f32 %v4803_v17, %v764_v61 }
 0x144   :  { %v575_v4 = vpop.f32.mrf.mxu0 }
 0x145   :  { %v766_v5 = vmul.f32 2.0, %v575_v4  ;;  %928 = vmin.xlane.f32.xlu0 %v4926_v0  ;;  %v4937_v11 = vsub.f32 %v4803_v17, %v767_v63 }
 0x146   :  { %v4108_v6 = vpop.f32.mrf.mxu0 }
 0x147   :  { %v769_v9 = vmul.f32 2.0, %v4108_v6  ;;  %930 = vmin.xlane.f32.xlu1 %v4929_v3  ;;  %v4934_v10 = vsub.f32 %v4803_v17, %v766_v5 }
 0x148   :  { %v585_v12 = vpop.f32.mrf.mxu0 }
 0x149   :  { %v768_v15 = vmul.f32 2.0, %v585_v12  ;;  %932 = vmin.xlane.f32.xlu0 %v4934_v10  ;;  %v4945_v23 = vsub.f32 %v4803_v17, %v769_v9 }
 0x14a   :  { %v4111_v16 = vpop.f32.mrf.mxu0 }
 0x14b   :  { %v771_v18 = vmul.f32 2.0, %v4111_v16  ;;  %934 = vmin.xlane.f32.xlu1 %v4937_v11  ;;  %v4942_v19 = vsub.f32 %v4803_v17, %v768_v15 }
 0x14c   :  { %v595_v24 = vpop.f32.mrf.mxu0 }
 0x14d   :  { %v770_v25 = vmul.f32 2.0, %v595_v24  ;;  %936 = vmin.xlane.f32.xlu0 %v4942_v19  ;;  %v4953_v34 = vsub.f32 %v4803_v17, %v771_v18 }
 0x14e   :  { %v4114_v28 = vpop.f32.mrf.mxu0 }
 0x14f   :  { %938 = vmin.xlane.f32.xlu1 %v4945_v23  ;;  %v773_v32 = vmul.f32 2.0, %v4114_v28  ;;  %v4950_v33 = vsub.f32 %v4803_v17, %v770_v25 }
 0x150   :  { %v605_v37 = vpop.f32.mrf.mxu0 }
 0x151   :  { %940 = vmin.xlane.f32.xlu0 %v4950_v33  ;;  %v772_v40 = vmul.f32 2.0, %v605_v37  ;;  %v4957_v43 = vsub.f32 %v4803_v17, %v773_v32 }
 0x152   :  { %v4117_v44 = vpop.f32.mrf.mxu0 }
 0x153   :  { %942 = vmin.xlane.f32.xlu1 %v4953_v34  ;;  %v775_v45 = vmul.f32 2.0, %v4117_v44  ;;  %v4962_v50 = vsub.f32 %v4803_v17, %v772_v40 }
 0x154   :  { %v615_v51 = vpop.f32.mrf.mxu0 }
 0x155   :  { %946 = vmin.xlane.f32.xlu0 %v4957_v43  ;;  %v774_v52 = vmul.f32 2.0, %v615_v51  ;;  %v4966_v55 = vsub.f32 %v4803_v17, %v775_v45 }
 0x156   :  { %v4120_v58 = vpop.f32.mrf.mxu0 }
 0x157   :  { %v777_v61 = vmul.f32 2.0, %v4120_v58  ;;  %v4970_v62 = vsub.f32 %v4803_v17, %v774_v52 }
 0x158   :  { %v625_v63 = vpop.f32.mrf.mxu0 }
 0x159   :  { %944 = vmin.xlane.f32.xlu0 %v4962_v50  ;;  %v776_v4 = vmul.f32 2.0, %v625_v63  ;;  %v4974_v5 = vsub.f32 %v4803_v17, %v777_v61 }
 0x15a   :  { %v4123_v6 = vpop.f32.mrf.mxu0 }
 0x15b   :  { %v779_v9 = vmul.f32 2.0, %v4123_v6  ;;  %v4978_v12 = vsub.f32 %v4803_v17, %v776_v4 }
 0x15c   :  { %v635_v15 = vpop.f32.mrf.mxu0 }
 0x15d   :  { %950 = vmin.xlane.f32.xlu0 %v4966_v55  ;;  %v778_v16 = vmul.f32 2.0, %v635_v15  ;;  %v4982_v18 = vsub.f32 %v4803_v17, %v779_v9 }
 0x15e   :  { %v4126_v24 = vpop.f32.mrf.mxu0 }
 0x15f   :  { %v781_v25 = vmul.f32 2.0, %v4126_v24  ;;  %v4986_v28 = vsub.f32 %v4803_v17, %v778_v16 }
 0x160   :  { %v645_v32 = vpop.f32.mrf.mxu0 }
 0x161   :  { %948 = vmin.xlane.f32.xlu0 %v4970_v62  ;;  %7939 = vst [vmem:[#allocation11_spill] sm:$0xff] %v4986_v28  ;;  %v780_v37 = vmul.f32 2.0, %v645_v32  ;;  %v4990_v40 = vsub.f32 %v4803_v17, %v781_v25 }
 0x162   :  { %v4129_v44 = vpop.f32.mrf.mxu0 }
 0x163   :  { %7940 = vst [vmem:[#allocation12_spill] sm:$0xff] %v4990_v40  ;;  %v783_v45 = vmul.f32 2.0, %v4129_v44  ;;  %v4994_v51 = vsub.f32 %v4803_v17, %v780_v37 }
 0x164   :  { %v655_v52 = vpop.f32.mrf.mxu0 }
 0x165   :  { %954 = vmin.xlane.f32.xlu0 %v4974_v5  ;;  %7941 = vst [vmem:[#allocation13_spill] sm:$0xff] %v4994_v51  ;;  %v782_v58 = vmul.f32 2.0, %v655_v52  ;;  %v4998_v61 = vsub.f32 %v4803_v17, %v783_v45  ;;  %v7735_v52 = vlaneseq }
 0x166   :  { %v4132_v63 = vpop.f32.mrf.mxu0 }
 0x167   :  { %7942 = vst [vmem:[#allocation14_spill] sm:$0xff] %v4998_v61  ;;  %v785_v4 = vmul.f32 2.0, %v4132_v63  ;;  %v5002_v6 = vsub.f32 %v4803_v17, %v782_v58 }
 0x168   :  { %v665_v9 = vpop.f32.mrf.mxu0 }
 0x169   :  { %952 = vmin.xlane.f32.xlu0 %v4978_v12  ;;  %7943 = vst [vmem:[#allocation15_spill] sm:$0xff] %v5002_v6  ;;  %v784_v15 = vmul.f32 2.0, %v665_v9  ;;  %v5006_v16 = vsub.f32 %v4803_v17, %v785_v4  ;;  %v5021_v9 = vand.u32 127, %v7735_v52 }
 0x16a   :  { %v4135_v24 = vpop.f32.mrf.mxu0 }
 0x16b   :  { %7944 = vst [vmem:[#allocation16_spill] sm:$0xff] %v5006_v16  ;;  %v787_v25 = vmul.f32 2.0, %v4135_v24  ;;  %v5010_v32 = vsub.f32 %v4803_v17, %v784_v15 }
 0x16c   :  { %v675_v37 = vpop.f32.mrf.mxu0 }
 0x16d   :  { %958 = vmin.xlane.f32.xlu0 %v4982_v18  ;;  %7945 = vst [vmem:[#allocation17_spill] sm:$0xff] %v5010_v32  ;;  %v786_v44 = vmul.f32 2.0, %v675_v37  ;;  %v5014_v45 = vsub.f32 %v4803_v17, %v787_v25 }
 0x16e   :  { %v4138_v58 = vpop.f32.mrf.mxu0 }
 0x16f   :  { %7946 = vst [vmem:[#allocation18_spill] sm:$0xff] %v5014_v45  ;;  %v789_v63 = vmul.f32 2.0, %v4138_v58  ;;  %v5018_v4 = vsub.f32 %v4803_v17, %v786_v44 }
 0x170   :  { %v685_v15 = vpop.f32.mrf.mxu0 }
 0x171   :  { %956 = vmin.xlane.f32.xlu0 %v4986_v28  ;;  %7947 = vst [vmem:[#allocation19_spill] sm:$0xff] %v5018_v4  ;;  %v788_v37 = vmul.f32 2.0, %v685_v15  ;;  %v5026_v25 = vsub.f32 %v4803_v17, %v789_v63 }
 0x173   :  { %7948 = vst [vmem:[#allocation20_spill] sm:$0xff] %v5026_v25  ;;  %v5038_v63 = vsub.f32 %v4803_v17, %v788_v37 }
 0x175   :  { %962 = vmin.xlane.f32.xlu0 %v4990_v40  ;;  %7949 = vst [vmem:[#allocation21_spill] sm:$0xff] %v5038_v63 }
 0x179   :  { %960 = vmin.xlane.f32.xlu0 %v4994_v51 }
 0x17d   :  { %966 = vmin.xlane.f32.xlu0 %v4998_v61 }
 0x181   :  { %964 = vmin.xlane.f32.xlu0 %v5002_v6 }
 0x185   :  { %970 = vmin.xlane.f32.xlu0 %v5006_v16 }
 0x189   :  { %968 = vmin.xlane.f32.xlu0 %v5010_v32  ;;  %v4141_v32 = vpop.f32.mrf.mxu0 }
 0x18a   :  { %v791_v52 = vmul.f32 2.0, %v4141_v32 }
 0x18b   :  { %v695_v15 = vpop.f32.mrf.mxu0 }
 0x18c   :  { %v5053_v37 = vsub.f32 %v4803_v17, %v791_v52 }
 0x18d   :  { %974 = vmin.xlane.f32.xlu0 %v5014_v45 }
 0x18e   :  { %7950 = vst [vmem:[#allocation22_spill] sm:$0xff] %v5053_v37 }
 0x190   :  { %v871_v24 = vpop.xlane.xlu0 %870 }
 0x191   :  { %vm999_vm1 = vcmp.eq.f32.partialorder %v4806_v21, %v871_v24  ;;  %972 = vmin.xlane.f32.xlu0 %v5018_v4 }
 0x192   :  { %v5029_v45 = vsel %vm999_vm1, %v5021_v9, 128 }
 0x193   :  { %v1141_v44 = vshra.s32 %v5029_v45, 16 }
 0x194   :  { %v869_v58 = vpop.xlane.xlu0 %868  ;;  %v875_v16 = vpop.xlane.xlu1 %874 }
 0x195   :  { %vm998_vm2 = vcmp.eq.f32.partialorder %v4810_v26, %v869_v58  ;;  %vm1001_vm3 = vcmp.eq.f32.partialorder %v4813_v27, %v875_v16  ;;  %978 = vmin.xlane.f32.xlu0 %v5026_v25  ;;  %v5035_v21 = vcvt.s32.f32 %v1141_v44  ;;  %v790_v27 = vmul.f32 2.0, %v695_v15  ;;  %v4144_v58 = vpop.f32.mrf.mxu0 }
 0x196   :  { %v5041_v24 = vsel %vm998_vm2, %v5021_v9, 128  ;;  %v5044_v4 = vsel %vm1001_vm3, %v5021_v9, 128  ;;  %v793_v15 = vmul.f32 2.0, %v4144_v58 }
 0x197   :  { %1144 = vmin.xlane.f32.xlu1 %v5035_v21  ;;  %v1127_v26 = vshra.s32 %v5041_v24, 16  ;;  %v1169_v44 = vshra.s32 %v5044_v4, 16  ;;  %v5065_v52 = vsub.f32 %v4803_v17, %v790_v27  ;;  %v705_v51 = vpop.f32.mrf.mxu0 }
 0x198   :  { %v873_v32 = vpop.xlane.xlu1 %872  ;;  %v5077_v27 = vsub.f32 %v4803_v17, %v793_v15 }
 0x199   :  { %vm1000_vm4 = vcmp.eq.f32.partialorder %v4818_v30, %v873_v32  ;;  %976 = vmin.xlane.f32.xlu0 %v5038_v63  ;;  %v5050_v16 = vcvt.s32.f32 %v1127_v26  ;;  %v5062_v30 = vcvt.s32.f32 %v1169_v44  ;;  %7951 = vst [vmem:[#allocation23_spill] sm:$0xff] %v5065_v52  ;;  %v4147_v28 = vpop.f32.mrf.mxu0 }
 0x19a   :  { %v5057_v25 = vsel %vm1000_vm4, %v5021_v9, 128  ;;  %v877_v6 = vpop.xlane.xlu0 %876  ;;  %7954 = vst [vmem:[#allocation26_spill] sm:$0xff] %v5077_v27 }
 0x19b   :  { %1130 = vmin.xlane.f32.xlu1 %v5050_v16  ;;  %v1155_v26 = vshra.s32 %v5057_v25, 16  ;;  %vm1002_vm6 = vcmp.eq.f32.partialorder %v4822_v35, %v877_v6  ;;  %v795_v6 = vmul.f32 2.0, %v4147_v28 }
 0x19c   :  { %v879_v61 = vpop.xlane.xlu1 %878 }
 0x19d   :  { %vm1003_vm5 = vcmp.eq.f32.partialorder %v4825_v36, %v879_v61  ;;  %982 = vmin.xlane.f32.xlu0 %v5053_v37  ;;  %v5074_v36 = vcvt.s32.f32 %v1155_v26  ;;  %v792_v61 = vmul.f32 2.0, %v705_v51  ;;  %v5081_v37 = vsel %vm1002_vm6, %v5021_v9, 128 }
 0x19e   :  { %v5069_v32 = vsel %vm1003_vm5, %v5021_v9, 128  ;;  %v881_v63 = vpop.xlane.xlu0 %880  ;;  %7955 = vst [vmem:[#allocation27_spill] sm:$0xff] %v5081_v37  ;;  %v1183_v15 = vshra.s32 %v5081_v37, 16 }
 0x19f   :  { %7952 = vst [vmem:[#allocation24_spill] sm:$0xff] %v5069_v32  ;;  %1172 = vmin.xlane.f32.xlu1 %v5062_v30  ;;  %7953 = vst [vmem:[#allocation25_spill] sm:$0xff] %v5074_v36  ;;  %v1197_v44 = vshra.s32 %v5069_v32, 16  ;;  %v5089_v51 = vsub.f32 %v4803_v17, %v792_v61  ;;  %v715_v32 = vpop.f32.mrf.mxu0  ;;  %vm1004_vm8 = vcmp.eq.f32.partialorder %v4830_v41, %v881_v63 }
 0x1a0   :  { %v883_v58 = vpop.xlane.xlu1 %882  ;;  %v794_v28 = vmul.f32 2.0, %v715_v32  ;;  %v5101_v61 = vsub.f32 %v4803_v17, %v795_v6 }
 0x1a1   :  { %980 = vmin.xlane.f32.xlu0 %v5065_v52  ;;  %vm1005_vm7 = vcmp.eq.f32.partialorder %v4833_v42, %v883_v58  ;;  %v5086_v35 = vcvt.s32.f32 %v1197_v44  ;;  %7956 = vst [vmem:[#allocation28_spill] sm:$0xff] %v5089_v51  ;;  %v5098_v58 = vcvt.s32.f32 %v1183_v15 }
 0x1a2   :  { %v885_v40 = vpop.xlane.xlu0 %884  ;;  %v5093_v26 = vsel %vm1005_vm7, %v5021_v9, 128  ;;  %7958 = vst [vmem:[#allocation30_spill] sm:$0xff] %v5101_v61  ;;  %v5113_v32 = vsub.f32 %v4803_v17, %v794_v28 }
 0x1a3   :  { %1158 = vmin.xlane.f32.xlu1 %v5074_v36  ;;  %7957 = vst [vmem:[#allocation29_spill] sm:$0xff] %v5093_v26  ;;  %v1225_v44 = vshra.s32 %v5093_v26, 16  ;;  %v4150_v36 = vpop.f32.mrf.mxu0  ;;  %vm1006_vm10 = vcmp.eq.f32.partialorder %v4838_v47, %v885_v40 }
 0x1a4   :  { %v887_v42 = vpop.xlane.xlu1 %886  ;;  %v797_v63 = vmul.f32 2.0, %v4150_v36  ;;  %7960 = vst [vmem:[#allocation32_spill] sm:$0xff] %v5113_v32 }
 0x1a5   :  { %986 = vmin.xlane.f32.xlu0 %v5077_v27  ;;  %v5105_v27 = vsel %vm1004_vm8, %v5021_v9, 128  ;;  %vm1007_vm9 = vcmp.eq.f32.partialorder %v4841_v48, %v887_v42  ;;  %v5110_v41 = vcvt.s32.f32 %v1225_v44  ;;  %v725_v26 = vpop.f32.mrf.mxu0 }
 0x1a6   :  { %v889_v52 = vpop.xlane.xlu0 %888  ;;  %7959 = vst [vmem:[#allocation31_spill] sm:$0xff] %v5105_v27  ;;  %v1211_v6 = vshra.s32 %v5105_v27, 16  ;;  %v5117_v15 = vsel %vm1007_vm9, %v5021_v9, 128  ;;  %v796_v36 = vmul.f32 2.0, %v725_v26  ;;  %v5125_v28 = vsub.f32 %v4803_v17, %v797_v63 }
 0x1a7   :  { %1200 = vmin.xlane.f32.xlu1 %v5086_v35  ;;  %v1253_v44 = vshra.s32 %v5117_v15, 16  ;;  %vm1008_vm12 = vcmp.eq.f32.partialorder %v4846_v53, %v889_v52 }
 0x1a8   :  { %v891_v48 = vpop.xlane.xlu1 %890  ;;  %v5122_v42 = vcvt.s32.f32 %v1211_v6  ;;  %7961 = vst [vmem:[#allocation33_spill] sm:$0xff] %v5125_v28  ;;  %v5139_v40 = vsub.f32 %v4803_v17, %v796_v36  ;;  %v5154_v17 = vsel %vm1008_vm12, %v5021_v9, 128 }
 0x1a9   :  { %984 = vmin.xlane.f32.xlu0 %v5089_v51  ;;  %vm1009_vm11 = vcmp.eq.f32.partialorder %v4849_v54, %v891_v48  ;;  %v5136_v47 = vcvt.s32.f32 %v1253_v44  ;;  %7963 = vst [vmem:[#allocation35_spill] sm:$0xff] %v5154_v17  ;;  %v1267_v53 = vshra.s32 %v5154_v17, 16 }
 0x1aa   :  { %v893_v37 = vpop.xlane.xlu0 %892  ;;  %7962 = vst [vmem:[#allocation34_spill] sm:$0xff] %v5139_v40  ;;  %v5143_v63 = vsel %vm1009_vm11, %v5021_v9, 128 }
 0x1ab   :  { %1186 = vmin.xlane.f32.xlu1 %v5098_v58  ;;  %v1281_v44 = vshra.s32 %v5143_v63, 16  ;;  %vm1010_vm14 = vcmp.eq.f32.partialorder %v4854_v59, %v893_v37 }
 0x1ac   :  { %v895_v54 = vpop.xlane.xlu1 %894 }
 0x1ad   :  { %990 = vmin.xlane.f32.xlu0 %v5101_v61  ;;  %v5129_v61 = vsel %vm1006_vm10, %v5021_v9, 128  ;;  %vm1011_vm13 = vcmp.eq.f32.partialorder %v4857_v60, %v895_v54  ;;  %v5174_v54 = vsel %vm1010_vm14, %v5021_v9, 128 }
 0x1ae   :  { %v897_v51 = vpop.xlane.xlu0 %896  ;;  %v1239_v26 = vshra.s32 %v5129_v61, 16  ;;  %v5164_v52 = vsel %vm1011_vm13, %v5021_v9, 128  ;;  %7967 = vst [vmem:[#allocation39_spill] sm:$0xff] %v5174_v54  ;;  %v1295_v59 = vshra.s32 %v5174_v54, 16 }
 0x1af   :  { %1228 = vmin.xlane.f32.xlu1 %v5110_v41  ;;  %7965 = vst [vmem:[#allocation37_spill] sm:$0xff] %v5164_v52  ;;  %v1309_v60 = vshra.s32 %v5164_v52, 16  ;;  %vm1012_vm1 = vcmp.eq.f32.partialorder %v4862_v1, %v897_v51 }
 0x1b0   :  { %v5150_v48 = vcvt.s32.f32 %v1239_v26  ;;  %v5197_v54 = vsel %vm1012_vm1, %v5021_v9, 128 }
 0x1b1   :  { %988 = vmin.xlane.f32.xlu0 %v5113_v32  ;;  %v5170_v32 = vcvt.s32.f32 %v1267_v53  ;;  %v5180_v17 = vcvt.s32.f32 %v1309_v60 }
 0x1b2   :  { %v5131_v27 = vpop.xlane.xlu0 %900 }
 0x1b3   :  { %1214 = vmin.xlane.f32.xlu1 %v5122_v42  ;;  %7966 = vst [vmem:[#allocation38_spill] sm:$0xff] %v5170_v32  ;;  %vm1014_vm5 = vcmp.eq.f32.partialorder %v4870_v7, %v5131_v27 }
 0x1b5   :  { %994 = vmin.xlane.f32.xlu0 %v5125_v28  ;;  %v5160_v28 = vcvt.s32.f32 %v1281_v44 }
 0x1b6   :  { %v5145_v6 = vpop.xlane.xlu0 %904 }
 0x1b7   :  { %1256 = vmin.xlane.f32.xlu1 %v5136_v47  ;;  %7964 = vst [vmem:[#allocation36_spill] sm:$0xff] %v5160_v28  ;;  %vm1016_vm9 = vcmp.eq.f32.partialorder %v4878_v13, %v5145_v6 }
 0x1b9   :  { %992 = vmin.xlane.f32.xlu0 %v5139_v40  ;;  %v899_v40 = vpop.xlane.xlu1 %898 }
 0x1ba   :  { %v5156_v36 = vpop.xlane.xlu0 %908  ;;  %vm1013_vm15 = vcmp.eq.f32.partialorder %v4865_v2, %v899_v40  ;;  %v5192_v2 = vcvt.s32.f32 %v1295_v59 }
 0x1bb   :  { %1242 = vmin.xlane.f32.xlu1 %v5150_v48  ;;  %v5184_v37 = vsel %vm1013_vm15, %v5021_v9, 128  ;;  %vm1018_vm12 = vcmp.eq.f32.partialorder %v4886_v20, %v5156_v36 }
 0x1bc   :  { %v1337_v60 = vshra.s32 %v5184_v37, 16 }
 0x1bd   :  { %v903_v52 = vpop.xlane.xlu1 %902 }
 0x1be   :  { %v5166_v26 = vpop.xlane.xlu0 %912  ;;  %vm1015_vm3 = vcmp.eq.f32.partialorder %v4873_v8, %v903_v52  ;;  %v5208_v51 = vcvt.s32.f32 %v1337_v60 }
 0x1bf   :  { %1284 = vmin.xlane.f32.xlu1 %v5160_v28  ;;  %vm1020_vm14 = vcmp.eq.f32.partialorder %v4894_v29, %v5166_v26 }
 0x1c1   :  { %v907_v8 = vpop.xlane.xlu1 %906 }
 0x1c2   :  { %v5176_v44 = vpop.xlane.xlu0 %916  ;;  %vm1017_vm7 = vcmp.eq.f32.partialorder %v4881_v14, %v907_v8 }
 0x1c3   :  { %1270 = vmin.xlane.f32.xlu1 %v5170_v32  ;;  %v5246_v14 = vsel %vm1017_vm7, %v5021_v9, 128  ;;  %vm1022_vm1 = vcmp.eq.f32.partialorder %v4902_v38, %v5176_v44 }
 0x1c5   :  { %v911_v27 = vpop.xlane.xlu1 %910 }
 0x1c6   :  { %v921_v53 = vpop.xlane.xlu0 %920  ;;  %vm1019_vm11 = vcmp.eq.f32.partialorder %v4889_v22, %v911_v27 }
 0x1c7   :  { %vm1024_vm2 = vcmp.eq.f32.partialorder %v4910_v46, %v921_v53  ;;  %1312 = vmin.xlane.f32.xlu1 %v5180_v17  ;;  %v1323_v53 = vshra.s32 %v5197_v54, 16 }
 0x1c8   :  { %v5190_v28 = vsel %vm1024_vm2, %v5021_v9, 128 }
 0x1c9   :  { %7968 = vst [vmem:[#allocation40_spill] sm:$0xff] %v5190_v28  ;;  %v1491_v40 = vshra.s32 %v5190_v28, 16  ;;  %v5213_v28 = vsel %vm1015_vm3, %v5021_v9, 128  ;;  %v915_v13 = vpop.xlane.xlu1 %914 }
 0x1ca   :  { %v925_v32 = vpop.xlane.xlu0 %924  ;;  %vm1021_vm13 = vcmp.eq.f32.partialorder %v4897_v31, %v915_v13  ;;  %v5308_v13 = vsel %vm1020_vm14, %v5021_v9, 128 }
 0x1cb   :  { %vm1026_vm4 = vcmp.eq.f32.partialorder %v4918_v56, %v925_v32  ;;  %1298 = vmin.xlane.f32.xlu1 %v5192_v2  ;;  %v5202_v1 = vcvt.s32.f32 %v1491_v40  ;;  %v5225_v40 = vcvt.s32.f32 %v1323_v53  ;;  %v5297_v36 = vsel %vm1021_vm13, %v5021_v9, 128  ;;  %7983 = vst [vmem:[#allocation55_spill] sm:$0xff] %v5308_v13 }
 0x1cc   :  { %v5205_v46 = vsel %vm1026_vm4, %v5021_v9, 128  ;;  %7981 = vst [vmem:[#allocation53_spill] sm:$0xff] %v5297_v36  ;;  %v1449_v31 = vshra.s32 %v5297_v36, 16  ;;  %v1435_v29 = vshra.s32 %v5308_v13, 16 }
 0x1cd   :  { %7969 = vst [vmem:[#allocation41_spill] sm:$0xff] %v5202_v1  ;;  %7970 = vst [vmem:[#allocation42_spill] sm:$0xff] %v5205_v46  ;;  %1494 = vmin.xlane.f32.xlu0 %v5202_v1  ;;  %v1519_v59 = vshra.s32 %v5205_v46, 16  ;;  %v1365_v46 = vshra.s32 %v5213_v28, 16  ;;  %v5230_v1 = vsel %vm1014_vm5, %v5021_v9, 128  ;;  %v919_v22 = vpop.xlane.xlu1 %918 }
 0x1ce   :  { %v929_v56 = vpop.xlane.xlu0 %928  ;;  %vm1023_vm15 = vcmp.eq.f32.partialorder %v4905_v39, %v919_v22  ;;  %v5325_v36 = vcvt.s32.f32 %v1435_v29  ;;  %v5329_v22 = vsel %vm1022_vm1, %v5021_v9, 128 }
 0x1cf   :  { %vm1028_vm6 = vcmp.eq.f32.partialorder %v4926_v0, %v929_v56  ;;  %1340 = vmin.xlane.f32.xlu1 %v5208_v51  ;;  %v5219_v32 = vcvt.s32.f32 %v1519_v59  ;;  %v5241_v53 = vcvt.s32.f32 %v1365_v46  ;;  %v5318_v26 = vsel %vm1023_vm15, %v5021_v9, 128 }
 0x1d0   :  { %v5222_v52 = vsel %vm1028_vm6, %v5021_v9, 128  ;;  %7984 = vst [vmem:[#allocation56_spill] sm:$0xff] %v5318_v26  ;;  %7985 = vst [vmem:[#allocation57_spill] sm:$0xff] %v5325_v36  ;;  %v1477_v39 = vshra.s32 %v5318_v26, 16  ;;  %v1463_v38 = vshra.s32 %v5329_v22, 16 }
 0x1d1   :  { %7971 = vst [vmem:[#allocation43_spill] sm:$0xff] %v5219_v32  ;;  %7972 = vst [vmem:[#allocation44_spill] sm:$0xff] %v5222_v52  ;;  %1522 = vmin.xlane.f32.xlu0 %v5219_v32  ;;  %v1547_v60 = vshra.s32 %v5222_v52, 16  ;;  %v1351_v52 = vshra.s32 %v5230_v1, 16 }
 0x1d2   :  { %v933_v7 = vpop.xlane.xlu0 %932  ;;  %v5343_v26 = vcvt.s32.f32 %v1463_v38 }
 0x1d3   :  { %vm1030_vm8 = vcmp.eq.f32.partialorder %v4934_v10, %v933_v7  ;;  %1326 = vmin.xlane.f32.xlu1 %v5225_v40  ;;  %v5235_v0 = vcvt.s32.f32 %v1547_v60  ;;  %v5259_v7 = vcvt.s32.f32 %v1351_v52 }
 0x1d4   :  { %v5238_v59 = vsel %vm1030_vm8, %v5021_v9, 128 }
 0x1d5   :  { %7973 = vst [vmem:[#allocation45_spill] sm:$0xff] %v5235_v0  ;;  %7974 = vst [vmem:[#allocation46_spill] sm:$0xff] %v5238_v59  ;;  %1550 = vmin.xlane.f32.xlu0 %v5235_v0  ;;  %v1575_v56 = vshra.s32 %v5238_v59, 16  ;;  %v1393_v59 = vshra.s32 %v5246_v14, 16  ;;  %v5263_v0 = vsel %vm1016_vm9, %v5021_v9, 128 }
 0x1d6   :  { %v937_v10 = vpop.xlane.xlu0 %936  ;;  %v1379_v52 = vshra.s32 %v5263_v0, 16 }
 0x1d7   :  { %vm1032_vm10 = vcmp.eq.f32.partialorder %v4942_v19, %v937_v10  ;;  %1368 = vmin.xlane.f32.xlu1 %v5241_v53  ;;  %v5252_v8 = vcvt.s32.f32 %v1575_v56  ;;  %v5272_v56 = vcvt.s32.f32 %v1393_v59  ;;  %v5276_v10 = vsel %vm1019_vm11, %v5021_v9, 128 }
 0x1d8   :  { %v5255_v46 = vsel %vm1032_vm10, %v5021_v9, 128  ;;  %7978 = vst [vmem:[#allocation50_spill] sm:$0xff] %v5276_v10  ;;  %v5283_v27 = vcvt.s32.f32 %v1379_v52  ;;  %v5287_v59 = vsel %vm1018_vm12, %v5021_v9, 128  ;;  %v923_v52 = vpop.xlane.xlu1 %922 }
 0x1d9   :  { %7975 = vst [vmem:[#allocation47_spill] sm:$0xff] %v5252_v8  ;;  %7976 = vst [vmem:[#allocation48_spill] sm:$0xff] %v5255_v46  ;;  %v1603_v60 = vshra.s32 %v5255_v46, 16  ;;  %1578 = vmin.xlane.f32.xlu0 %v5252_v8  ;;  %v1407_v20 = vshra.s32 %v5287_v59, 16  ;;  %vm1025_vm2 = vcmp.eq.f32.partialorder %v4913_v49, %v923_v52 }
 0x1da   :  { %v5265_v19 = vpop.xlane.xlu0 %940  ;;  %7979 = vst [vmem:[#allocation51_spill] sm:$0xff] %v5283_v27  ;;  %7980 = vst [vmem:[#allocation52_spill] sm:$0xff] %v5287_v59  ;;  %v5339_v44 = vsel %vm1025_vm2, %v5021_v9, 128 }
 0x1db   :  { %1354 = vmin.xlane.f32.xlu1 %v5259_v7  ;;  %v5269_v6 = vcvt.s32.f32 %v1603_v60  ;;  %v1421_v60 = vshra.s32 %v5276_v10, 16  ;;  %v5304_v10 = vcvt.s32.f32 %v1407_v20  ;;  %7987 = vst [vmem:[#allocation59_spill] sm:$0xff] %v5339_v44  ;;  %v1505_v49 = vshra.s32 %v5339_v44, 16 }
 0x1dc   :  { %v927_v59 = vpop.xlane.xlu1 %926  ;;  %vm1034_vm8 = vcmp.eq.f32.partialorder %v4950_v33, %v5265_v19 }
 0x1dd   :  { %7977 = vst [vmem:[#allocation49_spill] sm:$0xff] %v5269_v6  ;;  %1606 = vmin.xlane.f32.xlu0 %v5269_v6  ;;  %v5293_v8 = vcvt.s32.f32 %v1421_v60  ;;  %7982 = vst [vmem:[#allocation54_spill] sm:$0xff] %v5304_v10  ;;  %vm1027_vm3 = vcmp.eq.f32.partialorder %v4921_v57, %v927_v59 }
 0x1de   :  { %v5278_v46 = vpop.xlane.xlu0 %946  ;;  %v5347_v52 = vsel %vm1027_vm3, %v5021_v9, 128 }
 0x1df   :  { %1396 = vmin.xlane.f32.xlu1 %v5272_v56  ;;  %7988 = vst [vmem:[#allocation60_spill] sm:$0xff] %v5347_v52  ;;  %v1533_v57 = vshra.s32 %v5347_v52, 16  ;;  %vm1037_vm9 = vcmp.eq.f32.partialorder %v4957_v43, %v5278_v46 }
 0x1e0   :  { %v5405_v33 = vsel %vm1037_vm9, %v5021_v9, 128 }
 0x1e2   :  { %v5289_v6 = vpop.xlane.xlu0 %944 }
 0x1e3   :  { %1382 = vmin.xlane.f32.xlu1 %v5283_v27  ;;  %v5314_v27 = vcvt.s32.f32 %v1449_v31  ;;  %v931_v31 = vpop.xlane.xlu1 %930  ;;  %vm1036_vm10 = vcmp.eq.f32.partialorder %v4962_v50, %v5289_v6  ;;  %v1140_v6 = vand.u32 65535, %v5029_v45 }
 0x1e4   :  { %vm1029_vm4 = vcmp.eq.f32.partialorder %v4929_v3, %v931_v31  ;;  %v5416_v43 = vsel %vm1036_vm10, %v5021_v9, 128 }
 0x1e5   :  { %v5357_v59 = vsel %vm1029_vm4, %v5021_v9, 128  ;;  %7994 = vst [vmem:[#allocation66_spill] sm:$0xff] %v5416_v43 }
 0x1e6   :  { %v5299_v32 = vpop.xlane.xlu0 %950  ;;  %7990 = vst [vmem:[#allocation62_spill] sm:$0xff] %v5357_v59  ;;  %v1561_v3 = vshra.s32 %v5357_v59, 16 }
 0x1e7   :  { %1424 = vmin.xlane.f32.xlu1 %v5293_v8  ;;  %v935_v29 = vpop.xlane.xlu1 %934  ;;  %vm1039_vm11 = vcmp.eq.f32.partialorder %v4966_v55, %v5299_v32 }
 0x1e8   :  { %vm1031_vm5 = vcmp.eq.f32.partialorder %v4937_v11, %v935_v29  ;;  %v5371_v52 = vcvt.s32.f32 %v1561_v3  ;;  %v5427_v50 = vsel %vm1039_vm11, %v5021_v9, 128 }
 0x1e9   :  { %v5367_v31 = vsel %vm1031_vm5, %v5021_v9, 128  ;;  %7996 = vst [vmem:[#allocation68_spill] sm:$0xff] %v5427_v50  ;;  %v1701_v55 = vshra.s32 %v5427_v50, 16 }
 0x1ea   :  { %v5310_v60 = vpop.xlane.xlu0 %948  ;;  %7991 = vst [vmem:[#allocation63_spill] sm:$0xff] %v5367_v31  ;;  %v1589_v11 = vshra.s32 %v5367_v31, 16 }
 0x1eb   :  { %1410 = vmin.xlane.f32.xlu1 %v5304_v10  ;;  %v5335_v10 = vcvt.s32.f32 %v1477_v39  ;;  %v5353_v39 = vcvt.s32.f32 %v1505_v49  ;;  %v939_v38 = vpop.xlane.xlu1 %938  ;;  %vm1038_vm12 = vcmp.eq.f32.partialorder %v4970_v62, %v5310_v60  ;;  %v1126_v62 = vand.u32 65535, %v5041_v24 }
 0x1ec   :  { %vm1033_vm6 = vcmp.eq.f32.partialorder %v4945_v23, %v939_v38  ;;  %v5382_v59 = vcvt.s32.f32 %v1589_v11  ;;  %v5448_v50 = vcvt.s32.f32 %v1701_v55 }
 0x1ed   :  { %7986 = vst [vmem:[#allocation58_spill] sm:$0xff] %v5335_v10  ;;  %7989 = vst [vmem:[#allocation61_spill] sm:$0xff] %v5353_v39  ;;  %v5375_v29 = vsel %vm1033_vm6, %v5021_v9, 128 }
 0x1ee   :  { %v5320_v20 = vpop.xlane.xlu0 %954 }
 0x1ef   :  { %1452 = vmin.xlane.f32.xlu1 %v5314_v27  ;;  %v943_v49 = vpop.xlane.xlu1 %942  ;;  %vm1041_vm13 = vcmp.eq.f32.partialorder %v4974_v5, %v5320_v20  ;;  %v1168_v5 = vand.u32 65535, %v5044_v4  ;;  %v1154_v4 = vand.u32 65535, %v5057_v25  ;;  %v8002_v25 = vld [vmem:[#allocation24_spill] sm:$0xff] }
 0x1f0   :  { %vm1035_vm7 = vcmp.eq.f32.partialorder %v4953_v34, %v943_v49  ;;  %v5396_v34 = vsel %vm1034_vm8, %v5021_v9, 128 }
 0x1f1   :  { %v5385_v23 = vsel %vm1035_vm7, %v5021_v9, 128  ;;  %7993 = vst [vmem:[#allocation65_spill] sm:$0xff] %v5396_v34  ;;  %v1631_v49 = vshra.s32 %v5396_v34, 16 }
 0x1f2   :  { %v5333_v13 = vpop.xlane.xlu0 %952  ;;  %7992 = vst [vmem:[#allocation64_spill] sm:$0xff] %v5385_v23  ;;  %v1645_v3 = vshra.s32 %v5385_v23, 16 }
 0x1f3   :  { %1438 = vmin.xlane.f32.xlu1 %v5325_v36  ;;  %v5413_v23 = vcvt.s32.f32 %v1631_v49  ;;  %v5437_v49 = vsel %vm1038_vm12, %v5021_v9, 128  ;;  %vm1040_vm15 = vcmp.eq.f32.partialorder %v4978_v12, %v5333_v13 }
 0x1f4   :  { %v5402_v11 = vcvt.s32.f32 %v1645_v3  ;;  %v1659_v3 = vshra.s32 %v5416_v43, 16  ;;  %v1687_v45 = vshra.s32 %v5437_v49, 16 }
 0x1f6   :  { %v5349_v36 = vpop.xlane.xlu0 %958  ;;  %v5434_v32 = vcvt.s32.f32 %v1659_v3  ;;  %v5453_v3 = vsel %vm1041_vm13, %v5021_v9, 128 }
 0x1f7   :  { %1480 = vmin.xlane.f32.xlu1 %v5335_v10  ;;  %v5363_v10 = vcvt.s32.f32 %v1533_v57  ;;  %v1617_v57 = vshra.s32 %v5375_v29, 16  ;;  %v1729_v55 = vshra.s32 %v5453_v3, 16  ;;  %vm1043_vm2 = vcmp.eq.f32.partialorder %v4982_v18, %v5349_v36  ;;  %v8001_v36 = vld [vmem:[#allocation11_spill] sm:$0xff] }
 0x1f9   :  { %v5393_v31 = vcvt.s32.f32 %v1617_v57  ;;  %v1673_v57 = vshra.s32 %v5405_v33, 16 }
 0x1fa   :  { %v5361_v44 = vpop.xlane.xlu0 %956 }
 0x1fb   :  { %1466 = vmin.xlane.f32.xlu1 %v5343_v26  ;;  %v5424_v34 = vcvt.s32.f32 %v1673_v57  ;;  %v1142_v57 = vcvt.s32.f32 %v1140_v6  ;;  %v1128_v6 = vcvt.s32.f32 %v1126_v62  ;;  %vm1042_vm4 = vcmp.eq.f32.partialorder %v8001_v36, %v5361_v44  ;;  %v8006_v44 = vld [vmem:[#allocation12_spill] sm:$0xff] }
 0x1fd   :  { %7995 = vst [vmem:[#allocation67_spill] sm:$0xff] %v5424_v34 }
 0x1ff   :  { %1508 = vmin.xlane.f32.xlu1 %v5353_v39  ;;  %v5377_v39 = vpop.xlane.xlu0 %962 }
 0x200   :  { %vm1045_vm6 = vcmp.eq.f32.partialorder %v8006_v44, %v5377_v39  ;;  %v8011_v44 = vld [vmem:[#allocation29_spill] sm:$0xff] }
 0x203   :  { %1536 = vmin.xlane.f32.xlu1 %v5363_v10  ;;  %v5390_v38 = vpop.xlane.xlu0 %960 }
 0x207   :  { %1564 = vmin.xlane.f32.xlu1 %v5371_v52  ;;  %v5407_v19 = vpop.xlane.xlu0 %966 }
 0x20b   :  { %1592 = vmin.xlane.f32.xlu1 %v5382_v59  ;;  %v5421_v46 = vpop.xlane.xlu0 %964 }
 0x20f   :  { %1620 = vmin.xlane.f32.xlu1 %v5393_v31  ;;  %v5439_v43 = vpop.xlane.xlu0 %970 }
 0x213   :  { %1648 = vmin.xlane.f32.xlu1 %v5402_v11  ;;  %v5459_v24 = vpop.xlane.xlu0 %968 }
 0x217   :  { %1634 = vmin.xlane.f32.xlu1 %v5413_v23 }
 0x21b   :  { %1676 = vmin.xlane.f32.xlu1 %v5424_v34 }
 0x21f   :  { %1662 = vmin.xlane.f32.xlu1 %v5434_v32 }
 0x220   :  { %v5445_v60 = vpop.xlane.xlu1 %1144 }
 0x221   :  { %vm1146_vm14 = vcmp.eq.f32.partialorder %v5035_v21, %v5445_v60  ;;  %v5464_v21 = vcvt.s32.f32 %v1687_v45  ;;  %v5478_v45 = vcvt.s32.f32 %v1729_v55  ;;  %v1156_v55 = vcvt.s32.f32 %v1154_v4 }
 0x222   :  { %v1147_v34 = vsel %vm1146_vm14, %v1142_v57, inf  ;;  %v5469_v57 = vsel %vm1040_vm15, %v5021_v9, 128 }
 0x223   :  { %1704 = vmin.xlane.f32.xlu1 %v5448_v50  ;;  %1148 = vmin.xlane.f32.xlu0 %v1147_v34  ;;  %7997 = vst [vmem:[#allocation69_spill] sm:$0xff] %v5464_v21  ;;  %7998 = vst [vmem:[#allocation70_spill] sm:$0xff] %v5469_v57  ;;  %v1170_v34 = vcvt.s32.f32 %v1168_v5  ;;  %v1715_v62 = vshra.s32 %v5469_v57, 16  ;;  %v1196_v5 = vand.u32 65535, %v8002_v25 }
 0x224   :  { %v5461_v20 = vpop.xlane.xlu1 %1130 }
 0x225   :  { %vm1132_vm1 = vcmp.eq.f32.partialorder %v5050_v16, %v5461_v20  ;;  %v5483_v16 = vsel %vm1043_vm2, %v5021_v9, 128 }
 0x226   :  { %v1133_v12 = vsel %vm1132_vm1, %v1128_v6, inf  ;;  %8000 = vst [vmem:[#allocation72_spill] sm:$0xff] %v5483_v16  ;;  %v5485_v6 = vpop.xlane.xlu0 %974  ;;  %v1757_v57 = vshra.s32 %v5483_v16, 16 }
 0x227   :  { %1690 = vmin.xlane.f32.xlu1 %v5464_v21  ;;  %1134 = vmin.xlane.f32.xlu0 %v1133_v12 }
 0x228   :  { %v5475_v13 = vpop.xlane.xlu1 %1172 }
 0x229   :  { %7999 = vst [vmem:[#allocation71_spill] sm:$0xff] %v5475_v13  ;;  %vm1174_vm3 = vcmp.eq.f32.partialorder %v5062_v30, %v5475_v13  ;;  %v5494_v30 = vcvt.s32.f32 %v1715_v62  ;;  %v8004_v13 = vld [vmem:[#allocation25_spill] sm:$0xff]  ;;  %v1198_v62 = vcvt.s32.f32 %v1196_v5 }
 0x22a   :  { %v1175_v18 = vsel %vm1174_vm3, %v1170_v34, inf  ;;  %v5499_v34 = vsel %vm1042_vm4, %v5021_v9, 128  ;;  %v5505_v4 = vpop.xlane.xlu0 %972 }
 0x22b   :  { %1732 = vmin.xlane.f32.xlu1 %v5478_v45  ;;  %1176 = vmin.xlane.f32.xlu0 %v1175_v18  ;;  %8003 = vst [vmem:[#allocation11_spill] sm:$0xff] %v5494_v30  ;;  %8005 = vst [vmem:[#allocation24_spill] sm:$0xff] %v5499_v34  ;;  %v8007_v18 = vld [vmem:[#allocation27_spill] sm:$0xff]  ;;  %v1743_v16 = vshra.s32 %v5499_v34, 16 }
 0x22c   :  { %v5491_v12 = vpop.xlane.xlu1 %1158  ;;  %v1182_v36 = vand.u32 65535, %v8007_v18  ;;  %v1224_v18 = vand.u32 65535, %v8011_v44 }
 0x22d   :  { %vm1160_vm5 = vcmp.eq.f32.partialorder %v8004_v13, %v5491_v12  ;;  %v5510_v13 = vcvt.s32.f32 %v1757_v57 }
 0x22e   :  { %v1161_v21 = vsel %vm1160_vm5, %v1156_v55, inf  ;;  %v5515_v55 = vsel %vm1045_vm6, %v5021_v9, 128  ;;  %v1184_v34 = vcvt.s32.f32 %v1182_v36  ;;  %v8013_v36 = vld [vmem:[#allocation31_spill] sm:$0xff] }
 0x22f   :  { %1718 = vmin.xlane.f32.xlu1 %v5494_v30  ;;  %1162 = vmin.xlane.f32.xlu0 %v1161_v21  ;;  %8008 = vst [vmem:[#allocation25_spill] sm:$0xff] %v5510_v13  ;;  %8009 = vst [vmem:[#allocation12_spill] sm:$0xff] %v5515_v55  ;;  %v8010_v21 = vld [vmem:[#allocation13_spill] sm:$0xff]  ;;  %v1785_v57 = vshra.s32 %v5515_v55, 16  ;;  %v5524_v30 = vcvt.s32.f32 %v1743_v16  ;;  %v1226_v16 = vcvt.s32.f32 %v1224_v18 }
 0x230   :  { %v5507_v25 = vpop.xlane.xlu1 %1200  ;;  %vm1044_vm8 = vcmp.eq.f32.partialorder %v8010_v21, %v5390_v38  ;;  %v1210_v21 = vand.u32 65535, %v8013_v36 }
 0x231   :  { %vm1202_vm7 = vcmp.eq.f32.partialorder %v5086_v35, %v5507_v25  ;;  %v5529_v35 = vsel %vm1044_vm8, %v5021_v9, 128 }
 0x232   :  { %v1203_v39 = vsel %vm1202_vm7, %v1198_v62, inf  ;;  %v5531_v62 = vpop.xlane.xlu0 %978  ;;  %v1771_v55 = vshra.s32 %v5529_v35, 16 }
 0x233   :  { %1760 = vmin.xlane.f32.xlu1 %v5510_v13  ;;  %1204 = vmin.xlane.f32.xlu0 %v1203_v39  ;;  %v8012_v39 = vld [vmem:[#allocation14_spill] sm:$0xff] }
 0x234   :  { %v5521_v5 = vpop.xlane.xlu1 %1186  ;;  %vm1047_vm10 = vcmp.eq.f32.partialorder %v8012_v39, %v5407_v19  ;;  %v8015_v19 = vld [vmem:[#allocation15_spill] sm:$0xff] }
 0x235   :  { %vm1188_vm9 = vcmp.eq.f32.partialorder %v5098_v58, %v5521_v5  ;;  %v5540_v58 = vcvt.s32.f32 %v1785_v57  ;;  %vm1046_vm12 = vcmp.eq.f32.partialorder %v8015_v19, %v5421_v46  ;;  %v1212_v57 = vcvt.s32.f32 %v1210_v21 }
 0x236   :  { %v1189_v38 = vsel %vm1188_vm9, %v1184_v34, inf  ;;  %v5545_v34 = vsel %vm1047_vm10, %v5021_v9, 128  ;;  %v5551_v18 = vpop.xlane.xlu0 %976 }
 0x237   :  { %1746 = vmin.xlane.f32.xlu1 %v5524_v30  ;;  %1190 = vmin.xlane.f32.xlu0 %v1189_v38  ;;  %8014 = vst [vmem:[#allocation27_spill] sm:$0xff] %v5545_v34  ;;  %v1252_v38 = vand.u32 65535, %v5117_v15  ;;  %v1813_v36 = vshra.s32 %v5545_v34, 16  ;;  %v1238_v15 = vand.u32 65535, %v5129_v61  ;;  %v1280_v61 = vand.u32 65535, %v5143_v63  ;;  %v8024_v63 = vld [vmem:[#allocation35_spill] sm:$0xff] }
 0x238   :  { %v5537_v44 = vpop.xlane.xlu1 %1228 }
 0x239   :  { %vm1230_vm11 = vcmp.eq.f32.partialorder %v5110_v41, %v5537_v44  ;;  %v5556_v41 = vcvt.s32.f32 %v1771_v55  ;;  %v1254_v19 = vcvt.s32.f32 %v1252_v38  ;;  %v5570_v34 = vcvt.s32.f32 %v1813_v36 }
 0x23a   :  { %v1231_v13 = vsel %vm1230_vm11, %v1226_v16, inf  ;;  %v5561_v16 = vsel %vm1046_vm12, %v5021_v9, 128  ;;  %v1240_v36 = vcvt.s32.f32 %v1238_v15 }
 0x23b   :  { %1788 = vmin.xlane.f32.xlu1 %v5540_v58  ;;  %1232 = vmin.xlane.f32.xlu0 %v1231_v13  ;;  %v8016_v13 = vld [vmem:[#allocation16_spill] sm:$0xff]  ;;  %v1799_v55 = vshra.s32 %v5561_v16, 16  ;;  %8018 = vst [vmem:[#allocation29_spill] sm:$0xff] %v5570_v34 }
 0x23c   :  { %v5553_v39 = vpop.xlane.xlu1 %1214  ;;  %vm1049_vm14 = vcmp.eq.f32.partialorder %v8016_v13, %v5439_v43 }
 0x23d   :  { %vm1216_vm13 = vcmp.eq.f32.partialorder %v5122_v42, %v5553_v39  ;;  %v5575_v42 = vsel %vm1049_vm14, %v5021_v9, 128 }
 0x23e   :  { %v1217_v46 = vsel %vm1216_vm13, %v1212_v57, inf  ;;  %8019 = vst [vmem:[#allocation14_spill] sm:$0xff] %v5575_v42  ;;  %v5577_v57 = vpop.xlane.xlu0 %982  ;;  %v1841_v13 = vshra.s32 %v5575_v42, 16 }
 0x23f   :  { %1774 = vmin.xlane.f32.xlu1 %v5556_v41  ;;  %1218 = vmin.xlane.f32.xlu0 %v1217_v46  ;;  %v8020_v46 = vld [vmem:[#allocation17_spill] sm:$0xff] }
 0x240   :  { %v5567_v21 = vpop.xlane.xlu1 %1256  ;;  %vm1048_vm1 = vcmp.eq.f32.partialorder %v8020_v46, %v5459_v24  ;;  %v8023_v24 = vld [vmem:[#allocation18_spill] sm:$0xff] }
 0x241   :  { %8017 = vst [vmem:[#allocation13_spill] sm:$0xff] %v5567_v21  ;;  %vm1258_vm15 = vcmp.eq.f32.partialorder %v5136_v47, %v5567_v21  ;;  %v5586_v47 = vcvt.s32.f32 %v1799_v55  ;;  %vm1051_vm3 = vcmp.eq.f32.partialorder %v8023_v24, %v5485_v6  ;;  %v1282_v55 = vcvt.s32.f32 %v1280_v61  ;;  %v8030_v24 = vld [vmem:[#allocation37_spill] sm:$0xff] }
 0x242   :  { %v1259_v43 = vsel %vm1258_vm15, %v1254_v19, inf  ;;  %v5591_v19 = vsel %vm1048_vm1, %v5021_v9, 128  ;;  %v5597_v15 = vpop.xlane.xlu0 %980 }
 0x243   :  { %1816 = vmin.xlane.f32.xlu1 %v5570_v34  ;;  %1260 = vmin.xlane.f32.xlu0 %v1259_v43  ;;  %8021 = vst [vmem:[#allocation31_spill] sm:$0xff] %v5586_v47  ;;  %8022 = vst [vmem:[#allocation15_spill] sm:$0xff] %v5591_v19  ;;  %v1266_v43 = vand.u32 65535, %v8024_v63  ;;  %v1827_v42 = vshra.s32 %v5591_v19, 16  ;;  %v8027_v34 = vld [vmem:[#allocation36_spill] sm:$0xff]  ;;  %v1308_v63 = vand.u32 65535, %v8030_v24 }
 0x244   :  { %v5583_v38 = vpop.xlane.xlu1 %1242 }
 0x245   :  { %vm1244_vm2 = vcmp.eq.f32.partialorder %v5150_v48, %v5583_v38  ;;  %v5602_v48 = vcvt.s32.f32 %v1841_v13  ;;  %v1268_v19 = vcvt.s32.f32 %v1266_v43 }
 0x246   :  { %v1245_v21 = vsel %vm1244_vm2, %v1240_v36, inf  ;;  %v5607_v36 = vsel %vm1051_vm3, %v5021_v9, 128 }
 0x247   :  { %1802 = vmin.xlane.f32.xlu1 %v5586_v47  ;;  %1246 = vmin.xlane.f32.xlu0 %v1245_v21  ;;  %8026 = vst [vmem:[#allocation17_spill] sm:$0xff] %v5602_v48  ;;  %8028 = vst [vmem:[#allocation18_spill] sm:$0xff] %v5607_v36  ;;  %v8029_v21 = vld [vmem:[#allocation19_spill] sm:$0xff]  ;;  %v1869_v13 = vshra.s32 %v5607_v36, 16  ;;  %v5616_v47 = vcvt.s32.f32 %v1827_v42  ;;  %v1310_v42 = vcvt.s32.f32 %v1308_v63 }
 0x248   :  { %v5599_v46 = vpop.xlane.xlu1 %1284  ;;  %vm1050_vm5 = vcmp.eq.f32.partialorder %v8029_v21, %v5505_v4  ;;  %v8033_v21 = vld [vmem:[#allocation20_spill] sm:$0xff] }
 0x249   :  { %8025 = vst [vmem:[#allocation16_spill] sm:$0xff] %v5599_v46  ;;  %vm1286_vm4 = vcmp.eq.f32.partialorder %v8027_v34, %v5599_v46  ;;  %v8031_v34 = vld [vmem:[#allocation38_spill] sm:$0xff]  ;;  %v987_v46 = vpop.xlane.xlu0 %986  ;;  %vm1053_vm7 = vcmp.eq.f32.partialorder %v8033_v21, %v5531_v62  ;;  %v8035_v62 = vld [vmem:[#allocation21_spill] sm:$0xff] }
 0x24a   :  { %v1287_v6 = vsel %vm1286_vm4, %v1282_v55, inf  ;;  %v5621_v55 = vsel %vm1050_vm5, %v5021_v9, 128  ;;  %vm1052_vm9 = vcmp.eq.f32.partialorder %v8035_v62, %v5551_v18 }
 0x24b   :  { %1844 = vmin.xlane.f32.xlu1 %v5602_v48  ;;  %1288 = vmin.xlane.f32.xlu0 %v1287_v6  ;;  %8032 = vst [vmem:[#allocation35_spill] sm:$0xff] %v5621_v55  ;;  %v8034_v6 = vld [vmem:[#allocation39_spill] sm:$0xff]  ;;  %v1855_v36 = vshra.s32 %v5621_v55, 16  ;;  %v5630_v48 = vcvt.s32.f32 %v1869_v13 }
 0x24c   :  { %v5613_v61 = vpop.xlane.xlu1 %1270  ;;  %v1294_v43 = vand.u32 65535, %v8034_v6 }
 0x24d   :  { %vm1272_vm6 = vcmp.eq.f32.partialorder %v8031_v34, %v5613_v61  ;;  %v985_v63 = vpop.xlane.xlu0 %984  ;;  %v5644_v55 = vcvt.s32.f32 %v1855_v36 }
 0x24e   :  { %v1273_v4 = vsel %vm1272_vm6, %v1268_v19, inf  ;;  %v5635_v19 = vsel %vm1053_vm7, %v5021_v9, 128  ;;  %v1296_v13 = vcvt.s32.f32 %v1294_v43 }
 0x24f   :  { %1830 = vmin.xlane.f32.xlu1 %v5616_v47  ;;  %1274 = vmin.xlane.f32.xlu0 %v1273_v4  ;;  %v1336_v4 = vand.u32 65535, %v5184_v37  ;;  %v1897_v6 = vshra.s32 %v5635_v19, 16  ;;  %v1322_v37 = vand.u32 65535, %v5197_v54  ;;  %v1364_v54 = vand.u32 65535, %v5213_v28 }
 0x250   :  { %v5627_v24 = vpop.xlane.xlu1 %1312  ;;  %v1350_v28 = vand.u32 65535, %v5230_v1  ;;  %v1392_v1 = vand.u32 65535, %v5246_v14  ;;  %v1378_v14 = vand.u32 65535, %v5263_v0  ;;  %v8049_v0 = vld [vmem:[#allocation50_spill] sm:$0xff] }
 0x251   :  { %vm1314_vm8 = vcmp.eq.f32.partialorder %v5180_v17, %v5627_v24  ;;  %v5649_v17 = vsel %vm1052_vm9, %v5021_v9, 128  ;;  %v5658_v62 = vcvt.s32.f32 %v1897_v6  ;;  %v1324_v6 = vcvt.s32.f32 %v1322_v37 }
 0x252   :  { %v1315_v34 = vsel %vm1314_vm8, %v1310_v42, inf  ;;  %8036 = vst [vmem:[#allocation36_spill] sm:$0xff] %v5649_v17  ;;  %v8037_v42 = vld [vmem:[#allocation22_spill] sm:$0xff]  ;;  %v1883_v36 = vshra.s32 %v5649_v17, 16 }
 0x253   :  { %1872 = vmin.xlane.f32.xlu1 %v5630_v48  ;;  %1316 = vmin.xlane.f32.xlu0 %v1315_v34  ;;  %vm1055_vm11 = vcmp.eq.f32.partialorder %v8037_v42, %v5577_v57  ;;  %v1338_v34 = vcvt.s32.f32 %v1336_v4  ;;  %v8039_v42 = vld [vmem:[#allocation23_spill] sm:$0xff] }
 0x254   :  { %v5641_v21 = vpop.xlane.xlu1 %1298  ;;  %vm1054_vm13 = vcmp.eq.f32.partialorder %v8039_v42, %v5597_v15  ;;  %v5672_v17 = vcvt.s32.f32 %v1883_v36  ;;  %v8040_v15 = vld [vmem:[#allocation26_spill] sm:$0xff]  ;;  %v1366_v42 = vcvt.s32.f32 %v1364_v54  ;;  %v1352_v54 = vcvt.s32.f32 %v1350_v28 }
 0x255   :  { %vm1300_vm10 = vcmp.eq.f32.partialorder %v5192_v2, %v5641_v21  ;;  %v5663_v2 = vsel %vm1055_vm11, %v5021_v9, 128  ;;  %vm1057_vm15 = vcmp.eq.f32.partialorder %v8040_v15, %v987_v46 }
 0x256   :  { %v1301_v18 = vsel %vm1300_vm10, %v1296_v13, inf  ;;  %8038 = vst [vmem:[#allocation19_spill] sm:$0xff] %v5663_v2  ;;  %v991_v13 = vpop.xlane.xlu0 %990 }
 0x257   :  { %1858 = vmin.xlane.f32.xlu1 %v5644_v55  ;;  %1302 = vmin.xlane.f32.xlu0 %v1301_v18  ;;  %v1925_v18 = vshra.s32 %v5663_v2, 16 }
 0x258   :  { %v5655_v43 = vpop.xlane.xlu1 %1340 }
 0x259   :  { %vm1342_vm12 = vcmp.eq.f32.partialorder %v5208_v51, %v5655_v43  ;;  %v5677_v51 = vsel %vm1054_vm13, %v5021_v9, 128  ;;  %v5685_v2 = vcvt.s32.f32 %v1925_v18 }
 0x25a   :  { %v1343_v57 = vsel %vm1342_vm12, %v1338_v34, inf  ;;  %v1911_v36 = vshra.s32 %v5677_v51, 16 }
 0x25b   :  { %1900 = vmin.xlane.f32.xlu1 %v5658_v62  ;;  %1344 = vmin.xlane.f32.xlu0 %v1343_v57  ;;  %v989_v57 = vpop.xlane.xlu0 %988 }
 0x25c   :  { %v5669_v4 = vpop.xlane.xlu1 %1326  ;;  %v5698_v15 = vcvt.s32.f32 %v1911_v36 }
 0x25d   :  { %vm1328_vm14 = vcmp.eq.f32.partialorder %v5225_v40, %v5669_v4  ;;  %v5690_v40 = vsel %vm1057_vm15, %v5021_v9, 128 }
 0x25e   :  { %v1329_v34 = vsel %vm1328_vm14, %v1324_v6, inf  ;;  %8041 = vst [vmem:[#allocation37_spill] sm:$0xff] %v5690_v40  ;;  %v8042_v6 = vld [vmem:[#allocation28_spill] sm:$0xff]  ;;  %v1953_v18 = vshra.s32 %v5690_v40, 16  ;;  %8043 = vst [vmem:[#allocation38_spill] sm:$0xff] %v5698_v15 }
 0x25f   :  { %1886 = vmin.xlane.f32.xlu1 %v5672_v17  ;;  %1330 = vmin.xlane.f32.xlu0 %v1329_v34  ;;  %vm1056_vm2 = vcmp.eq.f32.partialorder %v8042_v6, %v985_v63  ;;  %v8045_v6 = vld [vmem:[#allocation30_spill] sm:$0xff] }
 0x260   :  { %v5682_v37 = vpop.xlane.xlu1 %1368  ;;  %vm1059_vm4 = vcmp.eq.f32.partialorder %v8045_v6, %v991_v13  ;;  %v5711_v40 = vcvt.s32.f32 %v1953_v18  ;;  %v8048_v13 = vld [vmem:[#allocation32_spill] sm:$0xff] }
 0x261   :  { %vm1370_vm1 = vcmp.eq.f32.partialorder %v5241_v53, %v5682_v37  ;;  %v5703_v53 = vsel %vm1056_vm2, %v5021_v9, 128  ;;  %vm1058_vm6 = vcmp.eq.f32.partialorder %v8048_v13, %v989_v57  ;;  %v8052_v13 = vld [vmem:[#allocation34_spill] sm:$0xff] }
 0x262   :  { %v1371_v46 = vsel %vm1370_vm1, %v1366_v42, inf  ;;  %8044 = vst [vmem:[#allocation20_spill] sm:$0xff] %v5703_v53  ;;  %v995_v42 = vpop.xlane.xlu0 %994  ;;  %v1939_v36 = vshra.s32 %v5703_v53, 16  ;;  %8046 = vst [vmem:[#allocation39_spill] sm:$0xff] %v5711_v40  ;;  %v1380_v53 = vcvt.s32.f32 %v1378_v14 }
 0x263   :  { %1928 = vmin.xlane.f32.xlu1 %v5685_v2  ;;  %1372 = vmin.xlane.f32.xlu0 %v1371_v46  ;;  %v1394_v46 = vcvt.s32.f32 %v1392_v1 }
 0x264   :  { %v5695_v34 = vpop.xlane.xlu1 %1354 }
 0x265   :  { %vm1356_vm3 = vcmp.eq.f32.partialorder %v5259_v7, %v5695_v34  ;;  %v5716_v7 = vsel %vm1059_vm4, %v5021_v9, 128 }
 0x266   :  { %v1357_v63 = vsel %vm1356_vm3, %v1352_v54, inf  ;;  %8047 = vst [vmem:[#allocation21_spill] sm:$0xff] %v5716_v7  ;;  %v993_v6 = vpop.xlane.xlu0 %992  ;;  %v1981_v18 = vshra.s32 %v5716_v7, 16 }
 0x267   :  { %1914 = vmin.xlane.f32.xlu1 %v5698_v15  ;;  %1358 = vmin.xlane.f32.xlu0 %v1357_v63  ;;  %v1420_v63 = vand.u32 65535, %v8049_v0  ;;  %v5724_v15 = vcvt.s32.f32 %v1939_v36  ;;  %vm1060_vm8 = vcmp.eq.f32.partialorder %v8052_v13, %v993_v6  ;;  %v8057_v6 = vld [vmem:[#allocation33_spill] sm:$0xff] }
 0x268   :  { %v5708_v28 = vpop.xlane.xlu1 %1396  ;;  %v5737_v7 = vcvt.s32.f32 %v1981_v18  ;;  %vm1061_vm10 = vcmp.eq.f32.partialorder %v8057_v6, %v995_v42  ;;  %v8063_v42 = vld [vmem:[#allocation55_spill] sm:$0xff] }
 0x269   :  { %vm1398_vm5 = vcmp.eq.f32.partialorder %v5272_v56, %v5708_v28  ;;  %v8050_v56 = vld [vmem:[#allocation51_spill] sm:$0xff]  ;;  %v1422_v14 = vcvt.s32.f32 %v1420_v63 }
 0x26a   :  { %v1399_v54 = vsel %vm1398_vm5, %v1394_v46, inf  ;;  %v5729_v46 = vsel %vm1058_vm6, %v5021_v9, 128  ;;  %8055 = vst [vmem:[#allocation26_spill] sm:$0xff] %v5737_v7 }
 0x26b   :  { %1956 = vmin.xlane.f32.xlu1 %v5711_v40  ;;  %1400 = vmin.xlane.f32.xlu0 %v1399_v54  ;;  %8051 = vst [vmem:[#allocation22_spill] sm:$0xff] %v5729_v46  ;;  %v8053_v54 = vld [vmem:[#allocation52_spill] sm:$0xff]  ;;  %v1967_v36 = vshra.s32 %v5729_v46, 16 }
 0x26c   :  { %v5721_v1 = vpop.xlane.xlu1 %1382  ;;  %v1406_v0 = vand.u32 65535, %v8053_v54 }
 0x26d   :  { %vm1384_vm7 = vcmp.eq.f32.partialorder %v8050_v56, %v5721_v1  ;;  %v5742_v56 = vsel %vm1060_vm8, %v5021_v9, 128  ;;  %v5750_v46 = vcvt.s32.f32 %v1967_v36 }
 0x26e   :  { %v1385_v57 = vsel %vm1384_vm7, %v1380_v53, inf  ;;  %8056 = vst [vmem:[#allocation28_spill] sm:$0xff] %v5742_v56  ;;  %v1408_v63 = vcvt.s32.f32 %v1406_v0  ;;  %v1995_v18 = vshra.s32 %v5742_v56, 16 }
 0x26f   :  { %1942 = vmin.xlane.f32.xlu1 %v5724_v15  ;;  %1386 = vmin.xlane.f32.xlu0 %v1385_v57  ;;  %v8058_v57 = vld [vmem:[#allocation53_spill] sm:$0xff]  ;;  %8060 = vst [vmem:[#allocation32_spill] sm:$0xff] %v5750_v46 }
 0x270   :  { %v5734_v40 = vpop.xlane.xlu1 %1424  ;;  %v1448_v13 = vand.u32 65535, %v8058_v57  ;;  %v5764_v36 = vcvt.s32.f32 %v1995_v18  ;;  %v5776_v18 = vpop.xlane.xlu0 %1494 }
 0x271   :  { %8054 = vst [vmem:[#allocation23_spill] sm:$0xff] %v5734_v40  ;;  %vm1426_vm9 = vcmp.eq.f32.partialorder %v5293_v8, %v5734_v40  ;;  %v8061_v8 = vld [vmem:[#allocation54_spill] sm:$0xff]  ;;  %v5755_v40 = vsel %vm1061_vm10, %v5021_v9, 128  ;;  %8070 = vst [vmem:[#allocation53_spill] sm:$0xff] %v5776_v18 }
 0x272   :  { %v1427_v53 = vsel %vm1426_vm9, %v1422_v14, inf  ;;  %8062 = vst [vmem:[#allocation50_spill] sm:$0xff] %v5755_v40  ;;  %v1450_v57 = vcvt.s32.f32 %v1448_v13  ;;  %v2009_v0 = vshra.s32 %v5755_v40, 16  ;;  %8065 = vst [vmem:[#allocation34_spill] sm:$0xff] %v5764_v36 }
 0x273   :  { %1984 = vmin.xlane.f32.xlu1 %v5737_v7  ;;  %1428 = vmin.xlane.f32.xlu0 %v1427_v53  ;;  %v1434_v53 = vand.u32 65535, %v8063_v42  ;;  %v8068_v42 = vld [vmem:[#allocation57_spill] sm:$0xff] }
 0x274   :  { %v5747_v54 = vpop.xlane.xlu1 %1410  ;;  %v5772_v13 = vcvt.s32.f32 %v2009_v0 }
 0x275   :  { %8059 = vst [vmem:[#allocation30_spill] sm:$0xff] %v5747_v54  ;;  %vm1412_vm11 = vcmp.eq.f32.partialorder %v8061_v8, %v5747_v54 }
 0x276   :  { %v1413_v14 = vsel %vm1412_vm11, %v1408_v63, inf  ;;  %v8066_v63 = vld [vmem:[#allocation56_spill] sm:$0xff]  ;;  %8069 = vst [vmem:[#allocation33_spill] sm:$0xff] %v5772_v13 }
 0x277   :  { %1970 = vmin.xlane.f32.xlu1 %v5750_v46  ;;  %1414 = vmin.xlane.f32.xlu0 %v1413_v14  ;;  %v1476_v56 = vand.u32 65535, %v8066_v63  ;;  %v1436_v14 = vcvt.s32.f32 %v1434_v53  ;;  %v8072_v63 = vld [vmem:[#allocation58_spill] sm:$0xff] }
 0x278   :  { %v5759_v6 = vpop.xlane.xlu1 %1452 }
 0x279   :  { %8064 = vst [vmem:[#allocation51_spill] sm:$0xff] %v5759_v6  ;;  %vm1454_vm12 = vcmp.eq.f32.partialorder %v5314_v27, %v5759_v6  ;;  %v1462_v27 = vand.u32 65535, %v5329_v22 }
 0x27a   :  { %v1455_v8 = vsel %vm1454_vm12, %v1450_v57, inf }
 0x27b   :  { %1456 = vmin.xlane.f32.xlu0 %v1455_v8  ;;  %1998 = vmin.xlane.f32.xlu1 %v5764_v36  ;;  %v1478_v8 = vcvt.s32.f32 %v1476_v56  ;;  %v8073_v36 = vld [vmem:[#allocation59_spill] sm:$0xff]  ;;  %v8076_v56 = vld [vmem:[#allocation60_spill] sm:$0xff] }
 0x27c   :  { %v5768_v46 = vpop.xlane.xlu1 %1438  ;;  %v1532_v6 = vand.u32 65535, %v8076_v56 }
 0x27d   :  { %8067 = vst [vmem:[#allocation52_spill] sm:$0xff] %v5768_v46  ;;  %vm1440_vm13 = vcmp.eq.f32.partialorder %v8068_v42, %v5768_v46  ;;  %v1504_v42 = vand.u32 65535, %v8073_v36 }
 0x27e   :  { %v1441_v40 = vsel %vm1440_vm13, %v1436_v14, inf  ;;  %v1464_v14 = vcvt.s32.f32 %v1462_v27  ;;  %v8079_v27 = vld [vmem:[#allocation41_spill] sm:$0xff]  ;;  %v1534_v56 = vcvt.s32.f32 %v1532_v6 }
 0x27f   :  { %1442 = vmin.xlane.f32.xlu0 %v1441_v40  ;;  %2012 = vmin.xlane.f32.xlu1 %v5772_v13  ;;  %v5787_v40 = vpop.xlane.xlu0 %1522  ;;  %v8075_v13 = vld [vmem:[#allocation40_spill] sm:$0xff]  ;;  %vm1496_vm2 = vcmp.eq.f32.partialorder %v8079_v27, %v5776_v18 }
 0x280   :  { %v5778_v57 = vpop.xlane.xlu1 %1480  ;;  %v1490_v46 = vand.u32 65535, %v8075_v13 }
 0x281   :  { %8071 = vst [vmem:[#allocation54_spill] sm:$0xff] %v5778_v57  ;;  %vm1482_vm14 = vcmp.eq.f32.partialorder %v8072_v63, %v5778_v57  ;;  %v8078_v63 = vld [vmem:[#allocation61_spill] sm:$0xff] }
 0x282   :  { %v1483_v53 = vsel %vm1482_vm14, %v1478_v8, inf  ;;  %v1506_v8 = vcvt.s32.f32 %v1504_v42  ;;  %v1492_v57 = vcvt.s32.f32 %v1490_v46 }
 0x283   :  { %1484 = vmin.xlane.f32.xlu0 %v1483_v53 }
 0x284   :  { %v5783_v0 = vpop.xlane.xlu1 %1466 }
 0x285   :  { %8074 = vst [vmem:[#allocation55_spill] sm:$0xff] %v5783_v0  ;;  %vm1468_vm15 = vcmp.eq.f32.partialorder %v5343_v26, %v5783_v0  ;;  %v8080_v26 = vld [vmem:[#allocation42_spill] sm:$0xff] }
 0x286   :  { %v1469_v22 = vsel %vm1468_vm15, %v1464_v14, inf  ;;  %v1518_v53 = vand.u32 65535, %v8080_v26  ;;  %v8081_v0 = vld [vmem:[#allocation62_spill] sm:$0xff]  ;;  %v8084_v26 = vld [vmem:[#allocation63_spill] sm:$0xff] }
 0x287   :  { %1470 = vmin.xlane.f32.xlu0 %v1469_v22  ;;  %v1560_v14 = vand.u32 65535, %v8081_v0  ;;  %v5799_v22 = vpop.xlane.xlu0 %1550  ;;  %v1588_v0 = vand.u32 65535, %v8084_v26 }
 0x288   :  { %v5791_v7 = vpop.xlane.xlu1 %1508  ;;  %v1520_v54 = vcvt.s32.f32 %v1518_v53 }
 0x289   :  { %8077 = vst [vmem:[#allocation56_spill] sm:$0xff] %v5791_v7  ;;  %vm1510_vm1 = vcmp.eq.f32.partialorder %v8078_v63, %v5791_v7  ;;  %v1497_v63 = vsel %vm1496_vm2, %v1492_v57, inf  ;;  %v1562_v7 = vcvt.s32.f32 %v1560_v14  ;;  %v8085_v57 = vld [vmem:[#allocation45_spill] sm:$0xff]  ;;  %v1590_v14 = vcvt.s32.f32 %v1588_v0 }
 0x28a   :  { %v1511_v36 = vsel %vm1510_vm1, %v1506_v8, inf  ;;  %v8082_v8 = vld [vmem:[#allocation43_spill] sm:$0xff]  ;;  %vm1552_vm6 = vcmp.eq.f32.partialorder %v8085_v57, %v5799_v22 }
 0x28b   :  { %1512 = vmin.xlane.f32.xlu0 %v1511_v36  ;;  %vm1524_vm4 = vcmp.eq.f32.partialorder %v8082_v8, %v5787_v40  ;;  %v8083_v36 = vld [vmem:[#allocation44_spill] sm:$0xff]  ;;  %v5813_v46 = vpop.xlane.xlu0 %1578 }
 0x28c   :  { %v5801_v13 = vpop.xlane.xlu1 %1536  ;;  %v1546_v27 = vand.u32 65535, %v8083_v36  ;;  %v1525_v6 = vsel %vm1524_vm4, %v1520_v54, inf  ;;  %v8088_v54 = vld [vmem:[#allocation48_spill] sm:$0xff] }
 0x28d   :  { %vm1538_vm3 = vcmp.eq.f32.partialorder %v5363_v10, %v5801_v13  ;;  %v1602_v26 = vand.u32 65535, %v8088_v54 }
 0x28e   :  { %v1539_v42 = vsel %vm1538_vm3, %v1534_v56, inf  ;;  %v8086_v56 = vld [vmem:[#allocation46_spill] sm:$0xff]  ;;  %v1548_v53 = vcvt.s32.f32 %v1546_v27 }
 0x28f   :  { %1540 = vmin.xlane.f32.xlu1 %v1539_v42  ;;  %1498 = vmin.xlane.f32.xlu0 %v1497_v63  ;;  %v1574_v42 = vand.u32 65535, %v8086_v56  ;;  %v1616_v63 = vand.u32 65535, %v5375_v29  ;;  %v5827_v57 = vpop.xlane.xlu0 %1606  ;;  %v1604_v54 = vcvt.s32.f32 %v1602_v26 }
 0x290   :  { %v5809_v18 = vpop.xlane.xlu1 %1564  ;;  %v1553_v36 = vsel %vm1552_vm6, %v1548_v53, inf  ;;  %v8091_v53 = vld [vmem:[#allocation65_spill] sm:$0xff] }
 0x291   :  { %vm1566_vm5 = vcmp.eq.f32.partialorder %v5371_v52, %v5809_v18  ;;  %v1618_v0 = vcvt.s32.f32 %v1616_v63  ;;  %v1576_v27 = vcvt.s32.f32 %v1574_v42 }
 0x292   :  { %v1567_v10 = vsel %vm1566_vm5, %v1562_v7, inf  ;;  %v8087_v7 = vld [vmem:[#allocation47_spill] sm:$0xff] }
 0x293   :  { %1568 = vmin.xlane.f32.xlu1 %v1567_v10  ;;  %1526 = vmin.xlane.f32.xlu0 %v1525_v6  ;;  %vm1580_vm8 = vcmp.eq.f32.partialorder %v8087_v7, %v5813_v46  ;;  %v8089_v10 = vld [vmem:[#allocation64_spill] sm:$0xff] }
 0x294   :  { %v5819_v8 = vpop.xlane.xlu1 %1592  ;;  %v1644_v6 = vand.u32 65535, %v8089_v10  ;;  %v1581_v56 = vsel %vm1580_vm8, %v1576_v27, inf }
 0x295   :  { %vm1594_vm7 = vcmp.eq.f32.partialorder %v5382_v59, %v5819_v8 }
 0x296   :  { %v1595_v52 = vsel %vm1594_vm7, %v1590_v14, inf  ;;  %v8090_v14 = vld [vmem:[#allocation49_spill] sm:$0xff]  ;;  %v1646_v7 = vcvt.s32.f32 %v1644_v6 }
 0x297   :  { %1596 = vmin.xlane.f32.xlu1 %v1595_v52  ;;  %1554 = vmin.xlane.f32.xlu0 %v1553_v36  ;;  %vm1608_vm10 = vcmp.eq.f32.partialorder %v8090_v14, %v5827_v57  ;;  %v1630_v52 = vand.u32 65535, %v8091_v53  ;;  %v8094_v53 = vld [vmem:[#allocation68_spill] sm:$0xff] }
 0x298   :  { %v5829_v29 = vpop.xlane.xlu1 %1620  ;;  %v1609_v63 = vsel %vm1608_vm10, %v1604_v54, inf  ;;  %v1686_v54 = vand.u32 65535, %v5437_v49 }
 0x299   :  { %vm1622_vm9 = vcmp.eq.f32.partialorder %v5393_v31, %v5829_v29  ;;  %v1672_v31 = vand.u32 65535, %v5405_v33  ;;  %v1700_v33 = vand.u32 65535, %v8094_v53  ;;  %v8096_v53 = vld [vmem:[#allocation69_spill] sm:$0xff] }
 0x29a   :  { %v1623_v59 = vsel %vm1622_vm9, %v1618_v0, inf  ;;  %v1632_v0 = vcvt.s32.f32 %v1630_v52 }
 0x29b   :  { %1624 = vmin.xlane.f32.xlu1 %v1623_v59  ;;  %1582 = vmin.xlane.f32.xlu0 %v1581_v56  ;;  %v8092_v59 = vld [vmem:[#allocation66_spill] sm:$0xff]  ;;  %v1674_v56 = vcvt.s32.f32 %v1672_v31 }
 0x29c   :  { %v5836_v36 = vpop.xlane.xlu1 %1648  ;;  %v1658_v6 = vand.u32 65535, %v8092_v59 }
 0x29d   :  { %vm1650_vm11 = vcmp.eq.f32.partialorder %v5402_v11, %v5836_v36  ;;  %v8093_v11 = vld [vmem:[#allocation67_spill] sm:$0xff] }
 0x29e   :  { %v1651_v42 = vsel %vm1650_vm11, %v1646_v7, inf  ;;  %v1660_v52 = vcvt.s32.f32 %v1658_v6 }
 0x29f   :  { %1652 = vmin.xlane.f32.xlu1 %v1651_v42  ;;  %1610 = vmin.xlane.f32.xlu0 %v1609_v63  ;;  %v1151_v42 = vcvt.f32.s32 %v5445_v60 }
 0x2a0   :  { %v5841_v10 = vpop.xlane.xlu1 %1634 }
 0x2a1   :  { %vm1636_vm12 = vcmp.eq.f32.partialorder %v5413_v23, %v5841_v10 }
 0x2a2   :  { %v1637_v27 = vsel %vm1636_vm12, %v1632_v0, inf  ;;  %v1702_v0 = vcvt.s32.f32 %v1700_v33 }
 0x2a3   :  { %1638 = vmin.xlane.f32.xlu0 %v1637_v27  ;;  %v1137_v27 = vcvt.f32.s32 %v5461_v20 }
 0x2a4   :  { %v5846_v26 = vpop.xlane.xlu1 %1676 }
 0x2a5   :  { %vm1678_vm13 = vcmp.eq.f32.partialorder %v8093_v11, %v5846_v26  ;;  %v1138_v60 = vshll.u32 %v1137_v27, 16 }
 0x2a6   :  { %v1679_v14 = vsel %vm1678_vm13, %v1674_v56, inf  ;;  %v1152_v56 = vshll.u32 %v1151_v42, 16 }
 0x2a7   :  { %1680 = vmin.xlane.f32.xlu1 %v1679_v14  ;;  %v1688_v14 = vcvt.s32.f32 %v1686_v54  ;;  %v1165_v54 = vcvt.f32.s32 %v5491_v12 }
 0x2a8   :  { %v5851_v7 = vpop.xlane.xlu1 %1662 }
 0x2a9   :  { %vm1664_vm14 = vcmp.eq.f32.partialorder %v5434_v32, %v5851_v7  ;;  %v1728_v32 = vand.u32 65535, %v5453_v3 }
 0x2aa   :  { %v1665_v23 = vsel %vm1664_vm14, %v1660_v52, inf }
 0x2ab   :  { %1666 = vmin.xlane.f32.xlu0 %v1665_v23 }
 0x2ac   :  { %v5857_v63 = vpop.xlane.xlu1 %1704  ;;  %v1149_v31 = vpop.xlane.xlu0 %1148 }
 0x2ad   :  { %8095 = vst [vmem:[#allocation57_spill] sm:$0xff] %v5857_v63  ;;  %vm1706_vm15 = vcmp.eq.f32.partialorder %v5448_v50, %v5857_v63  ;;  %v1150_v59 = vcvt.f32.s32 %v1149_v31  ;;  %v8099_v50 = vld [vmem:[#allocation70_spill] sm:$0xff]  ;;  %v1730_v63 = vcvt.s32.f32 %v1728_v32 }
 0x2ae   :  { %v1707_v6 = vsel %vm1706_vm15, %v1702_v0, inf  ;;  %v1714_v31 = vand.u32 65535, %v8099_v50  ;;  %v8100_v0 = vld [vmem:[#allocation71_spill] sm:$0xff] }
 0x2af   :  { %1708 = vmin.xlane.f32.xlu1 %v1707_v6  ;;  %v5867_v52 = vadd.s32 %v1152_v56, %v1150_v59  ;;  %v1179_v3 = vcvt.f32.s32 %v8100_v0  ;;  %v7833_v59 = vmov 1.0  }
 0x2b0   :  { %v5863_v11 = vpop.xlane.xlu1 %1690  ;;  %v1135_v49 = vpop.xlane.xlu0 %1134 }
 0x2b1   :  { %vm1692_vm1 = vcmp.eq.f32.partialorder %v8096_v53, %v5863_v11  ;;  %v1136_v33 = vcvt.f32.s32 %v1135_v49  ;;  %8097 = vst [vmem:[#allocation58_spill] sm:$0xff] %v5867_v52  ;;  %vm7847_vm4 = vcmp.eq.s32.totalorder %v5021_v9, %v5867_v52  ;;  %v1180_v32 = vshll.u32 %v1179_v3, 16 }
 0x2b2   :  { %v1693_v20 = vsel %vm1692_vm1, %v1688_v14, inf  ;;  %v1166_v53 = vshll.u32 %v1165_v54, 16  ;;  %v8106_v54 = vld [vmem:[#allocation25_spill] sm:$0xff] }
 0x2b3   :  { %v5869_v23 = vadd.s32 %v1138_v60, %v1136_v33  ;;  %1694 = vmin.xlane.f32.xlu0 %v1693_v20  ;;  %v1716_v60 = vcvt.s32.f32 %v1714_v31  ;;  %v8102_v33 = vld [vmem:[#allocation11_spill] sm:$0xff]  ;;  %v1193_v31 = vcvt.f32.s32 %v5521_v5 }
 0x2b4   :  { %v5873_v42 = vpop.xlane.xlu1 %1732  ;;  %v1177_v6 = vpop.xlane.xlu0 %1176 }
 0x2b5   :  { %8098 = vst [vmem:[#allocation59_spill] sm:$0xff] %v5869_v23  ;;  %vm1734_vm2 = vcmp.eq.f32.partialorder %v5478_v45, %v5873_v42  ;;  %vm7846_vm3 = vcmp.eq.s32.totalorder %v5021_v9, %v5869_v23  ;;  %v1178_v27 = vcvt.f32.s32 %v1177_v6  ;;  %v8101_v45 = vld [vmem:[#allocation72_spill] sm:$0xff] }
 0x2b6   :  { %4183 = vmatprep.mubr.msk.f32.mxu1 %vm7846_vm3, %v7833_v59  ;;  %v1735_v56 = vsel %vm1734_vm2, %v1730_v63, inf  ;;  %v1756_v12 = vand.u32 65535, %v8101_v45  ;;  %v8105_v6 = vld [vmem:[#allocation24_spill] sm:$0xff]  ;;  %v1207_v45 = vcvt.f32.s32 %v5507_v25 }
 0x2b7   :  { %1736 = vmin.xlane.f32.xlu1 %v1735_v56  ;;  %4184 = vmatmul.mubr.msk.f32.vlgmr.msra.gmra.mxu1 %vm7847_vm4, %v7833_v59  ;;  %v5895_v20 = vadd.s32 %v1180_v32, %v1178_v27  ;;  %v1742_v56 = vand.u32 65535, %v8105_v6  ;;  %v8107_v32 = vmov 1.0   ;;  %v8108_v25 = vld [vmem:[#allocation12_spill] sm:$0xff] }
 0x2b8   :  { %v5891_v49 = vpop.xlane.xlu1 %1718  ;;  %v1163_v14 = vpop.xlane.xlu0 %1162  ;;  %v1758_v23 = vcvt.s32.f32 %v1756_v12  ;;  %v1784_v5 = vand.u32 65535, %v8108_v25  ;;  %v1208_v12 = vshll.u32 %v1207_v45, 16 }
 0x2b9   :  { %vm1720_vm5 = vcmp.eq.f32.partialorder %v8102_v33, %v5891_v49  ;;  %v1164_v63 = vcvt.f32.s32 %v1163_v14  ;;  %8103 = vst [vmem:[#allocation40_spill] sm:$0xff] %v5895_v20  ;;  %vm7858_vm8 = vcmp.eq.s32.totalorder %v5021_v9, %v5895_v20  ;;  %v1194_v33 = vshll.u32 %v1193_v31, 16 }
 0x2ba   :  { %v1721_v50 = vsel %vm1720_vm5, %v1716_v60, inf  ;;  %v1786_v52 = vcvt.s32.f32 %v1784_v5 }
 0x2bb   :  { %v5897_v0 = vadd.s32 %v1166_v53, %v1164_v63  ;;  %1722 = vmin.xlane.f32.xlu0 %v1721_v50  ;;  %v1744_v53 = vcvt.s32.f32 %v1742_v56  ;;  %v1221_v56 = vcvt.f32.s32 %v5553_v39 }
 0x2bc   :  { %v5901_v3 = vpop.xlane.xlu1 %1760  ;;  %v1205_v59 = vpop.xlane.xlu0 %1204 }
 0x2bd   :  { %8104 = vst [vmem:[#allocation60_spill] sm:$0xff] %v5897_v0  ;;  %vm1762_vm6 = vcmp.eq.f32.partialorder %v8106_v54, %v5901_v3  ;;  %vm7848_vm7 = vcmp.eq.s32.totalorder %v5021_v9, %v5897_v0  ;;  %v1206_v27 = vcvt.f32.s32 %v1205_v59  ;;  %v1770_v54 = vand.u32 65535, %v5529_v35  ;;  %v8116_v0 = vld [vmem:[#allocation16_spill] sm:$0xff] }
 0x2be   :  { %4186 = vmatprep.mubr.msk.f32.mxu1 %vm7848_vm7, %v8107_v32  ;;  %v1763_v14 = vsel %vm1762_vm6, %v1758_v23, inf }
 0x2bf   :  { %1764 = vmin.xlane.f32.xlu1 %v1763_v14  ;;  %4187 = vmatmul.mubr.msk.f32.gmra.mxu1 %vm7858_vm8, %v8107_v32  ;;  %v5923_v63 = vadd.s32 %v1208_v12, %v1206_v27  ;;  %v1235_v14 = vcvt.f32.s32 %v5537_v44  ;;  %v8109_v44 = vld [vmem:[#allocation27_spill] sm:$0xff]  ;;  %v1772_v5 = vcvt.s32.f32 %v1770_v54  ;;  %v1222_v12 = vshll.u32 %v1221_v56, 16  ;;  %v8112_v56 = vld [vmem:[#allocation29_spill] sm:$0xff] }
 0x2c0   :  { %v5919_v60 = vpop.xlane.xlu1 %1746  ;;  %v1191_v59 = vpop.xlane.xlu0 %1190  ;;  %v1249_v54 = vcvt.f32.s32 %v5583_v38  ;;  %v8113_v38 = vld [vmem:[#allocation14_spill] sm:$0xff] }
 0x2c1   :  { %vm1748_vm9 = vcmp.eq.f32.partialorder %v5524_v30, %v5919_v60  ;;  %v1192_v23 = vcvt.f32.s32 %v1191_v59  ;;  %vm7868_vm12 = vcmp.eq.s32.totalorder %v5021_v9, %v5923_v63  ;;  %v1236_v39 = vshll.u32 %v1235_v14, 16 }
 0x2c2   :  { %v1749_v50 = vsel %vm1748_vm9, %v1744_v53, inf }
 0x2c3   :  { %v5925_v6 = vadd.s32 %v1194_v33, %v1192_v23  ;;  %1750 = vmin.xlane.f32.xlu0 %v1749_v50  ;;  %v1798_v23 = vand.u32 65535, %v5561_v16  ;;  %v8110_v50 = vld [vmem:[#allocation13_spill] sm:$0xff] }
 0x2c4   :  { %v5929_v45 = vpop.xlane.xlu1 %1788  ;;  %v1233_v25 = vpop.xlane.xlu0 %1232 }
 0x2c5   :  { %vm1790_vm10 = vcmp.eq.f32.partialorder %v5540_v58, %v5929_v45  ;;  %vm7860_vm11 = vcmp.eq.s32.totalorder %v5021_v9, %v5925_v6  ;;  %v1234_v30 = vcvt.f32.s32 %v1233_v25  ;;  %v1812_v58 = vand.u32 65535, %v8109_v44 }
 0x2c6   :  { %4189 = vmatprep.mubr.msk.f32.mxu1 %vm7860_vm11, %v8107_v32  ;;  %v1791_v35 = vsel %vm1790_vm10, %v1786_v52, inf  ;;  %v1263_v25 = vcvt.f32.s32 %v8110_v50 }
 0x2c7   :  { %1792 = vmin.xlane.f32.xlu1 %v1791_v35  ;;  %4190 = vmatmul.mubr.msk.f32.gmra.mxu1 %vm7868_vm12, %v8107_v32  ;;  %v5951_v59 = vadd.s32 %v1236_v39, %v1234_v30  ;;  %v1814_v44 = vcvt.s32.f32 %v1812_v58  ;;  %v1840_v30 = vand.u32 65535, %v8113_v38  ;;  %v1291_v38 = vcvt.f32.s32 %v8116_v0 }
 0x2c8   :  { %v5947_v31 = vpop.xlane.xlu1 %1774  ;;  %v1219_v27 = vpop.xlane.xlu0 %1218  ;;  %v1264_v58 = vshll.u32 %v1263_v25, 16 }
 0x2c9   :  { %vm1776_vm13 = vcmp.eq.f32.partialorder %v5556_v41, %v5947_v31  ;;  %v1220_v52 = vcvt.f32.s32 %v1219_v27  ;;  %vm7872_vm1 = vcmp.eq.s32.totalorder %v5021_v9, %v5951_v59  ;;  %v1842_v20 = vcvt.s32.f32 %v1840_v30 }
 0x2ca   :  { %v1777_v53 = vsel %vm1776_vm13, %v1772_v5, inf  ;;  %v1800_v5 = vcvt.s32.f32 %v1798_v23  ;;  %v1277_v23 = vcvt.f32.s32 %v5613_v61  ;;  %v8119_v61 = vld [vmem:[#allocation18_spill] sm:$0xff]  ;;  %v1292_v30 = vshll.u32 %v1291_v38, 16 }
 0x2cb   :  { %v5953_v33 = vadd.s32 %v1222_v12, %v1220_v52  ;;  %1778 = vmin.xlane.f32.xlu0 %v1777_v53  ;;  %v1250_v12 = vshll.u32 %v1249_v54, 16  ;;  %v8114_v52 = vld [vmem:[#allocation31_spill] sm:$0xff]  ;;  %v8118_v54 = vld [vmem:[#allocation17_spill] sm:$0xff]  ;;  %v1868_v0 = vand.u32 65535, %v8119_v61 }
 0x2cc   :  { %v5957_v14 = vpop.xlane.xlu1 %1816  ;;  %v1261_v35 = vpop.xlane.xlu0 %1260 }
 0x2cd   :  { %8111 = vst [vmem:[#allocation61_spill] sm:$0xff] %v5957_v14  ;;  %vm1818_vm14 = vcmp.eq.f32.partialorder %v8112_v56, %v5957_v14  ;;  %vm7870_vm15 = vcmp.eq.s32.totalorder %v5021_v9, %v5953_v33  ;;  %v1262_v41 = vcvt.f32.s32 %v1261_v35  ;;  %v8115_v56 = vld [vmem:[#allocation15_spill] sm:$0xff] }
 0x2ce   :  { %4192 = vmatprep.mubr.msk.f32.mxu1 %vm7870_vm15, %v8107_v32  ;;  %v1819_v16 = vsel %vm1818_vm14, %v1814_v44, inf }
 0x2cf   :  { %1820 = vmin.xlane.f32.xlu1 %v1819_v16  ;;  %4193 = vmatmul.mubr.msk.f32.gmra.mxu1 %vm7872_vm1, %v8107_v32  ;;  %v5979_v50 = vadd.s32 %v1264_v58, %v1262_v41  ;;  %v1826_v16 = vand.u32 65535, %v8115_v56  ;;  %v8120_v56 = vld [vmem:[#allocation35_spill] sm:$0xff] }
 0x2d0   :  { %v5975_v39 = vpop.xlane.xlu1 %1802  ;;  %v1247_v27 = vpop.xlane.xlu0 %1246 }
 0x2d1   :  { %vm1804_vm2 = vcmp.eq.f32.partialorder %v8114_v52, %v5975_v39  ;;  %v1248_v53 = vcvt.f32.s32 %v1247_v27  ;;  %vm7890_vm9 = vcmp.eq.s32.totalorder %v5021_v9, %v5979_v50 }
 0x2d2   :  { %v1805_v35 = vsel %vm1804_vm2, %v1800_v5, inf  ;;  %v1828_v5 = vcvt.s32.f32 %v1826_v16  ;;  %v1305_v16 = vcvt.f32.s32 %v5641_v21 }
 0x2d3   :  { %v5981_v44 = vadd.s32 %v1250_v12, %v1248_v53  ;;  %1806 = vmin.xlane.f32.xlu0 %v1805_v35  ;;  %v1278_v12 = vshll.u32 %v1277_v23, 16 }
 0x2d4   :  { %v5985_v25 = vpop.xlane.xlu1 %1844  ;;  %v1289_v14 = vpop.xlane.xlu0 %1288 }
 0x2d5   :  { %8117 = vst [vmem:[#allocation41_spill] sm:$0xff] %v5985_v25  ;;  %vm1846_vm5 = vcmp.eq.f32.partialorder %v8118_v54, %v5985_v25  ;;  %vm7884_vm6 = vcmp.eq.s32.totalorder %v5021_v9, %v5981_v44  ;;  %v1290_v41 = vcvt.f32.s32 %v1289_v14  ;;  %v1854_v54 = vand.u32 65535, %v8120_v56 }
 0x2d6   :  { %4195 = vmatprep.mubr.msk.f32.mxu1 %vm7884_vm6, %v8107_v32  ;;  %v1847_v58 = vsel %vm1846_vm5, %v1842_v20, inf  ;;  %v1870_v25 = vcvt.s32.f32 %v1868_v0 }
 0x2d7   :  { %1848 = vmin.xlane.f32.xlu1 %v1847_v58  ;;  %4196 = vmatmul.mubr.msk.f32.gmra.mxu1 %vm7890_vm9, %v8107_v32  ;;  %v6007_v52 = vadd.s32 %v1292_v30, %v1290_v41  ;;  %v1319_v58 = vcvt.f32.s32 %v5627_v24  ;;  %v1856_v0 = vcvt.s32.f32 %v1854_v54  ;;  %v1306_v30 = vshll.u32 %v1305_v16, 16 }
 0x2d8   :  { %v6003_v27 = vpop.xlane.xlu1 %1830  ;;  %v1275_v14 = vpop.xlane.xlu0 %1274  ;;  %v1333_v54 = vcvt.f32.s32 %v5669_v4 }
 0x2d9   :  { %vm1832_vm10 = vcmp.eq.f32.partialorder %v5616_v47, %v6003_v27  ;;  %v1276_v20 = vcvt.f32.s32 %v1275_v14  ;;  %vm2033_vm2 = vcmp.eq.s32.totalorder %v5021_v9, %v6007_v52  ;;  %v1320_v24 = vshll.u32 %v1319_v58, 16 }
 0x2da   :  { %v1833_v53 = vsel %vm1832_vm10, %v1828_v5, inf }
 0x2db   :  { %v6009_v35 = vadd.s32 %v1278_v12, %v1276_v20  ;;  %1834 = vmin.xlane.f32.xlu0 %v1833_v53  ;;  %v8123_v20 = vld [vmem:[#allocation36_spill] sm:$0xff] }
 0x2dc   :  { %v6013_v38 = vpop.xlane.xlu1 %1872  ;;  %v1317_v61 = vpop.xlane.xlu0 %1316  ;;  %v1882_v53 = vand.u32 65535, %v8123_v20  ;;  %v1375_v20 = vcvt.f32.s32 %v5682_v37 }
 0x2dd   :  { %8121 = vst [vmem:[#allocation42_spill] sm:$0xff] %v6013_v38  ;;  %vm1874_vm13 = vcmp.eq.f32.partialorder %v5630_v48, %v6013_v38  ;;  %vm7892_vm14 = vcmp.eq.s32.totalorder %v5021_v9, %v6009_v35  ;;  %v1318_v47 = vcvt.f32.s32 %v1317_v61  ;;  %v1896_v48 = vand.u32 65535, %v5635_v19 }
 0x2de   :  { %4198 = vmatprep.mubr.msk.f32.mxu1 %vm7892_vm14, %v8107_v32  ;;  %v1875_v23 = vsel %vm1874_vm13, %v1870_v25, inf  ;;  %v1347_v19 = vcvt.f32.s32 %v5655_v43  ;;  %v8125_v43 = vld [vmem:[#allocation19_spill] sm:$0xff] }
 0x2df   :  { %1876 = vmin.xlane.f32.xlu1 %v1875_v23  ;;  %4199 = vmatmul.mubr.msk.f32.gmra.mxu1 %vm2033_vm2, %v8107_v32  ;;  %v6035_v14 = vadd.s32 %v1320_v24, %v1318_v47  ;;  %v1898_v61 = vcvt.s32.f32 %v1896_v48  ;;  %v1884_v48 = vcvt.s32.f32 %v1882_v53  ;;  %v1334_v24 = vshll.u32 %v1333_v54, 16 }
 0x2e0   :  { %v6031_v21 = vpop.xlane.xlu1 %1858  ;;  %v1303_v41 = vpop.xlane.xlu0 %1302  ;;  %v1348_v4 = vshll.u32 %v1347_v19, 16  ;;  %v1361_v53 = vcvt.f32.s32 %v5695_v34  ;;  %v1376_v34 = vshll.u32 %v1375_v20, 16 }
 0x2e1   :  { %8122 = vst [vmem:[#allocation62_spill] sm:$0xff] %v6031_v21  ;;  %vm1860_vm5 = vcmp.eq.f32.partialorder %v5644_v55, %v6031_v21  ;;  %v1304_v25 = vcvt.f32.s32 %v1303_v41 }
 0x2e2   :  { %v1861_v5 = vsel %vm1860_vm5, %v1856_v0, inf  ;;  %vm2035_vm5 = vcmp.eq.s32.totalorder %v5021_v9, %v6035_v14 }
 0x2e3   :  { %v6037_v12 = vadd.s32 %v1306_v30, %v1304_v25  ;;  %1862 = vmin.xlane.f32.xlu0 %v1861_v5  ;;  %v1910_v5 = vand.u32 65535, %v5677_v51 }
 0x2e4   :  { %v6041_v56 = vpop.xlane.xlu1 %1900  ;;  %v1345_v58 = vpop.xlane.xlu0 %1344 }
 0x2e5   :  { %8124 = vst [vmem:[#allocation43_spill] sm:$0xff] %v6041_v56  ;;  %vm1902_vm10 = vcmp.eq.f32.partialorder %v5658_v62, %v6041_v56  ;;  %vm2034_vm13 = vcmp.eq.s32.totalorder %v5021_v9, %v6037_v12  ;;  %v1346_v55 = vcvt.f32.s32 %v1345_v58  ;;  %v1924_v62 = vand.u32 65535, %v8125_v43 }
 0x2e6   :  { %4201 = vmatprep.mubr.msk.f32.mxu1 %vm2034_vm13, %v8107_v32  ;;  %v1903_v16 = vsel %vm1902_vm10, %v1898_v61, inf  ;;  %v1362_v43 = vshll.u32 %v1361_v53, 16  ;;  %v8133_v53 = vld [vmem:[#allocation39_spill] sm:$0xff] }
 0x2e7   :  { %1904 = vmin.xlane.f32.xlu1 %v1903_v16  ;;  %4202 = vmatmul.mubr.msk.f32.gmra.mxu1 %vm2035_vm5, %v8107_v32  ;;  %v6063_v0 = vadd.s32 %v1348_v4, %v1346_v55  ;;  %v1926_v61 = vcvt.s32.f32 %v1924_v62  ;;  %v1912_v16 = vcvt.s32.f32 %v1910_v5  ;;  %v8130_v62 = vld [vmem:[#allocation38_spill] sm:$0xff]  ;;  %v1389_v5 = vcvt.f32.s32 %v5721_v1 }
 0x2e8   :  { %v6059_v47 = vpop.xlane.xlu1 %1886  ;;  %v1331_v23 = vpop.xlane.xlu0 %1330 }
 0x2e9   :  { %8126 = vst [vmem:[#allocation44_spill] sm:$0xff] %v6059_v47  ;;  %vm1888_vm10 = vcmp.eq.f32.partialorder %v5672_v17, %v6059_v47  ;;  %v1332_v41 = vcvt.f32.s32 %v1331_v23  ;;  %v8148_v47 = vld [vmem:[#allocation34_spill] sm:$0xff] }
 0x2ea   :  { %v1889_v30 = vsel %vm1888_vm10, %v1884_v48, inf  ;;  %vm2037_vm10 = vcmp.eq.s32.totalorder %v5021_v9, %v6063_v0 }
 0x2eb   :  { %v6065_v25 = vadd.s32 %v1334_v24, %v1332_v41  ;;  %1890 = vmin.xlane.f32.xlu0 %v1889_v30  ;;  %v8131_v41 = vld [vmem:[#allocation20_spill] sm:$0xff] }
 0x2ec   :  { %v6069_v19 = vpop.xlane.xlu1 %1928  ;;  %v1373_v58 = vpop.xlane.xlu0 %1372  ;;  %v1938_v30 = vand.u32 65535, %v8131_v41 }
 0x2ed   :  { %8127 = vst [vmem:[#allocation63_spill] sm:$0xff] %v6069_v19  ;;  %vm1930_vm0 = vcmp.eq.f32.partialorder %v5685_v2, %v6069_v19  ;;  %vm7875_vm3 = vcmp.eq.s32.totalorder %v5021_v9, %v6065_v25  ;;  %v1374_v17 = vcvt.f32.s32 %v1373_v58  ;;  %v8128_v2 = vld [vmem:[#allocation37_spill] sm:$0xff]  ;;  %v1403_v58 = vcvt.f32.s32 %v5708_v28 }
 0x2ee   :  { %4204 = vmatprep.mubr.msk.f32.mxu1 %vm7875_vm3, %v8107_v32  ;;  %v1931_v51 = vsel %vm1930_vm0, %v1926_v61, inf  ;;  %v1952_v37 = vand.u32 65535, %v8128_v2  ;;  %v8134_v28 = vld [vmem:[#allocation21_spill] sm:$0xff] }
 0x2ef   :  { %1932 = vmin.xlane.f32.xlu1 %v1931_v51  ;;  %4205 = vmatmul.mubr.msk.f32.gmra.mxu1 %vm2037_vm10, %v8107_v32  ;;  %v6091_v23 = vadd.s32 %v1376_v34, %v1374_v17  ;;  %v1980_v1 = vand.u32 65535, %v8134_v28 }
 0x2f0   :  { %v6087_v54 = vpop.xlane.xlu1 %1914  ;;  %v1359_v55 = vpop.xlane.xlu0 %1358  ;;  %v1954_v51 = vcvt.s32.f32 %v1952_v37  ;;  %v1404_v37 = vshll.u32 %v1403_v58, 16 }
 0x2f1   :  { %8129 = vst [vmem:[#allocation45_spill] sm:$0xff] %v6087_v54  ;;  %vm1916_vm0 = vcmp.eq.f32.partialorder %v8130_v62, %v6087_v54  ;;  %v1360_v4 = vcvt.f32.s32 %v1359_v55  ;;  %v8140_v54 = vld [vmem:[#allocation26_spill] sm:$0xff] }
 0x2f2   :  { %v1917_v48 = vsel %vm1916_vm0, %v1912_v16, inf  ;;  %vm7852_vm0 = vcmp.eq.s32.totalorder %v5021_v9, %v6091_v23  ;;  %v1940_v16 = vcvt.s32.f32 %v1938_v30  ;;  %v8139_v30 = vld [vmem:[#allocation30_spill] sm:$0xff] }
 0x2f3   :  { %v6093_v24 = vadd.s32 %v1362_v43, %v1360_v4  ;;  %1918 = vmin.xlane.f32.xlu0 %v1917_v48  ;;  %v1390_v43 = vshll.u32 %v1389_v5, 16  ;;  %v1417_v5 = vcvt.f32.s32 %v8139_v30  ;;  %v8144_v30 = vld [vmem:[#allocation50_spill] sm:$0xff] }
 0x2f4   :  { %v6097_v20 = vpop.xlane.xlu1 %1956  ;;  %v1401_v61 = vpop.xlane.xlu0 %1400 }
 0x2f5   :  { %8132 = vst [vmem:[#allocation46_spill] sm:$0xff] %v6097_v20  ;;  %vm1958_vm4 = vcmp.eq.f32.partialorder %v8133_v53, %v6097_v20  ;;  %vm7851_vm7 = vcmp.eq.s32.totalorder %v5021_v9, %v6093_v24  ;;  %v1402_v17 = vcvt.f32.s32 %v1401_v61  ;;  %v8136_v61 = vld [vmem:[#allocation22_spill] sm:$0xff]  ;;  %v8137_v53 = vld [vmem:[#allocation23_spill] sm:$0xff]  ;;  %v1982_v20 = vcvt.s32.f32 %v1980_v1 }
 0x2f6   :  { %4207 = vmatprep.mubr.msk.f32.mxu1 %vm7851_vm7, %v8107_v32  ;;  %v1959_v2 = vsel %vm1958_vm4, %v1954_v51, inf  ;;  %v1966_v51 = vand.u32 65535, %v8136_v61 }
 0x2f7   :  { %1960 = vmin.xlane.f32.xlu1 %v1959_v2  ;;  %4208 = vmatmul.mubr.msk.f32.gmra.mxu1 %vm7852_vm0, %v8107_v32  ;;  %v6119_v4 = vadd.s32 %v1404_v37, %v1402_v17  ;;  %v1431_v2 = vcvt.f32.s32 %v8137_v53 }
 0x2f8   :  { %v6115_v34 = vpop.xlane.xlu1 %1942  ;;  %v1387_v55 = vpop.xlane.xlu0 %1386 }
 0x2f9   :  { %8135 = vst [vmem:[#allocation47_spill] sm:$0xff] %v6115_v34  ;;  %vm1944_vm4 = vcmp.eq.f32.partialorder %v5724_v15, %v6115_v34  ;;  %v1388_v62 = vcvt.f32.s32 %v1387_v55  ;;  %v1432_v37 = vshll.u32 %v1431_v2, 16 }
 0x2fa   :  { %v1945_v48 = vsel %vm1944_vm4, %v1940_v16, inf  ;;  %vm7859_vm4 = vcmp.eq.s32.totalorder %v5021_v9, %v6119_v4 }
 0x2fb   :  { %v6121_v41 = vadd.s32 %v1390_v43, %v1388_v62  ;;  %1946 = vmin.xlane.f32.xlu0 %v1945_v48  ;;  %v1968_v43 = vcvt.s32.f32 %v1966_v51  ;;  %v1418_v62 = vshll.u32 %v1417_v5, 16  ;;  %v8143_v48 = vld [vmem:[#allocation32_spill] sm:$0xff] }
 0x2fc   :  { %v6125_v58 = vpop.xlane.xlu1 %1984  ;;  %v1429_v28 = vpop.xlane.xlu0 %1428  ;;  %v8147_v51 = vld [vmem:[#allocation52_spill] sm:$0xff] }
 0x2fd   :  { %8138 = vst [vmem:[#allocation48_spill] sm:$0xff] %v6125_v58  ;;  %vm1986_vm7 = vcmp.eq.f32.partialorder %v8140_v54, %v6125_v58  ;;  %vm7857_vm0 = vcmp.eq.s32.totalorder %v5021_v9, %v6121_v41  ;;  %v1430_v15 = vcvt.f32.s32 %v1429_v28  ;;  %v8141_v54 = vld [vmem:[#allocation28_spill] sm:$0xff]  ;;  %v8145_v58 = vld [vmem:[#allocation51_spill] sm:$0xff]  ;;  %v1445_v5 = vcvt.f32.s32 %v8147_v51 }
 0x2fe   :  { %4210 = vmatprep.mubr.msk.f32.mxu1 %vm7857_vm0, %v8107_v32  ;;  %v1987_v17 = vsel %vm1986_vm7, %v1982_v20, inf  ;;  %v1994_v1 = vand.u32 65535, %v8141_v54  ;;  %v1459_v54 = vcvt.f32.s32 %v8145_v58 }
 0x2ff   :  { %1988 = vmin.xlane.f32.xlu1 %v1987_v17  ;;  %4211 = vmatmul.mubr.msk.f32.gmra.mxu1 %vm7859_vm4, %v8107_v32  ;;  %v6147_v61 = vadd.s32 %v1432_v37, %v1430_v15  ;;  %v2008_v17 = vand.u32 65535, %v8144_v30 }
 0x300   :  { %v6143_v55 = vpop.xlane.xlu1 %1970  ;;  %v1415_v16 = vpop.xlane.xlu0 %1414  ;;  %v1996_v19 = vcvt.s32.f32 %v1994_v1 }
 0x301   :  { %8142 = vst [vmem:[#allocation64_spill] sm:$0xff] %v6143_v55  ;;  %vm1972_vm7 = vcmp.eq.f32.partialorder %v8143_v48, %v6143_v55  ;;  %v1416_v20 = vcvt.f32.s32 %v1415_v16  ;;  %v1446_v16 = vshll.u32 %v1445_v5, 16  ;;  %v1557_v55 = vcvt.f32.s32 %v5799_v22 }
 0x302   :  { %v1973_v53 = vsel %vm1972_vm7, %v1968_v43, inf  ;;  %vm7869_vm7 = vcmp.eq.s32.totalorder %v5021_v9, %v6147_v61  ;;  %v8150_v43 = vld [vmem:[#allocation33_spill] sm:$0xff] }
 0x303   :  { %v6149_v28 = vadd.s32 %v1418_v62, %v1416_v20  ;;  %1974 = vmin.xlane.f32.xlu0 %v1973_v53  ;;  %v8151_v53 = vld [vmem:[#allocation54_spill] sm:$0xff] }
 0x304   :  { %v6153_v2 = vpop.xlane.xlu1 %1998  ;;  %v1457_v34 = vpop.xlane.xlu0 %1456  ;;  %v1487_v30 = vcvt.f32.s32 %v8151_v53  ;;  %v8154_v53 = vld [vmem:[#allocation53_spill] sm:$0xff] }
 0x305   :  { %8146 = vst [vmem:[#allocation49_spill] sm:$0xff] %v6153_v2  ;;  %vm2000_vm0 = vcmp.eq.f32.partialorder %v8148_v47, %v6153_v2  ;;  %vm7861_vm8 = vcmp.eq.s32.totalorder %v5021_v9, %v6149_v28  ;;  %v1458_v15 = vcvt.f32.s32 %v1457_v34  ;;  %v1460_v47 = vshll.u32 %v1459_v54, 16 }
 0x306   :  { %4213 = vmatprep.mubr.msk.f32.mxu1 %vm7861_vm8, %v8107_v32  ;;  %v2001_v37 = vsel %vm2000_vm0, %v1996_v19, inf  ;;  %v2010_v34 = vcvt.s32.f32 %v2008_v17  ;;  %v1488_v5 = vshll.u32 %v1487_v30, 16  ;;  %v1529_v30 = vcvt.f32.s32 %v5787_v40 }
 0x307   :  { %2002 = vmin.xlane.f32.xlu0 %v2001_v37  ;;  %4214 = vmatmul.mubr.msk.f32.gmra.mxu1 %vm7869_vm7, %v8107_v32  ;;  %v6174_v19 = vadd.s32 %v1460_v47, %v1458_v15  ;;  %v8152_v37 = vld [vmem:[#allocation55_spill] sm:$0xff] }
 0x308   :  { %v6170_v58 = vpop.xlane.xlu1 %2012  ;;  %v1443_v1 = vpop.xlane.xlu0 %1442  ;;  %v1473_v54 = vcvt.f32.s32 %v8152_v37  ;;  %v1530_v2 = vshll.u32 %v1529_v30, 16 }
 0x309   :  { %8149 = vst [vmem:[#allocation65_spill] sm:$0xff] %v6170_v58  ;;  %vm2014_vm4 = vcmp.eq.f32.partialorder %v8150_v43, %v6170_v58  ;;  %v1444_v62 = vcvt.f32.s32 %v1443_v1  ;;  %v8153_v43 = vld [vmem:[#allocation56_spill] sm:$0xff] }
 0x30a   :  { %v2015_v48 = vsel %vm2014_vm4, %v2010_v34, inf  ;;  %vm7873_vm4 = vcmp.eq.s32.totalorder %v5021_v9, %v6174_v19  ;;  %v1474_v47 = vshll.u32 %v1473_v54, 16 }
 0x30b   :  { %v6176_v20 = vadd.s32 %v1446_v16, %v1444_v62  ;;  %2016 = vmin.xlane.f32.xlu1 %v2015_v48  ;;  %v1515_v62 = vcvt.f32.s32 %v8153_v43 }
 0x30c   :  { %v1485_v51 = vpop.xlane.xlu0 %1484 }
 0x30d   :  { %vm7871_vm0 = vcmp.eq.s32.totalorder %v5021_v9, %v6176_v20  ;;  %v1486_v17 = vcvt.f32.s32 %v1485_v51  ;;  %v1501_v51 = vcvt.f32.s32 %v8154_v53  ;;  %v1516_v54 = vshll.u32 %v1515_v62, 16 }
 0x30e   :  { %4216 = vmatprep.mubr.msk.f32.mxu1 %vm7871_vm0, %v8107_v32  ;;  %v6219_v62 = vcvt.s32.f32 %v5021_v9 }
 0x30f   :  { %4217 = vmatmul.mubr.msk.f32.gmra.mxu1 %vm7873_vm4, %v8107_v32  ;;  %v6192_v34 = vadd.s32 %v1488_v5, %v1486_v17  ;;  %v1543_v17 = vcvt.f32.s32 %v5801_v13 }
 0x310   :  { %v1471_v15 = vpop.xlane.xlu0 %1470  ;;  %3881 = vmatprep.mubr.f32.mxu0 %v6219_v62 }
 0x311   :  { %v1472_v1 = vcvt.f32.s32 %v1471_v15  ;;  %vm7891_vm8 = vcmp.eq.s32.totalorder %v5021_v9, %v6192_v34  ;;  %v1544_v56 = vshll.u32 %v1543_v17, 16  ;;  %v1585_v17 = vcvt.f32.s32 %v5813_v46 }
 0x313   :  { %v6194_v16 = vadd.s32 %v1474_v47, %v1472_v1  ;;  %v1502_v47 = vshll.u32 %v1501_v51, 16  ;;  %v1571_v1 = vcvt.f32.s32 %v5809_v18 }
 0x314   :  { %v1513_v48 = vpop.xlane.xlu0 %1512 }
 0x315   :  { %vm7888_vm11 = vcmp.eq.s32.totalorder %v5021_v9, %v6194_v16  ;;  %v1514_v37 = vcvt.f32.s32 %v1513_v48  ;;  %v1572_v13 = vshll.u32 %v1571_v1, 16  ;;  %v1613_v1 = vcvt.f32.s32 %v5827_v57 }
 0x316   :  { %4219 = vmatprep.mubr.msk.f32.mxu1 %vm7888_vm11, %v8107_v32 }
 0x317   :  { %4220 = vmatmul.mubr.msk.f32.gmra.mxu1 %vm7891_vm8, %v8107_v32  ;;  %v6213_v48 = vadd.s32 %v1516_v54, %v1514_v37 }
 0x318   :  { %v1541_v5 = vpop.xlane.xlu1 %1540  ;;  %v1499_v15 = vpop.xlane.xlu0 %1498 }
 0x319   :  { %v1500_v43 = vcvt.f32.s32 %v1499_v15  ;;  %v1542_v53 = vcvt.f32.s32 %v1541_v5  ;;  %vm2049_vm7 = vcmp.eq.s32.totalorder %v5021_v9, %v6213_v48 }
 0x31b   :  { %v6215_v58 = vadd.s32 %v1502_v47, %v1500_v43  ;;  %v6223_v18 = vadd.s32 %v1544_v56, %v1542_v53  ;;  %v1599_v56 = vcvt.f32.s32 %v5819_v8  ;;  %v1586_v47 = vshll.u32 %v1585_v17, 16 }
 0x31c   :  { %v1569_v21 = vpop.xlane.xlu1 %1568  ;;  %v1527_v40 = vpop.xlane.xlu0 %1526 }
 0x31d   :  { %v1570_v38 = vcvt.f32.s32 %v1569_v21  ;;  %v1528_v51 = vcvt.f32.s32 %v1527_v40  ;;  %vm7937_vm12 = vcmp.eq.s32.totalorder %v5021_v9, %v6215_v58  ;;  %v1558_v21 = vshll.u32 %v1557_v55, 16 }
 0x31e   :  { %4222 = vmatprep.mubr.msk.f32.mxu1 %vm7937_vm12, %v8107_v32  ;;  %vm2051_vm1 = vcmp.eq.s32.totalorder %v5021_v9, %v6223_v18  ;;  %v1600_v8 = vshll.u32 %v1599_v56, 16  ;;  %v1627_v55 = vcvt.f32.s32 %v5829_v29  ;;  %v1614_v56 = vshll.u32 %v1613_v1, 16 }
 0x31f   :  { %v6232_v22 = vadd.s32 %v1572_v13, %v1570_v38  ;;  %v6234_v37 = vadd.s32 %v1530_v2, %v1528_v51  ;;  %4223 = vmatmul.mubr.msk.f32.gmra.mxu1 %vm2049_vm7, %v8107_v32  ;;  %v1655_v13 = vcvt.f32.s32 %v5836_v36 }
 0x320   :  { %v1597_v30 = vpop.xlane.xlu1 %1596  ;;  %v1555_v54 = vpop.xlane.xlu0 %1554  ;;  %v1628_v57 = vshll.u32 %v1627_v55, 16 }
 0x321   :  { %v1556_v5 = vcvt.f32.s32 %v1555_v54  ;;  %vm2050_vm15 = vcmp.eq.s32.totalorder %v5021_v9, %v6234_v37  ;;  %vm2053_vm0 = vcmp.eq.s32.totalorder %v5021_v9, %v6232_v22  ;;  %v1598_v38 = vcvt.f32.s32 %v1597_v30 }
 0x322   :  { %4225 = vmatprep.mubr.msk.f32.mxu1 %vm2050_vm15, %v8107_v32  ;;  %3815 = vmatprep.subr.msk.mxu1 %vm2053_vm0, %v8107_v32  ;;  %v1641_v30 = vcvt.f32.s32 %v5841_v10 }
 0x323   :  { %v6256_v46 = vadd.s32 %v1558_v21, %v1556_v5  ;;  %4226 = vmatmul.mubr.msk.f32.gmra.mxu1 %vm2051_vm1, %v8107_v32  ;;  %v6270_v53 = vadd.s32 %v1600_v8, %v1598_v38  ;;  %v1656_v5 = vshll.u32 %v1655_v13, 16 }
 0x324   :  { %3816 = vmatpush3.xpose.msk.msra.mxu1 %vm2037_vm10, %v8107_v32  ;;  %v1625_v2 = vpop.xlane.xlu1 %1624  ;;  %v1583_v15 = vpop.xlane.xlu0 %1582  ;;  %v1642_v8 = vshll.u32 %v1641_v30, 16 }
 0x325   :  { %v1584_v43 = vcvt.f32.s32 %v1583_v15  ;;  %vm7874_vm4 = vcmp.eq.s32.totalorder %v5021_v9, %v6256_v46  ;;  %8155 = vst [vmem:[#allocation66_spill] sm:$0xff] %v6270_v53  ;;  %v1626_v40 = vcvt.f32.s32 %v1625_v2 }
 0x326   :  { %4228 = vmatprep.mubr.msk.f32.mxu1 %vm7874_vm4, %v8107_v32  ;;  %3817 = vmatprep.subr.msk.mxu1 %vm7874_vm4, %v8107_v32 }
 0x327   :  { %v6280_v29 = vadd.s32 %v1586_v47, %v1584_v43  ;;  %4229 = vmatmul.mubr.msk.f32.gmra.mxu1 %vm2053_vm0, %v8107_v32  ;;  %v6298_v36 = vadd.s32 %v1628_v57, %v1626_v40  ;;  %v1683_v47 = vcvt.f32.s32 %v5846_v26  ;;  %v1669_v43 = vcvt.f32.s32 %v5851_v7 }
 0x328   :  { %3818 = vmatpush3.xpose.msk.msra.mxu1 %vm7875_vm3, %v8107_v32  ;;  %v1653_v51 = vpop.xlane.xlu1 %1652  ;;  %v1611_v21 = vpop.xlane.xlu0 %1610  ;;  %vm7877_vm3 = vcmp.eq.s32.totalorder %v5021_v9, %v6270_v53 }
 0x329   :  { %8156 = vst [vmem:[#allocation67_spill] sm:$0xff] %v6280_v29  ;;  %3819 = vmatprep.subr.msk.mxu1 %vm2051_vm1, %v8107_v32  ;;  %v1612_v54 = vcvt.f32.s32 %v1611_v21  ;;  %vm7876_vm4 = vcmp.eq.s32.totalorder %v5021_v9, %v6280_v29  ;;  %8157 = vst [vmem:[#allocation68_spill] sm:$0xff] %v6298_v36  ;;  %v1654_v17 = vcvt.f32.s32 %v1653_v51  ;;  %v1684_v26 = vshll.u32 %v1683_v47, 16  ;;  %v8190_v29 = vld [vmem:[#allocation62_spill] sm:$0xff] }
 0x32a   :  { %4231 = vmatprep.mubr.msk.f32.mxu1 %vm7876_vm4, %v8107_v32  ;;  %v1670_v57 = vshll.u32 %v1669_v43, 16  ;;  %v1739_v43 = vcvt.f32.s32 %v5873_v42 }
 0x32b   :  { %v6306_v10 = vadd.s32 %v1614_v56, %v1612_v54  ;;  %4232 = vmatmul.mubr.msk.f32.gmra.mxu1 %vm7877_vm3, %v8107_v32  ;;  %v6322_v2 = vadd.s32 %v1656_v5, %v1654_v17  ;;  %vm7879_vm3 = vcmp.eq.s32.totalorder %v5021_v9, %v6298_v36  ;;  %v8162_v56 = vld [vmem:[#allocation57_spill] sm:$0xff]  ;;  %v1697_v17 = vcvt.f32.s32 %v5863_v11 }
 0x32c   :  { %3820 = vmatpush3.xpose.msk.msra.mxu1 %vm2035_vm5, %v8107_v32  ;;  %v1639_v38 = vpop.xlane.xlu0 %1638  ;;  %v1711_v30 = vcvt.f32.s32 %v8162_v56  ;;  %v1740_v42 = vshll.u32 %v1739_v43, 16  ;;  %v8285_v18 = vld [vmem:[#allocation66_spill] sm:$0xff] }
 0x32d   :  { %8158 = vst [vmem:[#allocation69_spill] sm:$0xff] %v6306_v10  ;;  %3821 = vmatprep.subr.msk.mxu1 %vm2050_vm15, %v8107_v32  ;;  %v1640_v55 = vcvt.f32.s32 %v1639_v38  ;;  %vm7878_vm4 = vcmp.eq.s32.totalorder %v5021_v9, %v6306_v10  ;;  %8159 = vst [vmem:[#allocation70_spill] sm:$0xff] %v6322_v2 }
 0x32e   :  { %4234 = vmatprep.mubr.msk.f32.mxu1 %vm7878_vm4, %v8107_v32  ;;  %v1712_v11 = vshll.u32 %v1711_v30, 16 }
 0x32f   :  { %v6330_v15 = vadd.s32 %v1642_v8, %v1640_v55  ;;  %4235 = vmatmul.mubr.msk.f32.gmra.mxu1 %vm7879_vm3, %v8107_v32  ;;  %vm7881_vm3 = vcmp.eq.s32.totalorder %v5021_v9, %v6322_v2  ;;  %v1698_v8 = vshll.u32 %v1697_v17, 16 }
 0x330   :  { %3822 = vmatpush3.xpose.msk.msra.mxu1 %vm2034_vm13, %v8107_v32  ;;  %v1681_v1 = vpop.xlane.xlu1 %1680 }
 0x331   :  { %8160 = vst [vmem:[#allocation71_spill] sm:$0xff] %v6330_v15  ;;  %3823 = vmatprep.subr.msk.mxu1 %vm2049_vm7, %v8107_v32  ;;  %vm7880_vm4 = vcmp.eq.s32.totalorder %v5021_v9, %v6330_v15  ;;  %v1682_v40 = vcvt.f32.s32 %v1681_v1 }
 0x332   :  { %4237 = vmatprep.mubr.msk.f32.mxu1 %vm7880_vm4, %v8107_v32 }
 0x333   :  { %4238 = vmatmul.mubr.msk.f32.gmra.mxu1 %vm7881_vm3, %v8107_v32  ;;  %v6366_v51 = vadd.s32 %v1684_v26, %v1682_v40  ;;  %v1725_v26 = vcvt.f32.s32 %v5891_v49 }
 0x334   :  { %3824 = vmatpush3.xpose.msk.msra.mxu1 %vm2033_vm2, %v8107_v32  ;;  %v1667_v7 = vpop.xlane.xlu0 %1666 }
 0x335   :  { %3825 = vmatprep.subr.msk.mxu1 %vm7937_vm12, %v8107_v32  ;;  %v1668_v13 = vcvt.f32.s32 %v1667_v7  ;;  %vm7883_vm3 = vcmp.eq.s32.totalorder %v5021_v9, %v6366_v51 }
 0x337   :  { %v6368_v21 = vadd.s32 %v1670_v57, %v1668_v13  ;;  %v1726_v57 = vshll.u32 %v1725_v26, 16 }
 0x338   :  { %3826 = vmatpush3.xpose.msk.msra.mxu1 %vm7892_vm14, %v8107_v32  ;;  %v1709_v54 = vpop.xlane.xlu1 %1708 }
 0x339   :  { %8161 = vst [vmem:[#allocation72_spill] sm:$0xff] %v6368_v21  ;;  %3827 = vmatprep.subr.msk.mxu1 %vm7891_vm8, %v8107_v32  ;;  %vm7882_vm4 = vcmp.eq.s32.totalorder %v5021_v9, %v6368_v21  ;;  %v1710_v5 = vcvt.f32.s32 %v1709_v54  ;;  %v1767_v54 = vcvt.f32.s32 %v5901_v3  ;;  %vm8181_vm8 = vcmp.eq.s32.totalorder %v5021_v9, %v6093_v24 }
 0x33a   :  { %4240 = vmatprep.mubr.msk.f32.mxu1 %vm7882_vm4, %v8107_v32  ;;  %vm8163_vm4 = vcmp.eq.s32.totalorder %v5021_v9, %v6174_v19 }
 0x33b   :  { %4241 = vmatmul.mubr.msk.f32.gmra.mxu1 %vm7883_vm3, %v8107_v32  ;;  %v6400_v47 = vadd.s32 %v1712_v11, %v1710_v5  ;;  %v1753_v5 = vcvt.f32.s32 %v5919_v60  ;;  %v1768_v3 = vshll.u32 %v1767_v54, 16 }
 0x33c   :  { %3828 = vmatpush3.xpose.msk.msra.mxu1 %vm7890_vm9, %v8107_v32  ;;  %v1695_v38 = vpop.xlane.xlu0 %1694 }
 0x33d   :  { %3829 = vmatprep.subr.msk.mxu1 %vm7888_vm11, %v8107_v32  ;;  %v1696_v55 = vcvt.f32.s32 %v1695_v38  ;;  %v1754_v38 = vshll.u32 %v1753_v5, 16  ;;  %vm8170_vm11 = vcmp.eq.s32.totalorder %v5021_v9, %v5925_v6  ;;  %v8175_v5 = vld [vmem:[#allocation61_spill] sm:$0xff] }
 0x33f   :  { %v6402_v1 = vadd.s32 %v1698_v8, %v1696_v55 }
 0x340   :  { %3830 = vmatpush3.xpose.msk.msra.mxu1 %vm7884_vm6, %v8107_v32  ;;  %v1737_v40 = vpop.xlane.xlu1 %1736  ;;  %vm7886_vm6 = vcmp.eq.s32.totalorder %v5021_v9, %v6400_v47 }
 0x341   :  { %3831 = vmatprep.subr.msk.mxu1 %vm8163_vm4, %v8107_v32  ;;  %vm7885_vm3 = vcmp.eq.s32.totalorder %v5021_v9, %v6402_v1  ;;  %v1738_v7 = vcvt.f32.s32 %v1737_v40  ;;  %vm8164_vm4 = vcmp.eq.s32.totalorder %v5021_v9, %v5951_v59  ;;  %v1795_v40 = vcvt.f32.s32 %v5929_v45 }
 0x342   :  { %4243 = vmatprep.mubr.msk.f32.mxu1 %vm7885_vm3, %v8107_v32  ;;  %vm8165_vm3 = vcmp.eq.s32.totalorder %v5021_v9, %v6176_v20 }
 0x343   :  { %4244 = vmatmul.mubr.msk.f32.gmra.mxu1 %vm7886_vm6, %v8107_v32  ;;  %v6434_v56 = vadd.s32 %v1740_v42, %v1738_v7  ;;  %vm8166_vm6 = vcmp.eq.s32.totalorder %v5021_v9, %v5953_v33  ;;  %v1781_v7 = vcvt.f32.s32 %v5947_v31  ;;  %v1796_v45 = vshll.u32 %v1795_v40, 16  ;;  %v8172_v31 = vld [vmem:[#allocation40_spill] sm:$0xff]  ;;  %v8179_v40 = vld [vmem:[#allocation58_spill] sm:$0xff] }
 0x344   :  { %3832 = vmatpush3.xpose.msk.msra.mxu1 %vm8164_vm4, %v8107_v32  ;;  %v1723_v49 = vpop.xlane.xlu0 %1722  ;;  %vm8167_vm4 = vcmp.eq.s32.totalorder %v5021_v9, %v6147_v61 }
 0x345   :  { %3833 = vmatprep.subr.msk.mxu1 %vm8165_vm3, %v8107_v32  ;;  %v1724_v13 = vcvt.f32.s32 %v1723_v49 }
 0x347   :  { %v6436_v30 = vadd.s32 %v1726_v57, %v1724_v13  ;;  %v1782_v57 = vshll.u32 %v1781_v7, 16 }
 0x348   :  { %3834 = vmatpush3.xpose.msk.msra.mxu1 %vm8166_vm6, %v8107_v32  ;;  %v1765_v17 = vpop.xlane.xlu1 %1764  ;;  %vm7889_vm6 = vcmp.eq.s32.totalorder %v5021_v9, %v6434_v56 }
 0x349   :  { %3835 = vmatprep.subr.msk.mxu1 %vm8167_vm4, %v8107_v32  ;;  %vm7887_vm3 = vcmp.eq.s32.totalorder %v5021_v9, %v6436_v30  ;;  %v1766_v11 = vcvt.f32.s32 %v1765_v17  ;;  %vm8168_vm4 = vcmp.eq.s32.totalorder %v5021_v9, %v5923_v63 }
 0x34a   :  { %4246 = vmatprep.mubr.msk.f32.mxu1 %vm7887_vm3, %v8107_v32  ;;  %vm8169_vm3 = vcmp.eq.s32.totalorder %v5021_v9, %v6149_v28 }
 0x34b   :  { %4247 = vmatmul.mubr.msk.f32.gmra.mxu1 %vm7889_vm6, %v8107_v32  ;;  %v6468_v55 = vadd.s32 %v1768_v3, %v1766_v11  ;;  %vm8174_vm6 = vcmp.eq.s32.totalorder %v5021_v9, %v6121_v41  ;;  %v1823_v11 = vcvt.f32.s32 %v8175_v5  ;;  %v8176_v3 = vld [vmem:[#allocation60_spill] sm:$0xff]  ;;  %v8185_v5 = vld [vmem:[#allocation59_spill] sm:$0xff] }
 0x34c   :  { %3836 = vmatpush3.xpose.msk.msra.mxu1 %vm8168_vm4, %v8107_v32  ;;  %v1751_v60 = vpop.xlane.xlu0 %1750  ;;  %vm8171_vm4 = vcmp.eq.s32.totalorder %v5021_v9, %v6119_v4  ;;  %vm8177_vm9 = vcmp.eq.s32.totalorder %v5021_v9, %v8176_v3  ;;  %vm8186_vm14 = vcmp.eq.s32.totalorder %v5021_v9, %v8185_v5 }
 0x34d   :  { %3837 = vmatprep.subr.msk.mxu1 %vm8169_vm3, %v8107_v32  ;;  %v1752_v8 = vcvt.f32.s32 %v1751_v60 }
 0x34f   :  { %v6470_v43 = vadd.s32 %v1754_v38, %v1752_v8  ;;  %v1809_v38 = vcvt.f32.s32 %v5975_v39  ;;  %v1824_v39 = vshll.u32 %v1823_v11, 16 }
 0x350   :  { %3838 = vmatpush3.xpose.msk.msra.mxu1 %vm8170_vm11, %v8107_v32  ;;  %v1793_v26 = vpop.xlane.xlu1 %1792  ;;  %vm2067_vm11 = vcmp.eq.s32.totalorder %v5021_v9, %v6468_v55 }
 0x351   :  { %3839 = vmatprep.subr.msk.mxu1 %vm8171_vm4, %v8107_v32  ;;  %vm7938_vm3 = vcmp.eq.s32.totalorder %v5021_v9, %v6470_v43  ;;  %v1794_v42 = vcvt.f32.s32 %v1793_v26  ;;  %vm8173_vm4 = vcmp.eq.s32.totalorder %v5021_v9, %v8172_v31  ;;  %v1810_v7 = vshll.u32 %v1809_v38, 16 }
 0x352   :  { %4249 = vmatprep.mubr.msk.f32.mxu1 %vm7938_vm3, %v8107_v32 }
 0x353   :  { %4250 = vmatmul.mubr.msk.f32.gmra.mxu1 %vm2067_vm11, %v8107_v32  ;;  %v6502_v54 = vadd.s32 %v1796_v45, %v1794_v42 }
 0x354   :  { %3840 = vmatpush3.xpose.msk.msra.mxu1 %vm8173_vm4, %v8107_v32  ;;  %v1779_v49 = vpop.xlane.xlu0 %1778  ;;  %vm8178_vm4 = vcmp.eq.s32.totalorder %v5021_v9, %v6091_v23 }
 0x355   :  { %3841 = vmatprep.subr.msk.mxu1 %vm8174_vm6, %v8107_v32  ;;  %v1780_v13 = vcvt.f32.s32 %v1779_v49 }
 0x357   :  { %v6504_v17 = vadd.s32 %v1782_v57, %v1780_v13  ;;  %v8184_v57 = vld [vmem:[#allocation41_spill] sm:$0xff] }
 0x358   :  { %3842 = vmatpush3.xpose.msk.msra.mxu1 %vm8177_vm9, %v8107_v32  ;;  %v1821_v60 = vpop.xlane.xlu1 %1820  ;;  %vm2069_vm9 = vcmp.eq.s32.totalorder %v5021_v9, %v6502_v54  ;;  %v1851_v13 = vcvt.f32.s32 %v8184_v57 }
 0x359   :  { %3843 = vmatprep.subr.msk.mxu1 %vm8178_vm4, %v8107_v32  ;;  %vm2068_vm6 = vcmp.eq.s32.totalorder %v5021_v9, %v6504_v17  ;;  %v1822_v8 = vcvt.f32.s32 %v1821_v60  ;;  %vm8180_vm4 = vcmp.eq.s32.totalorder %v5021_v9, %v8179_v40  ;;  %v1837_v60 = vcvt.f32.s32 %v6003_v27 }
 0x35a   :  { %4252 = vmatprep.mubr.msk.f32.mxu1 %vm2068_vm6, %v8107_v32  ;;  %v1852_v27 = vshll.u32 %v1851_v13, 16 }
 0x35b   :  { %4253 = vmatmul.mubr.msk.f32.gmra.mxu1 %vm2069_vm9, %v8107_v32  ;;  %v6536_v45 = vadd.s32 %v1824_v39, %v1822_v8  ;;  %v1838_v8 = vshll.u32 %v1837_v60, 16 }
 0x35c   :  { %3844 = vmatpush3.xpose.msk.msra.mxu1 %vm8180_vm4, %v8107_v32  ;;  %v1807_v26 = vpop.xlane.xlu0 %1806 }
 0x35d   :  { %3845 = vmatprep.subr.msk.mxu1 %vm8181_vm8, %v8107_v32  ;;  %v1808_v42 = vcvt.f32.s32 %v1807_v26  ;;  %8182 = vst [vmem:[#allocation11_spill] sm:$0xff] %v6536_v45 }
 0x35f   :  { %v6538_v49 = vadd.s32 %v1810_v7, %v1808_v42  ;;  %v8189_v42 = vld [vmem:[#allocation42_spill] sm:$0xff] }
 0x360   :  { %3846 = vmatpush3.xpose.msk.msra.mxu1 %vm8186_vm14, %v8107_v32  ;;  %v1849_v11 = vpop.xlane.xlu1 %1848  ;;  %vm7904_vm14 = vcmp.eq.s32.totalorder %v5021_v9, %v6536_v45  ;;  %v1879_v57 = vcvt.f32.s32 %v8189_v42 }
 0x361   :  { %8183 = vst [vmem:[#allocation24_spill] sm:$0xff] %v6538_v49  ;;  %3883 = vmatprep.subr.msk.mxu1 %vm2053_vm0, %v8107_v32  ;;  %vm7901_vm8 = vcmp.eq.s32.totalorder %v5021_v9, %v6538_v49  ;;  %v1850_v38 = vcvt.f32.s32 %v1849_v11  ;;  %v1865_v49 = vcvt.f32.s32 %v8190_v29 }
 0x362   :  { %4255 = vmatprep.mubr.msk.f32.mxu1 %vm7901_vm8, %v8107_v32  ;;  %v1880_v13 = vshll.u32 %v1879_v57, 16 }
 0x363   :  { %4256 = vmatmul.mubr.msk.f32.gmra.mxu1 %vm7904_vm14, %v8107_v32  ;;  %v6562_v26 = vadd.s32 %v1852_v27, %v1850_v38  ;;  %v1866_v29 = vshll.u32 %v1865_v49, 16 }
 0x364   :  { %v1835_v22 = vpop.xlane.xlu0 %1834 }
 0x365   :  { %v1836_v39 = vcvt.f32.s32 %v1835_v22  ;;  %8187 = vst [vmem:[#allocation25_spill] sm:$0xff] %v6562_v26  ;;  %vm7910_vm4 = vcmp.eq.s32.totalorder %v5021_v9, %v6562_v26  ;;  %v8203_v26 = vld [vmem:[#allocation47_spill] sm:$0xff] }
 0x367   :  { %v6564_v7 = vadd.s32 %v1838_v8, %v1836_v39  ;;  %v8193_v8 = vld [vmem:[#allocation43_spill] sm:$0xff] }
 0x368   :  { %v1877_v11 = vpop.xlane.xlu1 %1876  ;;  %v1907_v39 = vcvt.f32.s32 %v8193_v8  ;;  %v8196_v8 = vld [vmem:[#allocation63_spill] sm:$0xff]  ;;  %v8287_v37 = vld [vmem:[#allocation24_spill] sm:$0xff] }
 0x369   :  { %8188 = vst [vmem:[#allocation12_spill] sm:$0xff] %v6564_v7  ;;  %vm7905_vm0 = vcmp.eq.s32.totalorder %v5021_v9, %v6564_v7  ;;  %v1878_v53 = vcvt.f32.s32 %v1877_v11  ;;  %v8194_v11 = vld [vmem:[#allocation44_spill] sm:$0xff]  ;;  %v8198_v7 = vld [vmem:[#allocation45_spill] sm:$0xff] }
 0x36a   :  { %4258 = vmatprep.mubr.msk.f32.mxu1 %vm7905_vm0, %v8107_v32  ;;  %v1893_v45 = vcvt.f32.s32 %v8194_v11  ;;  %vm8197_vm0 = vcmask 261120  }
 0x36b   :  { %4259 = vmatmul.mubr.msk.f32.gmra.mxu1 %vm7910_vm4, %v8107_v32  ;;  %v6580_v27 = vadd.s32 %v1880_v13, %v1878_v53  ;;  %v1908_v53 = vshll.u32 %v1907_v39, 16  ;;  %v1921_v39 = vcvt.f32.s32 %v8198_v7 }
 0x36c   :  { %v1863_v60 = vpop.xlane.xlu0 %1862  ;;  %v1894_v57 = vshll.u32 %v1893_v45, 16 }
 0x36d   :  { %v1864_v38 = vcvt.f32.s32 %v1863_v60  ;;  %8191 = vst [vmem:[#allocation27_spill] sm:$0xff] %v6580_v27  ;;  %vm7918_vm14 = vcmp.eq.s32.totalorder %v5021_v9, %v6580_v27 }
 0x36f   :  { %v6582_v22 = vadd.s32 %v1866_v29, %v1864_v38 }
 0x370   :  { %v1905_v42 = vpop.xlane.xlu1 %1904 }
 0x371   :  { %8192 = vst [vmem:[#allocation13_spill] sm:$0xff] %v6582_v22  ;;  %vm7911_vm8 = vcmp.eq.s32.totalorder %v5021_v9, %v6582_v22  ;;  %v1906_v10 = vcvt.f32.s32 %v1905_v42  ;;  %v1935_v42 = vcvt.f32.s32 %v8196_v8  ;;  %v8208_v22 = vld [vmem:[#allocation64_spill] sm:$0xff] }
 0x372   :  { %4261 = vmatprep.mubr.msk.f32.mxu1 %vm7911_vm8, %v8107_v32  ;;  %vm8200_vm8 = vmmov %vm8197_vm0 }
 0x373   :  { %4262 = vmatmul.mubr.msk.f32.gmra.mxu1 %vm7918_vm14, %v8107_v32  ;;  %v6598_v60 = vadd.s32 %v1908_v53, %v1906_v10  ;;  %v1936_v45 = vshll.u32 %v1935_v42, 16  ;;  %v1922_v53 = vshll.u32 %v1921_v39, 16  ;;  %v1949_v42 = vcvt.f32.s32 %v8203_v26 }
 0x374   :  { %v1891_v49 = vpop.xlane.xlu0 %1890  ;;  %v8262_v12 = vld [vmem:[#allocation27_spill] sm:$0xff] }
 0x375   :  { %v1892_v13 = vcvt.f32.s32 %v1891_v49 }
 0x377   :  { %v6600_v29 = vadd.s32 %v1894_v57, %v1892_v13  ;;  %v6602_v38 = vpop.f32.mrf.mxu1 }
 0x378   :  { %8195 = vst [vmem:[#allocation29_spill] sm:$0xff] %v6602_v38  ;;  %2600 = vst.msk [vmem:[%s7728_s3 + $0x8] sm:$0xff] %vm8197_vm0, %v6602_v38  ;;  %v1933_v11 = vpop.xlane.xlu1 %1932  ;;  %vm7926_vm0 = vcmp.eq.s32.totalorder %v5021_v9, %v6598_v60 }
 0x379   :  { %v6611_v36 = vpop.f32.mrf.mxu1  ;;  %vm7919_vm4 = vcmp.eq.s32.totalorder %v5021_v9, %v6600_v29  ;;  %v1934_v10 = vcvt.f32.s32 %v1933_v11  ;;  %v8202_v11 = vld [vmem:[#allocation46_spill] sm:$0xff] }
 0x37a   :  { %8199 = vst [vmem:[#allocation14_spill] sm:$0xff] %v6611_v36  ;;  %2599 = vst.msk [vmem:[%s7728_s3] sm:$0xff] %vm8200_vm8, %v6611_v36  ;;  %4264 = vmatprep.mubr.msk.f32.mxu1 %vm7919_vm4, %v8107_v32  ;;  %v1963_v36 = vcvt.f32.s32 %v8202_v11  ;;  %v8207_v11 = vld [vmem:[#allocation48_spill] sm:$0xff] }
 0x37b   :  { %4265 = vmatmul.mubr.msk.f32.gmra.mxu1 %vm7926_vm0, %v8107_v32  ;;  %v6630_v57 = vadd.s32 %v1936_v45, %v1934_v10  ;;  %vm8205_vm4 = vmmov %vm8200_vm8  ;;  %v1950_v10 = vshll.u32 %v1949_v42, 16 }
 0x37c   :  { %v1919_v7 = vpop.xlane.xlu0 %1918  ;;  %v1964_v26 = vshll.u32 %v1963_v36, 16  ;;  %v1977_v36 = vcvt.f32.s32 %v8208_v22 }
 0x37d   :  { %v1920_v49 = vcvt.f32.s32 %v1919_v7 }
 0x37f   :  { %v6632_v13 = vadd.s32 %v1922_v53, %v1920_v49  ;;  %v6634_v8 = vpop.f32.mrf.mxu1 }
 0x380   :  { %8201 = vst [vmem:[#allocation31_spill] sm:$0xff] %v6634_v8  ;;  %2602 = vst.msk [vmem:[%s7728_s3 + $0x18] sm:$0xff] %vm8200_vm8, %v6634_v8  ;;  %v1961_v38 = vpop.xlane.xlu1 %1960  ;;  %vm7934_vm8 = vcmp.eq.s32.totalorder %v5021_v9, %v6630_v57 }
 0x381   :  { %v6643_v15 = vpop.f32.mrf.mxu1  ;;  %vm7927_vm14 = vcmp.eq.s32.totalorder %v5021_v9, %v6632_v13  ;;  %v1962_v39 = vcvt.f32.s32 %v1961_v38 }
 0x382   :  { %8204 = vst [vmem:[#allocation15_spill] sm:$0xff] %v6643_v15  ;;  %2601 = vst.msk [vmem:[%s7728_s3 + $0x10] sm:$0xff] %vm8205_vm4, %v6643_v15  ;;  %4267 = vmatprep.mubr.msk.f32.mxu1 %vm7927_vm14, %v8107_v32  ;;  %v1991_v15 = vcvt.f32.s32 %v8207_v11 }
 0x383   :  { %4268 = vmatmul.mubr.msk.f32.gmra.mxu1 %vm7934_vm8, %v8107_v32  ;;  %v6662_v7 = vadd.s32 %v1964_v26, %v1962_v39  ;;  %vm8210_vm14 = vmmov %vm8205_vm4  ;;  %v1978_v39 = vshll.u32 %v1977_v36, 16  ;;  %v8211_v26 = vld [vmem:[#allocation49_spill] sm:$0xff] }
 0x384   :  { %v1947_v38 = vpop.xlane.xlu0 %1946  ;;  %v1992_v22 = vshll.u32 %v1991_v15, 16  ;;  %v8212_v15 = vld [vmem:[#allocation65_spill] sm:$0xff] }
 0x385   :  { %v1948_v45 = vcvt.f32.s32 %v1947_v38  ;;  %v2005_v38 = vcvt.f32.s32 %v8211_v26  ;;  %v2019_v21 = vcvt.f32.s32 %v8212_v15 }
 0x387   :  { %v6664_v53 = vadd.s32 %v1950_v10, %v1948_v45  ;;  %v6666_v49 = vpop.f32.mrf.mxu1  ;;  %v2006_v27 = vshll.u32 %v2005_v38, 16  ;;  %v4298_v38 = vld [vmem:[%s7725_s0 + $0xe8] sm:$0xff] }
 0x388   :  { %8206 = vst [vmem:[#allocation16_spill] sm:$0xff] %v6666_v49  ;;  %2604 = vst.msk [vmem:[%s7728_s3 + $0x28] sm:$0xff] %vm8205_vm4, %v6666_v49  ;;  %v1989_v8 = vpop.xlane.xlu1 %1988  ;;  %vm7936_vm4 = vcmp.eq.s32.totalorder %v5021_v9, %v6662_v7 }
 0x389   :  { %v6675_v2 = vpop.f32.mrf.mxu1  ;;  %vm7935_vm0 = vcmp.eq.s32.totalorder %v5021_v9, %v6664_v53  ;;  %v1990_v42 = vcvt.f32.s32 %v1989_v8 }
 0x38a   :  { %8209 = vst [vmem:[#allocation17_spill] sm:$0xff] %v6675_v2  ;;  %2603 = vst.msk [vmem:[%s7728_s3 + $0x20] sm:$0xff] %vm8210_vm14, %v6675_v2  ;;  %4270 = vmatprep.mubr.msk.f32.mxu1 %vm7935_vm0, %v8107_v32 }
 0x38b   :  { %4271 = vmatmul.mubr.msk.f32.gmra.mxu1 %vm7936_vm4, %v8107_v32  ;;  %v6695_v45 = vadd.s32 %v1992_v22, %v1990_v42  ;;  %vm8213_vm0 = vmmov %vm8210_vm14  ;;  %v2020_v22 = vshll.u32 %v2019_v21, 16  ;;  %vm8214_vm4 = vcmask 261120  }
 0x38c   :  { %v1975_v8 = vpop.xlane.xlu0 %1974  ;;  %vm8215_vm3 = vmmov %vm8214_vm4 }
 0x38d   :  { %v1976_v10 = vcvt.f32.s32 %v1975_v8 }
 0x38f   :  { %v6697_v11 = vadd.s32 %v1978_v39, %v1976_v10  ;;  %v6699_v2 = vpop.f32.mrf.mxu1 }
 0x390   :  { %2606 = vst.msk [vmem:[%s7728_s3 + $0x38] sm:$0xff] %vm8210_vm14, %v6699_v2  ;;  %v2003_v49 = vpop.xlane.xlu0 %2002  ;;  %vm2083_vm14 = vcmp.eq.s32.totalorder %v5021_v9, %v6695_v45 }
 0x391   :  { %v2004_v36 = vcvt.f32.s32 %v2003_v49  ;;  %v6707_v5 = vpop.f32.mrf.mxu1  ;;  %vm2082_vm8 = vcmp.eq.s32.totalorder %v5021_v9, %v6697_v11 }
 0x392   :  { %2605 = vst.msk [vmem:[%s7728_s3 + $0x30] sm:$0xff] %vm8213_vm0, %v6707_v5  ;;  %4273 = vmatprep.mubr.msk.f32.mxu1 %vm2082_vm8, %v8107_v32 }
 0x393   :  { %v6722_v49 = vadd.s32 %v2006_v27, %v2004_v36  ;;  %4274 = vmatmul.mubr.msk.f32.gmra.mxu1 %vm2083_vm14, %v8107_v32 }
 0x394   :  { %v2017_v42 = vpop.xlane.xlu1 %2016 }
 0x395   :  { %v2018_v8 = vcvt.f32.s32 %v2017_v42  ;;  %vm2084_vm0 = vcmp.eq.s32.totalorder %v5021_v9, %v6722_v49  ;;  %v4301_v42 = vld [vmem:[%s7725_s0 + $0xe0] sm:$0xff] }
 0x396   :  { %4276 = vmatprep.mubr.msk.f32.mxu1 %vm2084_vm0, %v8107_v32 }
 0x397   :  { %v6734_v39 = vadd.s32 %v2020_v22, %v2018_v8  ;;  %v6736_v27 = vpop.f32.mrf.mxu1 }
 0x398   :  { %2608 = vst.msk [vmem:[%s7728_s3 + $0x48] sm:$0xff] %vm8214_vm4, %v6736_v27  ;;  %vm8216_vm4 = vcmp.eq.s32.totalorder %v5021_v9, %v6256_v46 }
 0x399   :  { %v6743_v21 = vpop.f32.mrf.mxu1  ;;  %vm2085_vm12 = vcmp.eq.s32.totalorder %v5021_v9, %v6734_v39 }
 0x39a   :  { %2607 = vst.msk [vmem:[%s7728_s3 + $0x40] sm:$0xff] %vm8215_vm3, %v6743_v21  ;;  %4277 = vmatmul.mubr.msk.f32.gmra.mxu1 %vm2085_vm12, %v8107_v32  ;;  %3849 = vmatprep.subr.msk.mxu0 %vm2085_vm12, %v8107_v32 }
 0x39b   :  { %3850 = vmatpush3.xpose.msk.msra.mxu0 %vm2069_vm9, %v8107_v32  ;;  %3847 = vmatprep.mubr.f32.mxu1 %v6219_v62 }
 0x39c   :  { %3851 = vmatprep.subr.msk.mxu0 %vm2084_vm0, %v8107_v32 }
 0x39e   :  { %3848 = vmatmul.mubr.f32.vlgmr.msra.gmra.mxu1 %v6219_v62 }
 0x39f   :  { %3884 = vmatpush3.msk.msra.mxu1 %vm2037_vm10, %v8107_v32  ;;  %v6774_v26 = vpop.f32.mrf.mxu1  ;;  %3852 = vmatpush3.xpose.msk.msra.mxu0 %vm2068_vm6, %v8107_v32  ;;  %vm8217_vm10 = vcmp.eq.s32.totalorder %v5021_v9, %v6065_v25 }
 0x3a0   :  { %2610 = vst.msk [vmem:[%s7728_s3 + $0x58] sm:$0xff] %vm8215_vm3, %v6774_v26  ;;  %3885 = vmatprep.subr.msk.mxu1 %vm8216_vm4, %v8107_v32  ;;  %3853 = vmatprep.subr.msk.mxu0 %vm2083_vm14, %v8107_v32  ;;  %vm8224_vm4 = vcmp.eq.s32.totalorder %v5021_v9, %v6192_v34  ;;  %v8279_v34 = vld [vmem:[#allocation69_spill] sm:$0xff] }
 0x3a1   :  { %3886 = vmatpush3.msk.msra.mxu1 %vm8217_vm10, %v8107_v32  ;;  %v6797_v0 = vpop.f32.mrf.mxu1  ;;  %2904 = vmatprep.mubr.f32.mxu1 %v8107_v32  ;;  %vm8225_vm10 = vcmp.eq.s32.totalorder %v5021_v9, %v5979_v50 }
 0x3a2   :  { %2609 = vst.msk [vmem:[%s7728_s3 + $0x50] sm:$0xff] %vm8215_vm3, %v6797_v0  ;;  %3887 = vmatprep.subr.msk.mxu1 %vm2051_vm1, %v8107_v32  ;;  %vm8219_vm1 = vmmov %vm8215_vm3  ;;  %vm8226_vm3 = vcmp.eq.s32.totalorder %v5021_v9, %v6434_v56 }
 0x3a3   :  { %3888 = vmatpush3.msk.msra.mxu1 %vm2035_vm5, %v8107_v32  ;;  %3854 = vmatpush3.xpose.msk.msra.mxu0 %vm2067_vm11, %v8107_v32  ;;  %vm8222_vm5 = vcmp.eq.s32.totalorder %v5021_v9, %v6009_v35  ;;  %v8259_v35 = vld [vmem:[#allocation72_spill] sm:$0xff] }
 0x3a4   :  { %3889 = vmatprep.subr.msk.mxu1 %vm2050_vm15, %v8107_v32  ;;  %3855 = vmatprep.subr.msk.mxu0 %vm2082_vm8, %v8107_v32  ;;  %vm8218_vm15 = vcmp.eq.s32.totalorder %v5021_v9, %v6470_v43 }
 0x3a5   :  { %3890 = vmatpush3.msk.msra.mxu1 %vm2034_vm13, %v8107_v32  ;;  %vm8220_vm13 = vcmp.eq.s32.totalorder %v5021_v9, %v6215_v58  ;;  %v8275_v58 = vld [vmem:[#allocation68_spill] sm:$0xff] }
 0x3a6   :  { %3891 = vmatprep.subr.msk.mxu1 %vm2049_vm7, %v8107_v32  ;;  %vm8223_vm7 = vmmov %vm8219_vm1 }
 0x3a7   :  { %3892 = vmatpush3.msk.msra.mxu1 %vm2033_vm2, %v8107_v32  ;;  %v6837_v14 = vpop.f32.mrf.mxu1  ;;  %3856 = vmatpush3.xpose.msk.msra.mxu0 %vm8218_vm15, %v8107_v32  ;;  %vm8221_vm2 = vcmp.eq.s32.totalorder %v5021_v9, %v6662_v7  ;;  %vm8227_vm15 = vcmp.eq.s32.totalorder %v5021_v9, %v6194_v16  ;;  %v8282_v16 = vld [vmem:[#allocation11_spill] sm:$0xff] }
 0x3a8   :  { %2612 = vst.msk [vmem:[%s7728_s3 + $0x68] sm:$0xff] %vm8219_vm1, %v6837_v14  ;;  %3893 = vmatprep.subr.msk.mxu1 %vm8220_vm13, %v8107_v32  ;;  %3857 = vmatprep.subr.msk.mxu0 %vm8221_vm2, %v8107_v32  ;;  %vm8228_vm1 = vcmp.eq.s32.totalorder %v5021_v9, %v6664_v53  ;;  %vm8229_vm13 = vcmp.eq.s32.totalorder %v5021_v9, %v5981_v44 }
 0x3a9   :  { %3894 = vmatpush3.msk.msra.mxu1 %vm8222_vm5, %v8107_v32  ;;  %v6860_v52 = vpop.f32.mrf.mxu1  ;;  %vm8230_vm2 = vcmp.eq.s32.totalorder %v5021_v9, %v6174_v19  ;;  %vm8231_vm5 = vcmp.eq.s32.totalorder %v5021_v9, %v5951_v59  ;;  %v8277_v19 = vld [vmem:[#allocation12_spill] sm:$0xff] }
 0x3aa   :  { %2611 = vst.msk [vmem:[%s7728_s3 + $0x60] sm:$0xff] %vm8223_vm7, %v6860_v52  ;;  %3895 = vmatprep.subr.msk.mxu1 %vm8224_vm4, %v8107_v32  ;;  %vm8232_vm7 = vcmp.eq.s32.totalorder %v5021_v9, %v6436_v30  ;;  %vm8233_vm4 = vcmask 261120  }
 0x3ab   :  { %3896 = vmatpush3.msk.msra.mxu1 %vm8225_vm10, %v8107_v32  ;;  %3858 = vmatpush3.xpose.msk.msra.mxu0 %vm8226_vm3, %v8107_v32  ;;  %vm8234_vm10 = vcmp.eq.s32.totalorder %v5021_v9, %v6176_v20  ;;  %vm8235_vm3 = vcmp.eq.s32.totalorder %v5021_v9, %v6630_v57 }
 0x3ac   :  { %3897 = vmatprep.subr.msk.mxu1 %vm8227_vm15, %v8107_v32  ;;  %3859 = vmatprep.subr.msk.mxu0 %vm8228_vm1, %v8107_v32  ;;  %vm8236_vm15 = vcmp.eq.s32.totalorder %v5021_v9, %v5953_v33  ;;  %vm8237_vm1 = vmmov %vm8233_vm4  ;;  %v8257_v33 = vld [vmem:[#allocation59_spill] sm:$0xff] }
 0x3ad   :  { %3898 = vmatpush3.msk.msra.mxu1 %vm8229_vm13, %v8107_v32  ;;  %vm8238_vm13 = vcmp.eq.s32.totalorder %v5021_v9, %v6147_v61  ;;  %v8272_v61 = vld [vmem:[#allocation25_spill] sm:$0xff] }
 0x3ae   :  { %3899 = vmatprep.subr.msk.mxu1 %vm8230_vm2, %v8107_v32  ;;  %vm8239_vm2 = vcmp.eq.s32.totalorder %v5021_v9, %v5923_v63 }
 0x3af   :  { %3900 = vmatpush3.msk.msra.mxu1 %vm8231_vm5, %v8107_v32  ;;  %v6899_v50 = vpop.f32.mrf.mxu1  ;;  %3860 = vmatpush3.xpose.msk.msra.mxu0 %vm8232_vm7, %v8107_v32  ;;  %vm8240_vm5 = vcmp.eq.s32.totalorder %v5021_v9, %v6400_v47  ;;  %vm8241_vm7 = vcmp.eq.s32.totalorder %v5021_v9, %v6149_v28 }
 0x3b0   :  { %2614 = vst.msk [vmem:[%s7728_s3 + $0x78] sm:$0xff] %vm8233_vm4, %v6899_v50  ;;  %3901 = vmatprep.subr.msk.mxu1 %vm8234_vm10, %v8107_v32  ;;  %3861 = vmatprep.subr.msk.mxu0 %vm8235_vm3, %v8107_v32  ;;  %vm8242_vm4 = vcmp.eq.s32.totalorder %v5021_v9, %v6632_v13  ;;  %vm8243_vm10 = vcmp.eq.s32.totalorder %v5021_v9, %v5925_v6 }
 0x3b1   :  { %3902 = vmatpush3.msk.msra.mxu1 %vm8236_vm15, %v8107_v32  ;;  %v6922_v59 = vpop.f32.mrf.mxu1  ;;  %vm8244_vm3 = vcmp.eq.s32.totalorder %v5021_v9, %v6119_v4  ;;  %vm8245_vm15 = vcmp.eq.s32.totalorder %v5021_v9, %v8172_v31  ;;  %v8289_v31 = vld [vmem:[#allocation67_spill] sm:$0xff] }
 0x3b2   :  { %2613 = vst.msk [vmem:[%s7728_s3 + $0x70] sm:$0xff] %vm8237_vm1, %v6922_v59  ;;  %3903 = vmatprep.subr.msk.mxu1 %vm8238_vm13, %v8107_v32  ;;  %vm8246_vm1 = vcmp.eq.s32.totalorder %v5021_v9, %v6402_v1  ;;  %vm8247_vm13 = vcmask 261120  }
 0x3b3   :  { %3904 = vmatpush3.msk.msra.mxu1 %vm8239_vm2, %v8107_v32  ;;  %3862 = vmatpush3.xpose.msk.msra.mxu0 %vm8240_vm5, %v8107_v32  ;;  %vm8248_vm2 = vcmp.eq.s32.totalorder %v5021_v9, %v6121_v41  ;;  %vm8249_vm5 = vcmp.eq.s32.totalorder %v5021_v9, %v6598_v60  ;;  %v8269_v41 = vld [vmem:[#allocation71_spill] sm:$0xff] }
 0x3b4   :  { %3905 = vmatprep.subr.msk.mxu1 %vm8241_vm7, %v8107_v32  ;;  %3863 = vmatprep.subr.msk.mxu0 %vm8242_vm4, %v8107_v32  ;;  %vm8250_vm7 = vcmp.eq.s32.totalorder %v5021_v9, %v8176_v3  ;;  %vm8251_vm4 = vmmov %vm8247_vm13 }
 0x3b5   :  { %3906 = vmatpush3.msk.msra.mxu1 %vm8243_vm10, %v8107_v32  ;;  %vm8252_vm10 = vcmp.eq.s32.totalorder %v5021_v9, %v6091_v23  ;;  %v8265_v23 = vld [vmem:[#allocation70_spill] sm:$0xff] }
 0x3b6   :  { %3907 = vmatprep.subr.msk.mxu1 %vm8244_vm3, %v8107_v32  ;;  %vm8253_vm3 = vcmp.eq.s32.totalorder %v5021_v9, %v8179_v40 }
 0x3b7   :  { %3908 = vmatpush3.msk.msra.mxu1 %vm8245_vm15, %v8107_v32  ;;  %v6961_v63 = vpop.f32.mrf.mxu1  ;;  %3864 = vmatpush3.xpose.msk.msra.mxu0 %vm8246_vm1, %v8107_v32  ;;  %vm8254_vm15 = vcmp.eq.s32.totalorder %v5021_v9, %v6366_v51  ;;  %vm8255_vm1 = vcmp.eq.s32.totalorder %v5021_v9, %v6093_v24  ;;  %v8267_v24 = vld [vmem:[#allocation13_spill] sm:$0xff] }
 0x3b8   :  { %2616 = vst.msk [vmem:[%s7728_s3 + $0x88] sm:$0xff] %vm8247_vm13, %v6961_v63  ;;  %3909 = vmatprep.subr.msk.mxu1 %vm8248_vm2, %v8107_v32  ;;  %3865 = vmatprep.subr.msk.mxu0 %vm8249_vm5, %v8107_v32  ;;  %vm8256_vm13 = vcmp.eq.s32.totalorder %v5021_v9, %v6600_v29  ;;  %vm8258_vm2 = vcmp.eq.s32.totalorder %v5021_v9, %v8257_v33 }
 0x3b9   :  { %3910 = vmatpush3.msk.msra.mxu1 %vm8250_vm7, %v8107_v32  ;;  %v6984_v6 = vpop.f32.mrf.mxu1  ;;  %vm8260_vm5 = vcmp.eq.s32.totalorder %v5021_v9, %v8259_v35  ;;  %vm8261_vm7 = vmmov %vm8251_vm4 }
 0x3ba   :  { %2615 = vst.msk [vmem:[%s7728_s3 + $0x80] sm:$0xff] %vm8251_vm4, %v6984_v6  ;;  %3911 = vmatprep.subr.msk.mxu1 %vm8252_vm10, %v8107_v32  ;;  %vm8263_vm4 = vcmp.eq.s32.totalorder %v5021_v9, %v8262_v12  ;;  %vm8264_vm10 = vmmov %vm8261_vm7 }
 0x3bb   :  { %3912 = vmatpush3.msk.msra.mxu1 %vm8253_vm3, %v8107_v32  ;;  %3866 = vmatpush3.xpose.msk.msra.mxu0 %vm8254_vm15, %v8107_v32  ;;  %vm8266_vm3 = vcmp.eq.s32.totalorder %v5021_v9, %v8265_v23  ;;  %vm8268_vm15 = vcmp.eq.s32.totalorder %v5021_v9, %v8267_v24 }
 0x3bc   :  { %3913 = vmatprep.subr.msk.mxu1 %vm8255_vm1, %v8107_v32  ;;  %3867 = vmatprep.subr.msk.mxu0 %vm8256_vm13, %v8107_v32  ;;  %vm8270_vm1 = vcmp.eq.s32.totalorder %v5021_v9, %v8269_v41  ;;  %vm8271_vm13 = vmmov %vm8261_vm7 }
 0x3bd   :  { %3914 = vmatpush3.msk.msra.mxu1 %vm8258_vm2, %v8107_v32  ;;  %vm8273_vm2 = vcmp.eq.s32.totalorder %v5021_v9, %v8272_v61 }
 0x3be   :  { %2905 = vmatmul.mubr.f32.vlgmr.msra.gmra.mxu1 %v8107_v32 }
 0x3bf   :  { %v7016_v44 = vpop.f32.mrf.mxu1  ;;  %3868 = vmatpush3.xpose.msk.msra.mxu0 %vm8260_vm5, %v8107_v32  ;;  %3175 = vmatprep.mubr.f32.mxu1 %v8107_v32  ;;  %vm8274_vm5 = vmmov %vm8261_vm7 }
 0x3c0   :  { %2618 = vst.msk [vmem:[%s7728_s3 + $0x98] sm:$0xff] %vm8261_vm7, %v7016_v44  ;;  %3869 = vmatprep.subr.msk.mxu0 %vm8263_vm4, %v8107_v32  ;;  %vm8276_vm7 = vcmp.eq.s32.totalorder %v5021_v9, %v8275_v58  ;;  %vm8278_vm4 = vcmp.eq.s32.totalorder %v5021_v9, %v8277_v19 }
 0x3c1   :  { %v7032_v25 = vpop.f32.mrf.mxu1 }
 0x3c2   :  { %2617 = vst.msk [vmem:[%s7728_s3 + $0x90] sm:$0xff] %vm8264_vm10, %v7032_v25  ;;  %vm8280_vm10 = vcmp.eq.s32.totalorder %v5021_v9, %v8279_v34 }
 0x3c3   :  { %3870 = vmatpush3.xpose.msk.msra.mxu0 %vm8266_vm3, %v8107_v32  ;;  %vm8281_vm3 = vmmov %vm8274_vm5 }
 0x3c4   :  { %3871 = vmatprep.subr.msk.mxu0 %vm8268_vm15, %v8107_v32  ;;  %vm8283_vm15 = vcmp.eq.s32.totalorder %v5021_v9, %v8282_v16 }
 0x3c7   :  { %v7047_v4 = vpop.f32.mrf.mxu1  ;;  %3872 = vmatpush3.xpose.msk.msra.mxu0 %vm8270_vm1, %v8107_v32  ;;  %vm8284_vm1 = vmmov %vm8281_vm3 }
 0x3c8   :  { %2620 = vst.msk [vmem:[%s7728_s3 + $0xa8] sm:$0xff] %vm8271_vm13, %v7047_v4  ;;  %3873 = vmatprep.subr.msk.mxu0 %vm8273_vm2, %v8107_v32  ;;  %vm8286_vm13 = vcmp.eq.s32.totalorder %v5021_v9, %v8285_v18  ;;  %vm8288_vm2 = vcmp.eq.s32.totalorder %v5021_v9, %v8287_v37 }
 0x3c9   :  { %v7062_v28 = vpop.f32.mrf.mxu1 }
 0x3ca   :  { %2619 = vst.msk [vmem:[%s7728_s3 + $0xa0] sm:$0xff] %vm8274_vm5, %v7062_v28  ;;  %vm8290_vm5 = vcmp.eq.s32.totalorder %v5021_v9, %v8289_v31 }
 0x3cb   :  { %3874 = vmatpush3.xpose.msk.msra.mxu0 %vm8276_vm7, %v8107_v32  ;;  %vm8291_vm7 = vmmov %vm8284_vm1 }
 0x3cc   :  { %3875 = vmatprep.subr.msk.mxu0 %vm8278_vm4, %v8107_v32  ;;  %vm8292_vm4 = vmmov %vm8284_vm1 }
 0x3cf   :  { %v7077_v20 = vpop.f32.mrf.mxu1  ;;  %3876 = vmatpush3.xpose.msk.msra.mxu0 %vm8280_vm10, %v8107_v32  ;;  %vm8300_vm10 = vcmp.eq.s32.totalorder %v5021_v9, %v6436_v30  ;;  %v4296_v30 = vld [vmem:[%s7725_s0 + $0xf8] sm:$0xff] }
 0x3d0   :  { %2622 = vst.msk [vmem:[%s7728_s3 + $0xb8] sm:$0xff] %vm8281_vm3, %v7077_v20  ;;  %3877 = vmatprep.subr.msk.mxu0 %vm8283_vm15, %v8107_v32  ;;  %vm8301_vm3 = vmmov %vm8284_vm1  ;;  %vm8302_vm15 = vcmp.eq.s32.totalorder %v5021_v9, %v6630_v57 }
 0x3d1   :  { %v7092_v48 = vpop.f32.mrf.mxu1 }
 0x3d2   :  { %2621 = vst.msk [vmem:[%s7728_s3 + $0xb0] sm:$0xff] %vm8284_vm1, %v7092_v48 }
 0x3d3   :  { %3878 = vmatpush3.xpose.msk.msra.mxu0 %vm8286_vm13, %v8107_v32  ;;  %vm8304_vm13 = vmmov %vm8301_vm3 }
 0x3d4   :  { %3879 = vmatprep.subr.msk.mxu0 %vm8288_vm2, %v8107_v32  ;;  %vm8305_vm2 = vcmp.eq.s32.totalorder %v5021_v9, %v6632_v13  ;;  %v4299_v13 = vld [vmem:[%s7725_s0 + $0xf0] sm:$0xff] }
 0x3d7   :  { %v7107_v46 = vpop.f32.mrf.mxu1  ;;  %3880 = vmatpush3.xpose.msk.msra.mxu0 %vm8290_vm5, %v8107_v32  ;;  %vm8306_vm5 = vcmp.eq.s32.totalorder %v5021_v9, %v6402_v1  ;;  %v4300_v1 = vld [vmem:[%s7725_s0 + $0x68] sm:$0xff] }
 0x3d8   :  { %2624 = vst.msk [vmem:[%s7728_s3 + $0xc8] sm:$0xff] %vm8291_vm7, %v7107_v46  ;;  %3918 = vmatprep.subr.msk.mxu0 %vm2085_vm12, %v8107_v32  ;;  %vm8293_vm12 = vmmov %vm8284_vm1  ;;  %v2995_v15 = vsub.f32 %v6837_v14, %v4300_v1  ;;  %v8330_v1 = vld [vmem:[#allocation16_spill] sm:$0xff] }
 0x3d9   :  { %v7122_v3 = vpop.f32.mrf.mxu1  ;;  %vm8307_vm7 = vmmov %vm8301_vm3 }
 0x3da   :  { %2623 = vst.msk [vmem:[%s7728_s3 + $0xc0] sm:$0xff] %vm8292_vm4, %v7122_v3  ;;  %3882 = vmatmul.mubr.f32.vlgmr.msra.gmra.mxu0 %v6219_v62  ;;  %vm8308_vm4 = vcmp.eq.s32.totalorder %v5021_v9, %v6598_v60 }
 0x3db   :  { %3919 = vmatpush3.msk.msra.mxu0 %vm2069_vm9, %v8107_v32  ;;  %2974 = vmatprep.mubr.f32.mxu0 %v8107_v32  ;;  %vm8295_vm9 = vmmov %vm8284_vm1 }
 0x3dc   :  { %3920 = vmatprep.subr.msk.mxu0 %vm2084_vm0, %v8107_v32  ;;  %vm8299_vm0 = vcmp.eq.s32.totalorder %v5021_v9, %v6664_v53 }
 0x3dd   :  { %3921 = vmatpush3.msk.msra.mxu0 %vm2068_vm6, %v8107_v32  ;;  %vm8294_vm6 = vcmp.eq.s32.totalorder %v5021_v9, %v6470_v43 }
 0x3de   :  { %3922 = vmatprep.subr.msk.mxu0 %vm2083_vm14, %v8107_v32  ;;  %vm8298_vm14 = vmmov %vm8284_vm1  ;;  %vm8303_vm1 = vcmp.eq.s32.totalorder %v5021_v9, %v6400_v47  ;;  %v4297_v47 = vld [vmem:[%s7725_s0 + $0x70] sm:$0xff] }
 0x3df   :  { %v4224_v62 = vpop.f32.mrf.mxu1  ;;  %3923 = vmatpush3.msk.msra.mxu0 %vm2067_vm11, %v8107_v32  ;;  %vm8296_vm11 = vcmp.eq.s32.totalorder %v5021_v9, %v6662_v7  ;;  %v2996_v7 = vsub.f32 %v6922_v59, %v4297_v47 }
 0x3e0   :  { %2626 = vst.msk [vmem:[%s7728_s3 + $0xd8] sm:$0xff] %vm8293_vm12, %v4224_v62  ;;  %3924 = vmatprep.subr.msk.mxu0 %vm2082_vm8, %v8107_v32  ;;  %vm8297_vm8 = vcmp.eq.s32.totalorder %v5021_v9, %v6434_v56  ;;  %v4295_v56 = vld [vmem:[%s7725_s0 + $0x78] sm:$0xff]  ;;  %vm8309_vm12 = vcmp.eq.s32.totalorder %v5021_v9, %v6366_v51  ;;  %v4302_v51 = vld [vmem:[%s7725_s0 + $0x60] sm:$0xff] }
 0x3e1   :  { %v2410_v54 = vpop.f32.mrf.mxu1  ;;  %3925 = vmatpush3.msk.msra.mxu0 %vm8294_vm6, %v8107_v32  ;;  %v2997_v17 = vsub.f32 %v6899_v50, %v4295_v56  ;;  %vm8310_vm6 = vmmov %vm8301_vm3  ;;  %v2994_v8 = vsub.f32 %v6860_v52, %v4302_v51  ;;  %v3061_v39 = vmul.f32 %v2996_v7, %v2996_v7  ;;  %v4304_v52 = vld [vmem:[%s7725_s0 + $0x58] sm:$0xff] }
 0x3e2   :  { %2625 = vst.msk [vmem:[%s7728_s3 + $0xd0] sm:$0xff] %vm8295_vm9, %v2410_v54  ;;  %3926 = vmatprep.subr.msk.mxu0 %vm8296_vm11, %v8107_v32  ;;  %vm8311_vm9 = vcmp.eq.s32.totalorder %v5021_v9, %v6600_v29  ;;  %vm8312_vm11 = vcmp.eq.s32.totalorder %v5021_v9, %v8259_v35  ;;  %v4303_v29 = vld [vmem:[%s7725_s0 + $0xd8] sm:$0xff]  ;;  %v2993_v33 = vsub.f32 %v6774_v26, %v4304_v52  ;;  %v4306_v26 = vld [vmem:[%s7725_s0 + $0x50] sm:$0xff] }
 0x3e3   :  { %v4227_v55 = vpop.f32.mrf.mxu1  ;;  %3927 = vmatpush3.msk.msra.mxu0 %vm8297_vm8, %v8107_v32  ;;  %v3062_v36 = vmul.f32 %v2997_v17, %v2997_v17  ;;  %v3009_v50 = vsub.f32 %v4224_v62, %v4303_v29  ;;  %vm8313_vm8 = vmmov %vm8301_vm3  ;;  %v3060_v35 = vmul.f32 %v2995_v15, %v2995_v15  ;;  %v8334_v52 = vld [vmem:[#allocation31_spill] sm:$0xff] }
 0x3e4   :  { %2628 = vst.msk [vmem:[%s7728_s3 + $0xe8] sm:$0xff] %vm8298_vm14, %v4227_v55  ;;  %3928 = vmatprep.subr.msk.mxu0 %vm8299_vm0, %v8107_v32  ;;  %v3011_v10 = vsub.f32 %v4227_v55, %v4298_v38  ;;  %vm8314_vm14 = vcmp.eq.s32.totalorder %v5021_v9, %v8262_v12  ;;  %vm8315_vm0 = vcmp.eq.s32.totalorder %v5021_v9, %v8265_v23  ;;  %v4305_v12 = vld [vmem:[%s7725_s0 + $0xd0] sm:$0xff] }
 0x3e5   :  { %v2420_v43 = vpop.f32.mrf.mxu1  ;;  %3929 = vmatpush3.msk.msra.mxu0 %vm8300_vm10, %v8107_v32  ;;  %v3008_v55 = vsub.f32 %v2410_v54, %v4305_v12  ;;  %vm8316_vm10 = vmmov %vm8301_vm3  ;;  %v2992_v23 = vsub.f32 %v6797_v0, %v4306_v26  ;;  %v3059_v54 = vmul.f32 %v2994_v8, %v2994_v8  ;;  %v4308_v0 = vld [vmem:[%s7725_s0 + $0x48] sm:$0xff] }
 0x3e6   :  { %2627 = vst.msk [vmem:[%s7728_s3 + $0xe0] sm:$0xff] %vm8301_vm3, %v2420_v43  ;;  %3930 = vmatprep.subr.msk.mxu0 %vm8302_vm15, %v8107_v32  ;;  %v3010_v60 = vsub.f32 %v2420_v43, %v4301_v42  ;;  %v3076_v59 = vmul.f32 %v3011_v10, %v3011_v10  ;;  %vm8317_vm3 = vcmp.eq.s32.totalorder %v5021_v9, %v8267_v24  ;;  %v4307_v24 = vld [vmem:[%s7725_s0 + $0xc8] sm:$0xff]  ;;  %v4313_v10 = vld [vmem:[%s7725_s0 + $0xb0] sm:$0xff] }
 0x3e7   :  { %v4230_v40 = vpop.f32.mrf.mxu1  ;;  %3931 = vmatpush3.msk.msra.mxu0 %vm8303_vm1, %v8107_v32  ;;  %vm8318_vm15 = vcmp.eq.s32.totalorder %v5021_v9, %v8269_v41  ;;  %v3007_v17 = vsub.f32 %v7107_v46, %v4307_v24  ;;  %vm8319_vm1 = vmmov %vm8310_vm6  ;;  %v2991_v41 = vsub.f32 %v6736_v27, %v4308_v0  ;;  %v3058_v46 = vmul.f32 %v2993_v33, %v2993_v33  ;;  %v4310_v27 = vld [vmem:[%s7725_s0 + $0x40] sm:$0xff]  ;;  %v8335_v26 = vld [vmem:[#allocation15_spill] sm:$0xff] }
 0x3e8   :  { %2630 = vst.msk [vmem:[%s7728_s3 + $0xf8] sm:$0xff] %vm8304_vm13, %v4230_v40  ;;  %v3013_v57 = vsub.f32 %v4230_v40, %v4296_v30  ;;  %3932 = vmatprep.subr.msk.mxu0 %vm8305_vm2, %v8107_v32  ;;  %v3075_v43 = vmul.f32 %v3010_v60, %v3010_v60  ;;  %v3074_v40 = vmul.f32 %v3009_v50, %v3009_v50  ;;  %v4318_v60 = vld [vmem:[%s7725_s0 + $0x20] sm:$0xff]  ;;  %v4323_v24 = vld [vmem:[%s7725_s0 + $0x88] sm:$0xff] }
 0x3e9   :  { %v2430_v53 = vpop.f32.mrf.mxu1  ;;  %3933 = vmatpush3.msk.msra.mxu0 %vm8306_vm5, %v8107_v32  ;;  %vm8320_vm13 = vcmp.eq.s32.totalorder %v5021_v9, %v8272_v61  ;;  %vm8321_vm2 = vcmp.eq.s32.totalorder %v5021_v9, %v8275_v58  ;;  %v4309_v61 = vld [vmem:[%s7725_s0 + $0xc0] sm:$0xff]  ;;  %v3073_v47 = vmul.f32 %v3008_v55, %v3008_v55  ;;  %vm8322_vm5 = vmmov %vm8319_vm1  ;;  %v2990_v58 = vsub.f32 %v6743_v21, %v4310_v27  ;;  %v4312_v21 = vld [vmem:[%s7725_s0 + $0x38] sm:$0xff] }
 0x3ea   :  { %v3078_v45 = vmul.f32 %v3013_v57, %v3013_v57  ;;  %2629 = vst.msk [vmem:[%s7728_s3 + $0xf0] sm:$0xff] %vm8307_vm7, %v2430_v53  ;;  %v3012_v11 = vsub.f32 %v2430_v53, %v4299_v13  ;;  %3934 = vmatprep.subr.msk.mxu0 %vm8308_vm4, %v8107_v32  ;;  %v3006_v57 = vsub.f32 %v7122_v3, %v4309_v61  ;;  %v8336_v0 = vld [vmem:[#allocation29_spill] sm:$0xff] }
 0x3eb   :  { %v7240_v49 = vpop.f32.mrf.mxu1  ;;  %3935 = vmatpush3.msk.msra.mxu0 %vm8309_vm12, %v8107_v32  ;;  %vm8323_vm7 = vcmp.eq.s32.totalorder %v5021_v9, %v8277_v19  ;;  %v3057_v3 = vmul.f32 %v2992_v23, %v2992_v23  ;;  %vm8324_vm4 = vcmp.eq.s32.totalorder %v5021_v9, %v8279_v34  ;;  %v4311_v19 = vld [vmem:[%s7725_s0 + $0xb8] sm:$0xff]  ;;  %v3072_v38 = vmul.f32 %v3007_v17, %v3007_v17  ;;  %vm8325_vm12 = vmmov %vm8319_vm1 }
 0x3ec   :  { %v3077_v22 = vmul.f32 %v3012_v11, %v3012_v11  ;;  %2632 = vst.msk [vmem:[%s7728_s3 + $0x108] sm:$0xff] %vm8310_vm6, %v7240_v49  ;;  %3936 = vmatprep.subr.msk.mxu0 %vm8311_vm9, %v8107_v32  ;;  %3953 = vmatprep.subr.mxu1 %v3078_v45  ;;  %v3005_v53 = vsub.f32 %v7077_v20, %v4311_v19 }
 0x3ed   :  { %v7262_v14 = vpop.f32.mrf.mxu1  ;;  %3937 = vmatpush3.msk.msra.mxu0 %vm8312_vm11, %v8107_v32  ;;  %3954 = vmatpush3.msra.mxu1 %v3062_v36  ;;  %vm8326_vm6 = vcmp.eq.s32.totalorder %v5021_v9, %v8282_v16  ;;  %v2989_v34 = vsub.f32 %v6699_v2, %v4312_v21  ;;  %v3056_v20 = vmul.f32 %v2991_v41, %v2991_v41  ;;  %v4314_v2 = vld [vmem:[%s7725_s0 + $0x30] sm:$0xff] }
 0x3ee   :  { %2631 = vst.msk [vmem:[%s7728_s3 + $0x100] sm:$0xff] %vm8313_vm8, %v7262_v14  ;;  %3938 = vmatprep.subr.msk.mxu0 %vm8314_vm14, %v8107_v32  ;;  %3955 = vmatprep.subr.mxu1 %v3077_v22  ;;  %vm8327_vm9 = vcmp.eq.s32.totalorder %v5021_v9, %v8285_v18  ;;  %v3004_v16 = vsub.f32 %v7092_v48, %v4313_v10  ;;  %v4315_v48 = vld [vmem:[%s7725_s0 + $0xa8] sm:$0xff]  ;;  %vm8331_vm14 = vmmov %vm8319_vm1  ;;  %v8332_v22 = vld [vmem:[#allocation17_spill] sm:$0xff] }
 0x3ef   :  { %v7284_v62 = vpop.f32.mrf.mxu1  ;;  %3939 = vmatpush3.msk.msra.mxu0 %vm8315_vm0, %v8107_v32  ;;  %3956 = vmatpush3.msra.mxu1 %v3061_v39  ;;  %v3071_v45 = vmul.f32 %v3006_v57, %v3006_v57  ;;  %vm8328_vm11 = vcmp.eq.s32.totalorder %v5021_v9, %v8287_v37  ;;  %v2988_v18 = vsub.f32 %v6707_v5, %v4314_v2  ;;  %v4316_v5 = vld [vmem:[%s7725_s0 + $0x28] sm:$0xff]  ;;  %vm8333_vm0 = vmmov %vm8319_vm1  ;;  %v4325_v57 = vld [vmem:[%s7725_s0 + $0x80] sm:$0xff] }
 0x3f0   :  { %2634 = vst.msk [vmem:[%s7728_s3 + $0x118] sm:$0xff] %vm8316_vm10, %v7284_v62  ;;  %3940 = vmatprep.subr.msk.mxu0 %vm8317_vm3, %v8107_v32  ;;  %3957 = vmatprep.subr.mxu1 %v3076_v59  ;;  %v3055_v13 = vmul.f32 %v2990_v58, %v2990_v58  ;;  %vm8329_vm8 = vcmp.eq.s32.totalorder %v5021_v9, %v8289_v31  ;;  %v4320_v59 = vld [vmem:[%s7725_s0 + $0x18] sm:$0xff]  ;;  %vm8337_vm10 = vmmov %vm8333_vm0  ;;  %v8338_v58 = vld [vmem:[#allocation14_spill] sm:$0xff] }
 0x3f1   :  { %v7306_v56 = vpop.f32.mrf.mxu1  ;;  %3941 = vmatpush3.msk.msra.mxu0 %vm8318_vm15, %v8107_v32  ;;  %3958 = vmatpush3.msra.mxu1 %v3060_v35  ;;  %v3003_v37 = vsub.f32 %v7047_v4, %v4315_v48  ;;  %v3070_v11 = vmul.f32 %v3005_v53, %v3005_v53  ;;  %v2987_v15 = vsub.f32 %v8330_v1, %v4316_v5  ;;  %v4317_v4 = vld [vmem:[%s7725_s0 + $0xa0] sm:$0xff]  ;;  %vm8339_vm3 = vmmov %vm8333_vm0 }
 0x3f2   :  { %2633 = vst.msk [vmem:[%s7728_s3 + $0x110] sm:$0xff] %vm8319_vm1, %v7306_v56  ;;  %3942 = vmatprep.subr.msk.mxu0 %vm8320_vm13, %v8107_v32  ;;  %3959 = vmatprep.subr.mxu1 %v3075_v43  ;;  %v3054_v36 = vmul.f32 %v2989_v34, %v2989_v34  ;;  %v3002_v31 = vsub.f32 %v7062_v28, %v4317_v4  ;;  %v4319_v28 = vld [vmem:[%s7725_s0 + $0x98] sm:$0xff]  ;;  %v4322_v43 = vld [vmem:[%s7725_s0 + $0x10] sm:$0xff]  ;;  %vm8340_vm15 = vmmov %vm8333_vm0 }
 0x3f3   :  { %v7329_v30 = vpop.f32.mrf.mxu1  ;;  %3943 = vmatpush3.msk.msra.mxu0 %vm8321_vm2, %v8107_v32  ;;  %3960 = vmatpush3.msra.mxu1 %v3059_v54  ;;  %v3069_v42 = vmul.f32 %v3004_v16, %v3004_v16  ;;  %v2986_v51 = vsub.f32 %v8332_v22, %v4318_v60  ;;  %v3053_v8 = vmul.f32 %v2988_v18, %v2988_v18  ;;  %vm8341_vm1 = vmmov %vm8333_vm0 }
 0x3f4   :  { %2636 = vst.msk [vmem:[%s7728_s3 + $0x128] sm:$0xff] %vm8322_vm5, %v7329_v30  ;;  %3944 = vmatprep.subr.msk.mxu0 %vm8323_vm7, %v8107_v32  ;;  %3961 = vmatprep.subr.mxu1 %v3074_v40  ;;  %v3001_v29 = vsub.f32 %v7016_v44, %v4319_v28  ;;  %v3068_v50 = vmul.f32 %v3003_v37, %v3003_v37  ;;  %v4321_v44 = vld [vmem:[%s7725_s0 + $0x90] sm:$0xff]  ;;  %vm8342_vm13 = vmmov %vm8333_vm0  ;;  %v4327_v28 = vld [vmem:[%s7725_s0 + $0x178] sm:$0xff] }
 0x3f5   :  { %v7352_v7 = vpop.f32.mrf.mxu1  ;;  %3945 = vmatpush3.msk.msra.mxu0 %vm8324_vm4, %v8107_v32  ;;  %3962 = vmatpush3.msra.mxu1 %v3058_v46  ;;  %v2985_v33 = vsub.f32 %v8334_v52, %v4320_v59  ;;  %v3052_v35 = vmul.f32 %v2987_v15, %v2987_v15  ;;  %v3000_v12 = vsub.f32 %v7032_v25, %v4321_v44  ;;  %v4324_v25 = vld [vmem:[%s7725_s0 + $0x8] sm:$0xff]  ;;  %vm8343_vm2 = vmmov %vm8333_vm0  ;;  %v4328_v59 = vld [vmem:[%s7725_s0 + $0x1f8] sm:$0xff] }
 0x3f6   :  { %2635 = vst.msk [vmem:[%s7728_s3 + $0x120] sm:$0xff] %vm8325_vm12, %v7352_v7  ;;  %3946 = vmatprep.subr.msk.mxu0 %vm8326_vm6, %v8107_v32  ;;  %3963 = vmatprep.subr.mxu1 %v3073_v47  ;;  %v3067_v55 = vmul.f32 %v3002_v31, %v3002_v31  ;;  %v2984_v23 = vsub.f32 %v8335_v26, %v4322_v43  ;;  %vm8344_vm5 = vmmov %vm8333_vm0  ;;  %v4331_v26 = vld [vmem:[%s7725_s0 + $0x1f0] sm:$0xff] }
 0x3f7   :  { %3947 = vmatpush3.msk.msra.mxu0 %vm8327_vm9, %v8107_v32  ;;  %3964 = vmatpush3.msra.mxu1 %v3057_v3  ;;  %v3051_v54 = vmul.f32 %v2986_v51, %v2986_v51  ;;  %v2999_v17 = vsub.f32 %v6961_v63, %v4323_v24  ;;  %v3066_v40 = vmul.f32 %v3001_v29, %v3001_v29  ;;  %v4326_v63 = vld [vmem:[%s7725_s0] sm:$0xff]  ;;  %vm8345_vm7 = vmmov %vm8333_vm0 }
 0x3f8   :  { %3948 = vmatprep.subr.msk.mxu0 %vm8328_vm11, %v8107_v32  ;;  %3965 = vmatprep.subr.mxu1 %v3072_v38  ;;  %v2983_v41 = vsub.f32 %v8336_v0, %v4324_v25  ;;  %v3050_v46 = vmul.f32 %v2985_v33, %v2985_v33  ;;  %v2998_v47 = vsub.f32 %v6984_v6, %v4325_v57  ;;  %vm8346_vm4 = vmmov %vm8333_vm0  ;;  %v4329_v33 = vld [vmem:[%s7725_s0 + $0x170] sm:$0xff] }
 0x3f9   :  { %3949 = vmatpush3.msk.msra.mxu0 %vm8329_vm8, %v8107_v32  ;;  %3966 = vmatpush3.msra.mxu1 %v3056_v20  ;;  %v3065_v27 = vmul.f32 %v3000_v12, %v3000_v12  ;;  %v2982_v3 = vsub.f32 %v8338_v58, %v4326_v63  ;;  %v3049_v19 = vmul.f32 %v2984_v23, %v2984_v23  ;;  %vm8347_vm12 = vmmov %vm8333_vm0  ;;  %v4330_v12 = vld [vmem:[%s7725_s0 + $0x1e8] sm:$0xff]  ;;  %v4336_v58 = vld [vmem:[%s7725_s0 + $0x158] sm:$0xff] }
 0x3fa   :  { %3967 = vmatprep.subr.mxu1 %v3071_v45  ;;  %2975 = vmatmul.mubr.f32.vlgmr.msra.gmra.mxu0 %v8107_v32  ;;  %v3064_v38 = vmul.f32 %v2999_v17, %v2999_v17  ;;  %v3048_v6 = vmul.f32 %v2983_v41, %v2983_v41  ;;  %v3063_v21 = vmul.f32 %v2998_v47, %v2998_v47  ;;  %vm8348_vm6 = vmmov %vm8333_vm0  ;;  %v4334_v41 = vld [vmem:[%s7725_s0 + $0x160] sm:$0xff]  ;;  %v4335_v47 = vld [vmem:[%s7725_s0 + $0x1d8] sm:$0xff] }
 0x3fb   :  { %v7404_v9 = vpop.f32.mrf.mxu1  ;;  %3968 = vmatpush3.msra.mxu1 %v3055_v13  ;;  %3245 = vmatprep.mubr.f32.mxu0 %v8107_v32  ;;  %v3047_v34 = vmul.f32 %v2982_v3, %v2982_v3  ;;  %vm8349_vm9 = vmmov %vm8333_vm0 }
 0x3fc   :  { %2638 = vst.msk [vmem:[%s7728_s3 + $0x138] sm:$0xff] %vm8331_vm14, %v7404_v9  ;;  %3969 = vmatprep.subr.mxu1 %v3070_v11  ;;  %vm8350_vm11 = vmmov %vm8333_vm0 }
 0x3fd   :  { %v7420_v39 = vpop.f32.mrf.mxu1  ;;  %3970 = vmatpush3.msra.mxu1 %v3054_v36  ;;  %vm8351_vm8 = vmmov %vm8333_vm0  ;;  %v4424_v36 = vmov 0.0  }
 0x3fe   :  { %2637 = vst.msk [vmem:[%s7728_s3 + $0x130] sm:$0xff] %vm8333_vm0, %v7420_v39  ;;  %3971 = vmatprep.subr.mxu1 %v3069_v42  ;;  %24 = vst [vmem:[#allocation2] sm:$0x1] %v4424_v36 }
 0x3ff   :  { %3972 = vmatpush3.msra.mxu1 %v3053_v8  ;;  %vm8352_vm14 = vmmov %vm8333_vm0 }
 0x400   :  { %3973 = vmatprep.subr.mxu1 %v3068_v50 }
 0x401   :  { %3974 = vmatpush3.msra.mxu1 %v3052_v35 }
 0x402   :  { %3975 = vmatprep.subr.mxu1 %v3067_v55 }
 0x403   :  { %v7451_v61 = vpop.f32.mrf.mxu1  ;;  %3976 = vmatpush3.msra.mxu1 %v3051_v54  ;;  %v4332_v54 = vld [vmem:[%s7725_s0 + $0x168] sm:$0xff] }
 0x404   :  { %2640 = vst.msk [vmem:[%s7728_s3 + $0x148] sm:$0xff] %vm8337_vm10, %v7451_v61  ;;  %3977 = vmatprep.subr.mxu1 %v3066_v40  ;;  %vm8353_vm10 = vmmov %vm8333_vm0  ;;  %v4333_v40 = vld [vmem:[%s7725_s0 + $0x1e0] sm:$0xff] }
 0x405   :  { %v7466_v53 = vpop.f32.mrf.mxu1  ;;  %3978 = vmatpush3.msra.mxu1 %v3050_v46 }
 0x406   :  { %2639 = vst.msk [vmem:[%s7728_s3 + $0x140] sm:$0xff] %vm8339_vm3, %v7466_v53  ;;  %3979 = vmatprep.subr.mxu1 %v3065_v27  ;;  %vm8354_vm3 = vmmov %vm8333_vm0 }
 0x407   :  { %3980 = vmatpush3.msra.mxu1 %v3049_v19 }
 0x408   :  { %3981 = vmatprep.subr.mxu1 %v3064_v38  ;;  %v4337_v38 = vld [vmem:[%s7725_s0 + $0x1d0] sm:$0xff] }
 0x409   :  { %3982 = vmatpush3.msra.mxu1 %v3048_v6 }
 0x40a   :  { %3983 = vmatprep.subr.mxu1 %v3063_v21 }
 0x40b   :  { %v7473_v20 = vpop.f32.mrf.mxu1  ;;  %3984 = vmatpush3.msra.mxu1 %v3047_v34  ;;  %v4338_v34 = vld [vmem:[%s7725_s0 + $0x150] sm:$0xff] }
 0x40c   :  { %2642 = vst.msk [vmem:[%s7728_s3 + $0x158] sm:$0xff] %vm8340_vm15, %v7473_v20  ;;  %3176 = vmatmul.mubr.f32.vlgmr.msra.gmra.mxu1 %v8107_v32  ;;  %vm8355_vm15 = vmmov %vm8333_vm0  ;;  %v3025_v3 = vsub.f32 %v7473_v20, %v4336_v58  ;;  %v4339_v20 = vld [vmem:[%s7725_s0 + $0x1c8] sm:$0xff] }
 0x40d   :  { %v7481_v10 = vpop.f32.mrf.mxu1 }
 0x40e   :  { %2641 = vst.msk [vmem:[%s7728_s3 + $0x150] sm:$0xff] %vm8341_vm1, %v7481_v10  ;;  %vm8356_vm1 = vmmov %vm8333_vm0 }
 0x413   :  { %v4251_v16 = vpop.f32.mrf.mxu1 }
 0x414   :  { %2644 = vst.msk [vmem:[%s7728_s3 + $0x168] sm:$0xff] %vm8342_vm13, %v4251_v16  ;;  %vm8357_vm13 = vmmov %vm8333_vm0  ;;  %v3027_v24 = vsub.f32 %v4251_v16, %v4332_v54  ;;  %v3024_v16 = vsub.f32 %v7481_v10, %v4338_v34  ;;  %v4341_v10 = vld [vmem:[%s7725_s0 + $0x1c0] sm:$0xff] }
 0x415   :  { %v2500_v45 = vpop.f32.mrf.mxu1 }
 0x416   :  { %2643 = vst.msk [vmem:[%s7728_s3 + $0x160] sm:$0xff] %vm8343_vm2, %v2500_v45  ;;  %vm8358_vm2 = vmmov %vm8333_vm0  ;;  %v3026_v46 = vsub.f32 %v2500_v45, %v4334_v41  ;;  %v3092_v19 = vmul.f32 %v3027_v24, %v3027_v24 }
 0x418   :  { %v3091_v45 = vmul.f32 %v3026_v46, %v3026_v46 }
 0x41b   :  { %v4254_v2 = vpop.f32.mrf.mxu1 }
 0x41c   :  { %2646 = vst.msk [vmem:[%s7728_s3 + $0x178] sm:$0xff] %vm8344_vm5, %v4254_v2  ;;  %v3029_v29 = vsub.f32 %v4254_v2, %v4327_v28  ;;  %vm8359_vm5 = vmmov %vm8333_vm0 }
 0x41d   :  { %v2510_v18 = vpop.f32.mrf.mxu1 }
 0x41e   :  { %2645 = vst.msk [vmem:[%s7728_s3 + $0x170] sm:$0xff] %vm8345_vm7, %v2510_v18  ;;  %v3028_v35 = vsub.f32 %v2510_v18, %v4329_v33  ;;  %vm8360_vm7 = vmmov %vm8333_vm0  ;;  %v3094_v17 = vmul.f32 %v3029_v29, %v3029_v29 }
 0x420   :  { %v3093_v57 = vmul.f32 %v3028_v35, %v3028_v35 }
 0x423   :  { %v7504_v13 = vpop.f32.mrf.mxu1 }
 0x424   :  { %2648 = vst.msk [vmem:[%s7728_s3 + $0x188] sm:$0xff] %vm8346_vm4, %v7504_v13 }
 0x425   :  { %v7511_v48 = vpop.f32.mrf.mxu1 }
 0x426   :  { %2647 = vst.msk [vmem:[%s7728_s3 + $0x180] sm:$0xff] %vm8347_vm12, %v7511_v48  ;;  %vm25_vm12 = vcmask 253952  }
 0x427   :  { %26 = vst.msk [vmem:[#allocation3] sm:$0x1] %vm25_vm12, %v4424_v36 }
 0x42b   :  { %v7518_v37 = vpop.f32.mrf.mxu1 }
 0x42c   :  { %2650 = vst.msk [vmem:[%s7728_s3 + $0x198] sm:$0xff] %vm8348_vm6, %v7518_v37 }
 0x42d   :  { %v7525_v11 = vpop.f32.mrf.mxu1 }
 0x42e   :  { %2649 = vst.msk [vmem:[%s7728_s3 + $0x190] sm:$0xff] %vm8349_vm9, %v7525_v11 }
 0x433   :  { %v7532_v5 = vpop.f32.mrf.mxu1 }
 0x434   :  { %2652 = vst.msk [vmem:[%s7728_s3 + $0x1a8] sm:$0xff] %vm8350_vm11, %v7532_v5 }
 0x435   :  { %v7539_v1 = vpop.f32.mrf.mxu1 }
 0x436   :  { %2651 = vst.msk [vmem:[%s7728_s3 + $0x1a0] sm:$0xff] %vm8351_vm8, %v7539_v1 }
 0x43b   :  { %v7546_v15 = vpop.f32.mrf.mxu1 }
 0x43c   :  { %2654 = vst.msk [vmem:[%s7728_s3 + $0x1b8] sm:$0xff] %vm8352_vm14, %v7546_v15 }
 0x43d   :  { %v7554_v4 = vpop.f32.mrf.mxu1 }
 0x43e   :  { %2653 = vst.msk [vmem:[%s7728_s3 + $0x1b0] sm:$0xff] %vm8333_vm0, %v7554_v4 }
 0x443   :  { %v4269_v31 = vpop.f32.mrf.mxu1 }
 0x444   :  { %2656 = vst.msk [vmem:[%s7728_s3 + $0x1c8] sm:$0xff] %vm8353_vm10, %v4269_v31  ;;  %v3039_v2 = vsub.f32 %v4269_v31, %v4339_v20  ;;  %v4342_v31 = vld [vmem:[%s7725_s0 + $0x140] sm:$0xff] }
 0x445   :  { %v2560_v42 = vpop.f32.mrf.mxu1  ;;  %v3022_v29 = vsub.f32 %v7466_v53, %v4342_v31  ;;  %v4345_v53 = vld [vmem:[%s7725_s0 + $0x1b0] sm:$0xff] }
 0x446   :  { %2655 = vst.msk [vmem:[%s7728_s3 + $0x1c0] sm:$0xff] %vm8354_vm3, %v2560_v42 }
 0x44b   :  { %v4272_v60 = vpop.f32.mrf.mxu1 }
 0x44c   :  { %2658 = vst.msk [vmem:[%s7728_s3 + $0x1d8] sm:$0xff] %vm8355_vm15, %v4272_v60  ;;  %v3041_v27 = vsub.f32 %v4272_v60, %v4335_v47  ;;  %v4340_v60 = vld [vmem:[%s7725_s0 + $0x148] sm:$0xff] }
 0x44d   :  { %v2570_v22 = vpop.f32.mrf.mxu1 }
 0x44e   :  { %2657 = vst.msk [vmem:[%s7728_s3 + $0x1d0] sm:$0xff] %vm8356_vm1, %v2570_v22  ;;  %v3040_v6 = vsub.f32 %v2570_v22, %v4337_v38  ;;  %v3106_v18 = vmul.f32 %v3041_v27, %v3041_v27  ;;  %v3023_v22 = vsub.f32 %v7451_v61, %v4340_v60  ;;  %v4343_v61 = vld [vmem:[%s7725_s0 + $0x1b8] sm:$0xff] }
 0x450   :  { %v3105_v28 = vmul.f32 %v3040_v6, %v3040_v6  ;;  %v3088_v35 = vmul.f32 %v3023_v22, %v3023_v22 }
 0x453   :  { %v4275_v51 = vpop.f32.mrf.mxu1 }
 0x454   :  { %2660 = vst.msk [vmem:[%s7728_s3 + $0x1e8] sm:$0xff] %vm8357_vm13, %v4275_v51  ;;  %v3043_v55 = vsub.f32 %v4275_v51, %v4330_v12  ;;  %v3090_v51 = vmul.f32 %v3025_v3, %v3025_v3 }
 0x455   :  { %v2580_v8 = vpop.f32.mrf.mxu1 }
 0x456   :  { %2659 = vst.msk [vmem:[%s7728_s3 + $0x1e0] sm:$0xff] %vm8358_vm2, %v2580_v8  ;;  %v3042_v25 = vsub.f32 %v2580_v8, %v4333_v40  ;;  %v3108_v63 = vmul.f32 %v3043_v55, %v3043_v55  ;;  %v3038_v8 = vsub.f32 %v2560_v42, %v4341_v10  ;;  %v4344_v42 = vld [vmem:[%s7725_s0 + $0x138] sm:$0xff] }
 0x457   :  { %v3021_v33 = vsub.f32 %v7404_v9, %v4344_v42  ;;  %v4347_v9 = vld [vmem:[%s7725_s0 + $0x1a8] sm:$0xff] }
 0x458   :  { %v3107_v21 = vmul.f32 %v3042_v25, %v3042_v25  ;;  %v3103_v12 = vmul.f32 %v3038_v8, %v3038_v8 }
 0x459   :  { %v3086_v24 = vmul.f32 %v3021_v33, %v3021_v33 }
 0x45a   :  { %v4278_v50 = vpop.f32.mrf.mxu1 }
 0x45b   :  { %2662 = vst.msk [vmem:[%s7728_s3 + $0x1f8] sm:$0xff] %vm8359_vm5, %v4278_v50  ;;  %v3045_v52 = vsub.f32 %v4278_v50, %v4328_v59  ;;  %v3089_v50 = vmul.f32 %v3024_v16, %v3024_v16  ;;  %v3037_v59 = vsub.f32 %v7546_v15, %v4343_v61  ;;  %v4346_v15 = vld [vmem:[%s7725_s0 + $0x130] sm:$0xff] }
 0x45c   :  { %v2590_v44 = vpop.f32.mrf.mxu1  ;;  %v3020_v55 = vsub.f32 %v7420_v39, %v4346_v15  ;;  %v4349_v39 = vld [vmem:[%s7725_s0 + $0x1a0] sm:$0xff] }
 0x45d   :  { %v3110_v43 = vmul.f32 %v3045_v52, %v3045_v52  ;;  %2661 = vst.msk [vmem:[%s7728_s3 + $0x1f0] sm:$0xff] %vm8360_vm7, %v2590_v44  ;;  %v3044_v23 = vsub.f32 %v2590_v44, %v4331_v26  ;;  %v3104_v52 = vmul.f32 %v3039_v2, %v3039_v2  ;;  %v3036_v44 = vsub.f32 %v7554_v4, %v4345_v53  ;;  %v4348_v4 = vld [vmem:[%s7725_s0 + $0x128] sm:$0xff] }
 0x45e   :  { %v3035_v26 = vsub.f32 %v7532_v5, %v4347_v9  ;;  %v3019_v54 = vsub.f32 %v7329_v30, %v4348_v4  ;;  %v4350_v5 = vld [vmem:[%s7725_s0 + $0x120] sm:$0xff]  ;;  %v4351_v30 = vld [vmem:[%s7725_s0 + $0x198] sm:$0xff] }
 0x45f   :  { %v3109_v0 = vmul.f32 %v3044_v23, %v3044_v23  ;;  %3988 = vmatprep.subr.mxu0 %v3110_v43  ;;  %v3087_v43 = vmul.f32 %v3022_v29, %v3022_v29  ;;  %v3102_v23 = vmul.f32 %v3037_v59, %v3037_v59  ;;  %v3101_v40 = vmul.f32 %v3036_v44, %v3036_v44 }
 0x460   :  { %3989 = vmatpush3.msra.mxu0 %v3094_v17  ;;  %v3034_v17 = vsub.f32 %v7539_v1, %v4349_v39  ;;  %v3018_v25 = vsub.f32 %v7352_v7, %v4350_v5  ;;  %v3033_v41 = vsub.f32 %v7518_v37, %v4351_v30  ;;  %v3100_v46 = vmul.f32 %v3035_v26, %v3035_v26  ;;  %v4352_v1 = vld [vmem:[%s7725_s0 + $0x118] sm:$0xff]  ;;  %v4353_v7 = vld [vmem:[%s7725_s0 + $0x190] sm:$0xff] }
 0x461   :  { %3990 = vmatprep.subr.mxu0 %v3109_v0  ;;  %v3085_v0 = vmul.f32 %v3020_v55, %v3020_v55  ;;  %v3084_v47 = vmul.f32 %v3019_v54, %v3019_v54  ;;  %v3032_v27 = vsub.f32 %v7525_v11, %v4353_v7  ;;  %v4354_v37 = vld [vmem:[%s7725_s0 + $0x110] sm:$0xff]  ;;  %v4356_v11 = vld [vmem:[%s7725_s0 + $0x108] sm:$0xff] }
 0x462   :  { %3991 = vmatpush3.msra.mxu0 %v3093_v57  ;;  %v3017_v57 = vsub.f32 %v7284_v62, %v4352_v1  ;;  %v3016_v58 = vsub.f32 %v7306_v56, %v4354_v37  ;;  %v3083_v3 = vmul.f32 %v3018_v25, %v3018_v25  ;;  %v4355_v62 = vld [vmem:[%s7725_s0 + $0x188] sm:$0xff]  ;;  %v3098_v38 = vmul.f32 %v3033_v41, %v3033_v41  ;;  %v4357_v56 = vld [vmem:[%s7725_s0 + $0x180] sm:$0xff] }
 0x463   :  { %3992 = vmatprep.subr.mxu0 %v3108_v63  ;;  %v3099_v63 = vmul.f32 %v3034_v17, %v3034_v17  ;;  %v3015_v6 = vsub.f32 %v7240_v49, %v4356_v11  ;;  %v3030_v34 = vsub.f32 %v7511_v48, %v4357_v56  ;;  %v3097_v16 = vmul.f32 %v3032_v27, %v3032_v27  ;;  %v2730_v48 = vpop.f32.mrf.mxu1  ;;  %v3046_v37 = vld [vmem:[#allocation3] sm:$0x1] }
 0x464   :  { %3993 = vmatpush3.msra.mxu0 %v3092_v19  ;;  %v3031_v19 = vsub.f32 %v7504_v13, %v4355_v62  ;;  %v4358_v13 = vld [vmem:[%s7725_s0 + $0x100] sm:$0xff]  ;;  %v3081_v20 = vmul.f32 %v3016_v58, %v3016_v58  ;;  %s4426_s0 = smov [#allocation6]  }
 0x465   :  { %3994 = vmatprep.subr.mxu0 %v3107_v21  ;;  %v3082_v21 = vmul.f32 %v3017_v57, %v3017_v57  ;;  %v3080_v49 = vmul.f32 %v3015_v6, %v3015_v6  ;;  %v2732_v22 = vpop.f32.mrf.mxu1  ;;  %s3291_s28 = sshll.u32 %s4426_s0, 4  ;;  %s3292_s28 = int_to_ptr.vmem [resolvable:$true] %s3291_s28 }
 0x466   :  { %3995 = vmatpush3.msra.mxu0 %v3091_v45  ;;  %v3014_v45 = vsub.f32 %v7262_v14, %v4358_v13  ;;  %v3096_v2 = vmul.f32 %v3031_v19, %v3031_v19  ;;  %v2733_v10 = vadd.f32 0.5, %v2732_v22  ;;  %s4359_s1 = scalar_lea.vmem %s3292_s28, 16  ;;  %s4363_s7 = scalar_lea.vmem %s3292_s28, 32 }
 0x467   :  { %3996 = vmatprep.subr.mxu0 %v3106_v18  ;;  %v3095_v18 = vmul.f32 %v3030_v34, %v3030_v34  ;;  %p4360_p0 = scmp.ne.s32.totalorder %s3292_s28, %s4359_s1  ;;  %p4364_p1 = scmp.lt.s32.totalorder %s3292_s28, %s3292_s28 }
 0x468   :  { %3997 = vmatpush3.msra.mxu0 %v3090_v51  ;;  %v3079_v60 = vmul.f32 %v3014_v45, %v3014_v45  ;;  %v2731_v51 = vadd.f32 0.5, %v2730_v48  ;;  %v4281_v14 = vtrunc.f32 %v2733_v10  ;;  %p4365_p2 = scmp.lt.s32.totalorder %s4363_s7, %s4359_s1 }
 0x469   :  { %3998 = vmatprep.subr.mxu0 %v3105_v28  ;;  %v4425_v28 = vmov 1966171168  }
 0x46a   :  { %3999 = vmatpush3.msra.mxu0 %v3089_v50  ;;  %v4279_v8 = vtrunc.f32 %v2731_v51  ;;  %v2813_v31 = vunpack.c.l.s4 %v4425_v28  ;;  %v8361_v50 = vlaneseq  ;;  %v4282_v42 = vcvt.f32.s32 %v4281_v14  ;;  %p4366_p3 = por %p4365_p2, %p4364_p1 }
 0x46b   :  { %4000 = vmatprep.subr.mxu0 %v3104_v52 }
 0x46c   :  { %4001 = vmatpush3.msra.mxu0 %v3088_v35  ;;  %v2816_v61 = vshrl.u32 %v8361_v50, 7  ;;  %v4280_v59 = vcvt.f32.s32 %v4279_v8  ;;  %v2814_v33 = vunpack.c.0.s8 %v2813_v31  ;;  %vm2836_vm4 = vcmp.lt.s32.totalorder %v8361_v50, 512  ;;  %p4367_p4 = pnand %p4366_p3, %p4360_p0 }
 0x46d   :  { %4002 = vmatprep.subr.mxu0 %v3103_v12 }
 0x46e   :  { %4003 = vmatpush3.msra.mxu0 %v3087_v43  ;;  %v2817_v15 = vsub.s32 %v2814_v33, %v2816_v61 }
 0x46f   :  { %4004 = vmatprep.subr.mxu0 %v3102_v23 }
 0x470   :  { %4005 = vmatpush3.msra.mxu0 %v3086_v24 }
 0x471   :  { %4006 = vmatprep.subr.mxu0 %v3101_v40 }
 0x472   :  { %4007 = vmatpush3.msra.mxu0 %v3085_v0  ;;  %v2839_v0 = vld [vmem:[#allocation2] sm:$0x1] }
 0x473   :  { %4008 = vmatprep.subr.mxu0 %v3100_v46 }
 0x474   :  { %4009 = vmatpush3.msra.mxu0 %v3084_v47 }
 0x475   :  { %4010 = vmatprep.subr.mxu0 %v3099_v63 }
 0x476   :  { %4011 = vmatpush3.msra.mxu0 %v3083_v3 }
 0x477   :  { %4012 = vmatprep.subr.mxu0 %v3098_v38 }
 0x478   :  { %4013 = vmatpush3.msra.mxu0 %v3082_v21 }
 0x479   :  { %4014 = vmatprep.subr.mxu0 %v3097_v16 }
 0x47a   :  { %4015 = vmatpush3.msra.mxu0 %v3081_v20 }
 0x47b   :  { %4016 = vmatprep.subr.mxu0 %v3096_v2 }
 0x47c   :  { %4017 = vmatpush3.msra.mxu0 %v3080_v49 }
 0x47d   :  { %4018 = vmatprep.subr.mxu0 %v3095_v18 }
 0x47e   :  { %4019 = vmatpush3.msra.mxu0 %v3079_v60  ;;  %v3915_v24 = vpop.f32.mrf.mxu1 }
 0x47f   :  { %3246 = vmatmul.mubr.f32.vlgmr.msra.gmra.mxu0 %v8107_v32  ;;  %v2810_v32 = vcombine.low %v4280_v59, %v4282_v42 }
 0x480   :  { %v3916_v39 = vpop.f32.mrf.mxu1 }
 0x481   :  { %v2818_v9 = vrot.slane %v2810_v32, %v2817_v15  ;;  %v3917_v40 = vadd.f32 %v3916_v39, %v3915_v24 }
 0x49a   :  { %v2801_v29 = vpop.f32.mrf.mxu0 }
 0x49b   :  { %v2802_v52 = vadd.f32 0.5, %v2801_v29 }
 0x49c   :  { %v2803_v35 = vpop.f32.mrf.mxu0 }
 0x49d   :  { %v4283_v53 = vtrunc.f32 %v2802_v52  ;;  %v2804_v44 = vadd.f32 0.5, %v2803_v35 }
 0x49f   :  { %v4284_v12 = vcvt.f32.s32 %v4283_v53  ;;  %v4285_v55 = vtrunc.f32 %v2804_v44 }
 0x4a1   :  { %v4286_v43 = vcvt.f32.s32 %v4285_v55 }
 0x4a3   :  { %v2811_v26 = vcombine.low %v4284_v12, %v4286_v43 }
 0x4a5   :  { %v2825_v23 = vrot.slane %v2811_v26, %v2817_v15 }
 0x4a7   :  { %v2826_v4 = vcombine.low %v2818_v9, %v2825_v23 }
 0x4a9   :  { %v2833_v54 = vrot.slane %v2826_v4, %v2817_v15 }
 0x4ab   :  { %2838 = vst.msk [vmem:[#allocation4] sm:$0xf] %vm2836_vm4, %v2833_v54 }
 0x4ba   :  { %v3950_v17 = vpop.f32.mrf.mxu0 }
 0x4bc   :  { %v3951_v5 = vpop.f32.mrf.mxu0 }
 0x4bd   :  { %v3952_v25 = vadd.f32 %v3951_v5, %v3950_v17 }
 0x4bf   :  { %v2977_v30 = vadd.f32 %v3952_v25, %v3917_v40 }
 0x4c1   :  { %v2980_v41 = vadd.f32 %v2977_v30, %v2839_v0 }
 0x4c3   :  { %2981 = vst [vmem:[#allocation2] sm:$0x1] %v2980_v41 }
 0x4ca   :  { %v3257_v46 = vld [vmem:[#allocation2] sm:$0x1] }
 0x4cb   :  { %3258 = vst [vmem:[#allocation6] sm:$0x1] %v3257_v46 }
 0x4cc   :  { %v3985_v1 = vpop.f32.mrf.mxu1 }
 0x4ce   :  { %v3986_v57 = vpop.f32.mrf.mxu1 }
 0x4cf   :  { %v3987_v27 = vadd.f32 %v3986_v57, %v3985_v1 }
 0x53f   :  { %v4020_v47 = vpop.f32.mrf.mxu0 }
 0x541   :  { %v4021_v7 = vpop.f32.mrf.mxu0 }
 0x542   :  { %v4022_v63 = vadd.f32 %v4021_v7, %v4020_v47 }
 0x544   :  { %v3248_v58 = vadd.f32 %v4022_v63, %v3987_v27 }
 0x546   :  { %v3251_v3 = vadd.f32 %v3248_v58, %v3046_v37 }
 0x548   :  { %3253 = vst.msk [vmem:[#allocation3] sm:$0x1] %vm25_vm12, %v3251_v3 }
 0x54f   :  { %v3259_v62 = vld [vmem:[#allocation3] sm:$0x1] }
 0x550   :  { %v3260_v19 = vsel %vm25_vm12, %v3259_v62, 0.0 }
 0x551   :  { %3261 = vadd.xlane.f32.xlu0 %v3260_v19 }
 0x552   :  { %4370 = shalt.err (!%p4367_p4)
}
 0x553   :  { %3294 = dma.vmem_to_hbm [thread:$0]  %s3292_s28, 16, %s7730_s5, [#allocation7]  }
 0x554   :  { %s4379_s2 = scalar_lea.vmem %s3282_s30, 64  ;;  %p4384_p6 = scmp.lt.s32.totalorder %s3282_s30, %s3282_s30 }
 0x555   :  { %p4380_p5 = scmp.ne.s32.totalorder %s3282_s30, %s4379_s2  ;;  %p4385_p7 = scmp.lt.s32.totalorder %s4379_s2, %s4379_s2 }
 0x557   :  { %p4386_p8 = por %p4385_p7, %p4384_p6 }
 0x559   :  { %p4387_p9 = pnand %p4386_p8, %p4380_p5 }
 0x55b   :  { %4390 = shalt.err (!%p4387_p9)
}
 0x55c   :  { %3284 = dma.vmem_to_hbm [thread:$0]  %s3282_s30, 64, %s7729_s4, [#allocation5]   ;;  %vm3271_vm6 = vcmask 0  }
 0x55d   :  { %s4428_s5 = smov [#allocation8]  }
 0x55e   :  { %s3301_s11 = sshll.u32 %s4428_s5, 4  ;;  %s3302_s11 = int_to_ptr.vmem [resolvable:$true] %s3301_s11 }
 0x55f   :  { %s4399_s13 = scalar_lea.vmem %s3302_s11, 16  ;;  %s4403_s14 = scalar_lea.vmem %s3302_s11, 32 }
 0x560   :  { %p4400_p10 = scmp.ne.s32.totalorder %s3302_s11, %s4399_s13  ;;  %p4404_p11 = scmp.lt.s32.totalorder %s3302_s11, %s3302_s11 }
 0x561   :  { %p4405_p12 = scmp.lt.s32.totalorder %s4403_s14, %s4399_s13 }
 0x563   :  { %p4406_p13 = por %p4405_p12, %p4404_p11 }
 0x565   :  { %p4407_p0 = pnand %p4406_p13, %p4400_p10 }
 0x5da   :  { %v3262_v36 = vpop.xlane.xlu0 %3261 }
 0x5db   :  { %v3263_v38 = vrot.slane %v3262_v36, 4 }
 0x5dd   :  { %v3264_v11 = vadd.f32 %v3263_v38, %v3262_v36 }
 0x5df   :  { %v3265_v6 = vrot.slane %v3264_v11, 2 }
 0x5e1   :  { %v3266_v21 = vadd.f32 %v3265_v6, %v3264_v11 }
 0x5e3   :  { %v3267_v56 = vrot.slane %v3266_v21, 1 }
 0x5e5   :  { %v3268_v34 = vadd.f32 %v3267_v56, %v3266_v21 }
 0x5e7   :  { %4287 = vpush %v3268_v34 }
 0x618   :  { %s4288_s12 = spop %4287 }
 0x619   :  { %v3270_v16 = vstv %s4288_s12 }
 0x61a   :  { %3272 = vst.msk [vmem:[#allocation8] sm:$0x1] %vm3271_vm6, %v3270_v16 }
 0x61b   :  { %4410 = shalt.err (!%p4407_p0)
}
 0x61c   :  { %3304 = dma.vmem_to_hbm [thread:$0]  %s3302_s11, 16, %s7731_s6, [#allocation7]  }
 0x61d   :  { %4419 = dma.done.wait [#allocation5], 64  }
 0x61e   :  { %4420 = vsyncadd [#allocation5], 4294967232 }
 0x61f   :  { %4421 = dma.done.wait [#allocation7], 32  }
 0x620   :  { %4422 = vsyncadd [#allocation7], 4294967264 }
 0x621   :  { %3316 = vsyncpa [#allocation5], 1 }
 0x622   :  { %3317 = vsyncpa [#allocation7], 1 }

</bundles_post_ra>
